<compile_context>
chip_gen: v6e
topology: v6e:2x2x1
jax: 0.10.0
libtpu: 0.0.40
codegen_flags: <defaults>
</compile_context>

<pallas_src>
import functools
from typing import NamedTuple

import jax
import jax.numpy as jnp
from jax.experimental import pallas as pl
from jax.experimental.pallas import tpu as pltpu

RELU_CLIP = 20.0


# ----------------------------------------------------------------------------
# helpers
# ----------------------------------------------------------------------------
def _round_up(x, m):
    return ((x + m - 1) // m) * m


def _pad(a, shape):
    pads = [(0, s - d) for d, s in zip(a.shape, shape)]
    if all(p == (0, 0) for p in pads):
        return a
    return jnp.pad(a, pads)


def _device_kind():
    try:
        return jax.devices()[0].device_kind.lower()
    except Exception:  # pragma: no cover - defensive
        return ""


def _vmem_limit():
    kind = _device_kind()
    if "v7" in kind or "tpu7" in kind:
        return 32 * 1024 * 1024        # v7x: 64 MiB physical -> conservative scoped cap
    if "v5" in kind or "v6" in kind:
        return 96 * 1024 * 1024        # 128 MiB parts: let weights stay resident
    return 64 * 1024 * 1024


def _matmul_tiles():
    kind = _device_kind()
    if "v7" in kind or "tpu7" in kind or "v6" in kind:
        return 512, 512, 512           # big blocks keep the 256x256 MXU full
    return 256, 512, 512               # v5e (128-wide MXU) and fallback


def _largest_divisor_tile(dim, tmax, quantum=128):
    t = min(tmax, dim)
    t -= t % quantum
    while t > quantum and dim % t:
        t -= quantum
    return t


def _pick_row_tile(m, tmax=512):
    if m <= tmax:
        return m                        # block == full dim: always legal
    for c in range(tmax, 15, -1):
        if m % c == 0 and c % 16 == 0:
            return c
    return tmax                         # caller pads rows (rare, awkward shapes only)


def _chain_fits_vmem(x_cols, layers, tm):
    """Rough VMEM estimate for a fully fused chain (default double buffering)."""
    budget = int(0.7 * _vmem_limit())
    n_bytes = 2 * tm * x_cols * 2                         # bf16 input row tile
    widest = x_cols
    for w_t, b, _ in layers:
        n_bytes += 2 * (w_t.size * 2 + b.size * 4)        # resident weights + biases
        widest = max(widest, w_t.shape[1])
    n_bytes += 2 * tm * layers[-1][0].shape[1] * 4        # f32 output tile
    n_bytes += 2 * tm * widest * 4                        # in-kernel activation headroom
    return n_bytes < budget


# ----------------------------------------------------------------------------
# Kernel 1: tiled matmul  y = x @ w + b  (+ optional clipped ReLU)  [fallback]
# ----------------------------------------------------------------------------
def _tiled_matmul_kernel(x_ref, w_ref, b_ref, o_ref, acc_ref, *, clip):
    k = pl.program_id(2)

    @pl.when(k == 0)
    def _():
        acc_ref[...] = jnp.zeros_like(acc_ref)

    acc_ref[...] += jnp.dot(x_ref[...], w_ref[...],
                            preferred_element_type=jnp.float32)

    @pl.when(k == pl.num_programs(2) - 1)
    def _():
        y = acc_ref[...] + b_ref[...]
        if clip is not None:
            y = jnp.clip(y, 0.0, clip)
        o_ref[...] = y.astype(o_ref.dtype)


def tiled_linear(x, w_t, b, clip=None, out_dtype=jnp.float32):
    """x: (M, K); w_t: (K, N) pre-transposed+padded bf16; b: (1, N) f32."""
    M, K = x.shape
    K2, N = w_t.shape
    assert K == K2 and K % 128 == 0 and N % 128 == 0
    tm_cfg, tn_cfg, tk_cfg = _matmul_tiles()
    tm = min(tm_cfg, _round_up(M, 16))
    tn = _largest_divisor_tile(N, tn_cfg)
    tk = _largest_divisor_tile(K, tk_cfg)
    M_pad = _round_up(M, tm)

    x_in = x if x.dtype == jnp.bfloat16 else x.astype(jnp.bfloat16)
    x_in = _pad(x_in, (M_pad, K))

    out = pl.pallas_call(
        functools.partial(_tiled_matmul_kernel, clip=clip),
        grid=(M_pad // tm, N // tn, K // tk),
        out_shape=jax.ShapeDtypeStruct((M_pad, N), out_dtype),
        in_specs=[
            pl.BlockSpec((tm, tk), lambda i, j, k: (i, k)),
            pl.BlockSpec((tk, tn), lambda i, j, k: (k, j)),
            pl.BlockSpec((1, tn), lambda i, j, k: (0, j)),
        ],
        out_specs=pl.BlockSpec((tm, tn), lambda i, j, k: (i, j)),
        scratch_shapes=[pltpu.VMEM((tm, tn), jnp.float32)],
        compiler_params=pltpu.CompilerParams(
            dimension_semantics=("parallel", "parallel", "arbitrary"),
            vmem_limit_bytes=_vmem_limit()),
    )(x_in, w_t, b)
    return out if M_pad == M else out[:M]


# ----------------------------------------------------------------------------
# Kernel 2: fused row-tiled FC chain (weights resident, one HBM pass per chain)
# ----------------------------------------------------------------------------
def _fc_chain_kernel(*refs, clips):
    n = len(clips)
    x_ref, o_ref = refs[0], refs[-1]
    h = x_ref[...]                                   # bf16 row tile
    y = None
    for l in range(n):
        w_ref, b_ref = refs[1 + 2 * l], refs[2 + 2 * l]
        y = jnp.dot(h, w_ref[...], preferred_element_type=jnp.float32)
        y = y + b_ref[...]
        if clips[l] is not None:
            y = jnp.clip(y, 0.0, clips[l])
        h = y.astype(jnp.bfloat16)
    o_ref[...] = y.astype(o_ref.dtype)


def fc_chain(x, layers, out_dtype=jnp.float32):
    """Apply a chain of Linear(+clipped ReLU) layers in one pallas_call.

    x: (M, K0) with K0 already padded to 128 lanes.  layers: list of
    (w_t (K, N) pre-transposed+padded bf16, b (1, N) f32, clip|None).
    """
    M, K0 = x.shape
    assert K0 == layers[0][0].shape[0]
    tm = _pick_row_tile(M)
    M_pad = _round_up(M, tm)
    x_in = x if x.dtype == jnp.bfloat16 else x.astype(jnp.bfloat16)
    if M_pad != M:
        x_in = _pad(x_in, (M_pad, K0))

    operands = [x_in]
    in_specs = [pl.BlockSpec((tm, K0), lambda i: (i, 0))]
    clips = []
    k_prev = K0
    for (w_t, b, clip) in layers:
        K, N = w_t.shape
        assert K == k_prev and N % 128 == 0
        operands += [w_t, b]
        in_specs += [pl.BlockSpec((K, N), lambda i: (0, 0)),
                     pl.BlockSpec((1, N), lambda i: (0, 0))]
        clips.append(clip)
        k_prev = N
    N_last = k_prev

    out = pl.pallas_call(
        functools.partial(_fc_chain_kernel, clips=tuple(clips)),
        grid=(M_pad // tm,),
        out_shape=jax.ShapeDtypeStruct((M_pad, N_last), out_dtype),
        in_specs=in_specs,
        out_specs=pl.BlockSpec((tm, N_last), lambda i: (i, 0)),
        compiler_params=pltpu.CompilerParams(
            dimension_semantics=("parallel",),
            vmem_limit_bytes=_vmem_limit()),
    )(*operands)
    return out if M_pad == M else out[:M]


def apply_layers(x, layers, out_dtype=jnp.float32):
    """Greedily fuse maximal prefixes of `layers` into fc_chain calls; any single
    layer whose weights don't fit VMEM falls back to the tiled/pipelined matmul."""
    h = x
    i, n = 0, len(layers)
    while i < n:
        tm = _pick_row_tile(h.shape[0])
        j = n
        while j > i + 1 and not _chain_fits_vmem(h.shape[1], layers[i:j], tm):
            j -= 1
        sub = layers[i:j]
        dt = out_dtype if j == n else jnp.bfloat16
        if len(sub) == 1 and not _chain_fits_vmem(h.shape[1], sub, tm):
            w_t, b, clip = sub[0]
            h = tiled_linear(h, w_t, b, clip=clip, out_dtype=dt)
        else:
            h = fc_chain(h, sub, out_dtype=dt)
        i = j
    return h


# ----------------------------------------------------------------------------
# Kernel 3: chunked LSTM recurrence (C timesteps per grid step)
# ----------------------------------------------------------------------------
def _lstm_chunk_kernel(xg_ref, whh_ref, h0_ref, c0_ref,
                       ys_ref, hn_ref, cn_ref,
                       h_scr, c_scr, *, chunk, seq_len, hidden, mask_tail):
    ci = pl.program_id(0)
    Hl = hidden                                    # padded to a 128-lane multiple

    @pl.when(ci == 0)
    def _():
        h_scr[...] = h0_ref[...]
        c_scr[...] = c0_ref[...]

    whh = whh_ref[...]                             # hoisted: one VMEM load per chunk

    def step(i, carry):
        h = h_scr[...]
        c = c_scr[...]
        # gates = x_t @ W_ih^T + b (precomputed, f32) + h_{t-1} @ W_hh^T (bf16 MXU)
        gates = xg_ref[i] + jnp.dot(h.astype(jnp.bfloat16), whh,
                                    preferred_element_type=jnp.float32)
        # gate slices are 128-lane aligned (per-gate padded layout)
        i_g = jax.nn.sigmoid(gates[:, 0 * Hl:1 * Hl])
        f_g = jax.nn.sigmoid(gates[:, 1 * Hl:2 * Hl])
        g_g = jnp.tanh(gates[:, 2 * Hl:3 * Hl])
        o_g = jax.nn.sigmoid(gates[:, 3 * Hl:4 * Hl])
        c_new = f_g * c + i_g * g_g
        h_new = o_g * jnp.tanh(c_new)
        if mask_tail:                              # only traced when T % chunk != 0
            valid = ci * chunk + i < seq_len
            c_new = jnp.where(valid, c_new, c)
            h_new = jnp.where(valid, h_new, h)
        h_scr[...] = h_new
        c_scr[...] = c_new
        ys_ref[i] = h_new.astype(ys_ref.dtype)     # bf16 writeback (halved HBM traffic)
        return carry

    jax.lax.fori_loop(0, chunk, step, 0, unroll=True)

    @pl.when(ci == pl.num_programs(0) - 1)
    def _():
        hn_ref[...] = h_scr[...]
        cn_ref[...] = c_scr[...]


def _pick_lstm_chunk(T, B_pad, G, Hl_p, whh_bytes, vmem_limit, max_chunk=32):
    per_step = 2 * (B_pad * G * 4) + 2 * (B_pad * Hl_p * 2)   # xg f32 in + ys bf16 out
    budget = int(0.7 * vmem_limit) - 2 * whh_bytes - 8 * B_pad * Hl_p * 4
    cap = budget // per_step if budget > per_step else 1
    max_c = int(max(1, min(max_chunk, T, cap)))
    for c in range(max_c, 0, -1):
        if T % c == 0 and 4 * c >= max_c:
            return c, False                         # no time padding -> no masking
    return max_c, True


def lstm(xg, whh_t, h0, c0):
    """xg: (T, B_pad, 4*Hl_p) f32; whh_t: (Hl_p, 4*Hl_p) bf16; h0, c0: (B_pad, Hl_p) f32."""
    T, B_pad, G = xg.shape
    Hl_p = G // 4
    vmem = _vmem_limit()
    chunk, mask_tail = _pick_lstm_chunk(T, B_pad, G, Hl_p, whh_t.size * 2, vmem)
    T_pad = _round_up(T, chunk)
    if T_pad != T:
        xg = _pad(xg, (T_pad, B_pad, G))

    ys, hn, cn = pl.pallas_call(
        functools.partial(_lstm_chunk_kernel, chunk=chunk, seq_len=T,
                          hidden=Hl_p, mask_tail=mask_tail),
        grid=(T_pad // chunk,),
        out_shape=(
            jax.ShapeDtypeStruct((T_pad, B_pad, Hl_p), jnp.bfloat16),   # ys in bf16
            jax.ShapeDtypeStruct((B_pad, Hl_p), jnp.float32),           # h_n
            jax.ShapeDtypeStruct((B_pad, Hl_p), jnp.float32),           # c_n
        ),
        in_specs=[
            pl.BlockSpec((chunk, B_pad, G), lambda c: (c, 0, 0)),
            pl.BlockSpec((Hl_p, G), lambda c: (0, 0)),
            pl.BlockSpec((B_pad, Hl_p), lambda c: (0, 0)),
            pl.BlockSpec((B_pad, Hl_p), lambda c: (0, 0)),
        ],
        out_specs=(
            pl.BlockSpec((chunk, B_pad, Hl_p), lambda c: (c, 0, 0)),
            pl.BlockSpec((B_pad, Hl_p), lambda c: (0, 0)),
            pl.BlockSpec((B_pad, Hl_p), lambda c: (0, 0)),
        ),
        scratch_shapes=[
            pltpu.VMEM((B_pad, Hl_p), jnp.float32),
            pltpu.VMEM((B_pad, Hl_p), jnp.float32),
        ],
        compiler_params=pltpu.CompilerParams(
            dimension_semantics=("arbitrary",),     # recurrence: sequential
            vmem_limit_bytes=vmem),
    )(xg, whh_t, h0, c0)
    return (ys[:T] if T_pad != T else ys), hn, cn


# ----------------------------------------------------------------------------
# One-time weight preparation (transpose, 128-lane pad, bf16 cast, fuse biases)
# ----------------------------------------------------------------------------
class DS1Dims(NamedTuple):
    hidden: int        # true LSTM width Hl = 2 * n_hidden
    hidden_pad: int    # Hl padded to 128 lanes
    vocab: int         # out_features


def prepare_params(params):
    bf16, f32 = jnp.bfloat16, jnp.float32
    H, I = params["w1"].shape
    Hl = params["w_hh"].shape[1]
    V = params["wo"].shape[0]
    H2 = params["w3"].shape[0]                      # = 2 * n_hidden = Hl
    I_p, H_p = _round_up(I, 128), _round_up(H, 128)
    H2_p, Hl_p, V_p = _round_up(H2, 128), _round_up(Hl, 128), _round_up(V, 128)

    def lin(w, b, kp, np_):
        return (_pad(jnp.transpose(w), (kp, np_)).astype(bf16),
                _pad(b.reshape(1, -1), (1, np_)).astype(f32))

    def gate_cols(m):                               # (K, 4*Hl) -> (K, 4*Hl_p), per-gate pad
        k = m.shape[0]
        return _pad(m.reshape(k, 4, Hl), (k, 4, Hl_p)).reshape(k, 4 * Hl_p)

    w1_t, b1 = lin(params["w1"], params["b1"], I_p, H_p)
    w2_t, b2 = lin(params["w2"], params["b2"], H_p, H_p)
    w3_t, b3 = lin(params["w3"], params["b3"], H_p, H2_p)

    w_ih_t = _pad(gate_cols(jnp.transpose(params["w_ih"])), (H2_p, 4 * Hl_p)).astype(bf16)
    b_ihh = _pad((params["b_ih"] + params["b_hh"]).reshape(4, Hl),
                 (4, Hl_p)).reshape(1, 4 * Hl_p).astype(f32)
    w_hh_t = _pad(gate_cols(jnp.transpose(params["w_hh"])), (Hl_p, 4 * Hl_p)).astype(bf16)

    w4_t, b4 = lin(params["w4"], params["b4"], Hl_p, H_p)
    wo_t, bo = lin(params["wo"], params["bo"], H_p, V_p)

    prepared = {"w1_t": w1_t, "b1": b1, "w2_t": w2_t, "b2": b2,
                "w3_t": w3_t, "b3": b3,
                "w_ih_t": w_ih_t, "b_ihh": b_ihh, "w_hh_t": w_hh_t,
                "w4_t": w4_t, "b4": b4, "wo_t": wo_t, "bo": bo}
    return prepared, DS1Dims(hidden=Hl, hidden_pad=Hl_p, vocab=V)


# ----------------------------------------------------------------------------
# DeepSpeech1 forward (Pallas) + CollapseArgsDS1 wrapper
# ----------------------------------------------------------------------------
def deepspeech1_forward(prepared, x, lens, h0, c0, *, dims):
    """x: (T, B, I) f32; lens: (B,) i32; h0, c0: (1, B, Hl) with Hl = 2*n_hidden."""
    T, B, _ = x.shape
    p = prepared
    B_pad = _round_up(B, 8)
    I_p = p["w1_t"].shape[0]
    Hl, Hl_p, V = dims.hidden, dims.hidden_pad, dims.vocab

    # Single wrapper-side cast+pad pass over the (smallest) input tensor; everything
    # downstream stays in padded bf16/f32 layouts handed directly between kernels.
    rows = _pad(x.astype(jnp.bfloat16), (T, B_pad, I_p)).reshape(T * B_pad, I_p)

    # fc1 -> fc2 -> fc3 -> LSTM input projection (w_ih), fused into one row-tiled
    # pallas_call when resident weights fit VMEM (export/test sizes); otherwise the
    # non-fitting layers fall back to the tiled/pipelined matmul automatically.
    xg = apply_layers(
        rows,
        [(p["w1_t"], p["b1"], RELU_CLIP),
         (p["w2_t"], p["b2"], RELU_CLIP),
         (p["w3_t"], p["b3"], RELU_CLIP),
         (p["w_ih_t"], p["b_ihh"], None)],
        out_dtype=jnp.float32)                      # (T*B_pad, 4*Hl_p)
    xg = xg.reshape(T, B_pad, 4 * Hl_p)

    h0_p = _pad(h0[0].astype(jnp.float32), (B_pad, Hl_p))
    c0_p = _pad(c0[0].astype(jnp.float32), (B_pad, Hl_p))

    # sequential recurrence, chunked over time; ys comes back bf16 and padded.
    ys, hn, cn = lstm(xg, p["w_hh_t"], h0_p, c0_p)

    # fc4 -> output projection, fused; vocab is already padded to 128 lanes.
    logits = apply_layers(
        ys.reshape(T * B_pad, Hl_p),
        [(p["w4_t"], p["b4"], RELU_CLIP),
         (p["wo_t"], p["bo"], None)],
        out_dtype=jnp.float32)                      # (T*B_pad, V_p)

    out = logits.reshape(T, B_pad, -1)[:, :B, :V]
    return out, lens, hn[None, :B, :Hl], cn[None, :B, :Hl]


def collapse_args_ds1(prepared, x, lens, h_n, c_n, *, dims):
    """CollapseArgsDS1.forward: flatten ((out, out_lens), (h_n, c_n))."""
    out, out_lens, h_n, c_n = deepspeech1_forward(prepared, x, lens, h_n, c_n, dims=dims)
    return out, out_lens, h_n, c_n


# ----------------------------------------------------------------------------
# Pure-JAX f32 reference for correctness checking
# ----------------------------------------------------------------------------
def _ref_forward(params, x, lens, h0, c0):
    T, B, I = x.shape
    clip = lambda v: jnp.clip(v, 0.0, RELU_CLIP)
    h = x.reshape(T * B, I)
    h = clip(h @ params["w1"].T + params["b1"])
    h = clip(h @ params["w2"].T + params["b2"])
    h = clip(h @ params["w3"].T + params["b3"])
    xg = (h @ params["w_ih"].T + params["b_ih"] + params["b_hh"]).reshape(T, B, -1)

    def step(carry, xg_t):
        hh, cc = carry
        gates = xg_t + hh @ params["w_hh"].T
        i, f, g, o = jnp.split(gates, 4, axis=-1)
        cc = jax.nn.sigmoid(f) * cc + jax.nn.sigmoid(i) * jnp.tanh(g)
        hh = jax.nn.sigmoid(o) * jnp.tanh(cc)
        return (hh, cc), hh

    (hn, cn), ys = jax.lax.scan(step, (h0[0], c0[0]), xg)
    h = ys.reshape(T * B, -1)
    h = clip(h @ params["w4"].T + params["b4"])
    logits = h @ params["wo"].T + params["bo"]
    return logits.reshape(T, B, -1), lens, hn[None], cn[None]


# ----------------------------------------------------------------------------
# Deterministic parameter init (synthetic, not a checkpoint)
# ----------------------------------------------------------------------------
def init_params(key, in_features, n_hidden, out_features):
    H = n_hidden
    Hl = 2 * n_hidden          # LSTM hidden size (matches fc4's 2H -> H input)
    ks = jax.random.split(key, 14)

    def w(k, o, i):
        return jax.random.normal(k, (o, i), jnp.float32) * 0.1

    def b(k, o):
        return jax.random.normal(k, (o,), jnp.float32) * 0.05

    b_ih = b(ks[9], 4 * Hl)
    b_hh = b(ks[10], 4 * Hl)
    # forget_gate_bias = 1.0 (DS1 convention)
    b_ih = b_ih.at[Hl:2 * Hl].set(1.0)
    b_hh = b_hh.at[Hl:2 * Hl].set(0.0)

    return {
        "w1": w(ks[0], H, in_features), "b1": b(ks[1], H),
        "w2": w(ks[2], H, H),           "b2": b(ks[3], H),
        "w3": w(ks[4], 2 * H, H),       "b3": b(ks[5], 2 * H),
        "w_ih": w(ks[6], 4 * Hl, 2 * H),
        "w_hh": w(ks[7], 4 * Hl, Hl),
        "b_ih": b_ih, "b_hh": b_hh,
        "w4": w(ks[8], H, Hl),          "b4": b(ks[11], H),
        "wo": w(ks[12], out_features, H), "bo": b(ks[13], out_features),
    }


if __name__ == "__main__":
    T, B = 8, 2                  # seq=8, batch=2
    in_features, n_hidden, out_features = 32, 32, 16
    Hl = 2 * n_hidden

    key = jax.random.PRNGKey(0)
    k_p, k_x, k_h, k_c = jax.random.split(key, 4)

    params = init_params(k_p, in_features, n_hidden, out_features)
    prepared, dims = prepare_params(params)   # one-time transpose / pad / bf16 / bias fuse

    x = jax.random.normal(k_x, (T, B, in_features), jnp.float32)   # time-major (T, B, I)
    lens = jnp.array([T, T - 2], dtype=jnp.int32)
    h_n = jax.random.normal(k_h, (1, B, Hl), jnp.float32) * 0.1
    c_n = jax.random.normal(k_c, (1, B, Hl), jnp.float32) * 0.1

    fwd = jax.jit(functools.partial(collapse_args_ds1, dims=dims))
    out, out_lens, h_out, c_out = fwd(prepared, x, lens, h_n, c_n)
    jax.block_until_ready((out, out_lens, h_out, c_out))

    # sanity check against pure-JAX f32 reference (bf16 matmuls -> loose tolerance)
    r_out, r_lens, r_h, r_c = _ref_forward(params, x, lens, h_n, c_n)
    assert out.shape == (T, B, out_features)
    assert h_out.shape == (1, B, Hl) and c_out.shape == (1, B, Hl)
    assert jnp.array_equal(out_lens, r_lens)
    for a, r in ((out, r_out), (h_out, r_h), (c_out, r_c)):
        assert jnp.allclose(a, r, atol=5e-2, rtol=5e-2), float(jnp.max(jnp.abs(a - r)))

    print("KERNEL_OK")
</pallas_src>

<mosaic_0001>
module attributes {stable_mosaic.version = 11 : i64} {
  func.func @_fc_chain_kernel(%arg0: i32, %arg1: memref<64x128xbf16, #tpu.memory_space<vmem>>, %arg2: memref<128x128xbf16, #tpu.memory_space<vmem>>, %arg3: memref<1x128xf32, #tpu.memory_space<vmem>>, %arg4: memref<128x128xbf16, #tpu.memory_space<vmem>>, %arg5: memref<1x128xf32, #tpu.memory_space<vmem>>, %arg6: memref<128x128xbf16, #tpu.memory_space<vmem>>, %arg7: memref<1x128xf32, #tpu.memory_space<vmem>>, %arg8: memref<128x512xbf16, #tpu.memory_space<vmem>>, %arg9: memref<1x512xf32, #tpu.memory_space<vmem>>, %arg10: memref<64x512xf32, #tpu.memory_space<vmem>>) attributes {dimension_semantics = [#tpu.dimension_semantics<parallel>], iteration_bounds = array<i64: 1>, scalar_prefetch = 0 : i64, scratch_operands = 0 : i64, tpu.core_type = #tpu.core_type<tc>, window_params = [{transform_indices = @transform_0, window_bounds = array<i64: 64, 128>}, {pipeline_mode = #tpu.pipeline_mode<synchronous>, transform_indices = @transform_1, window_bounds = array<i64: 128, 128>}, {pipeline_mode = #tpu.pipeline_mode<synchronous>, transform_indices = @transform_2, window_bounds = array<i64: 1, 128>}, {pipeline_mode = #tpu.pipeline_mode<synchronous>, transform_indices = @transform_3, window_bounds = array<i64: 128, 128>}, {pipeline_mode = #tpu.pipeline_mode<synchronous>, transform_indices = @transform_4, window_bounds = array<i64: 1, 128>}, {pipeline_mode = #tpu.pipeline_mode<synchronous>, transform_indices = @transform_5, window_bounds = array<i64: 128, 128>}, {pipeline_mode = #tpu.pipeline_mode<synchronous>, transform_indices = @transform_6, window_bounds = array<i64: 1, 128>}, {pipeline_mode = #tpu.pipeline_mode<synchronous>, transform_indices = @transform_7, window_bounds = array<i64: 128, 512>}, {pipeline_mode = #tpu.pipeline_mode<synchronous>, transform_indices = @transform_8, window_bounds = array<i64: 1, 512>}, {transform_indices = @transform_9, window_bounds = array<i64: 64, 512>}]} {
    %c0 = arith.constant 0 : index
    %c0_0 = arith.constant 0 : index
    %0 = vector.load %arg1[%c0, %c0_0] : memref<64x128xbf16, #tpu.memory_space<vmem>>, vector<64x128xbf16>
    %c0_1 = arith.constant 0 : index
    %c0_2 = arith.constant 0 : index
    %1 = vector.load %arg2[%c0_1, %c0_2] : memref<128x128xbf16, #tpu.memory_space<vmem>>, vector<128x128xbf16>
    %cst = arith.constant dense<0.000000e+00> : vector<64x128xf32>
    %2 = tpu.matmul %0, %1, %cst {dimension_numbers = #tpu.dot_dimension_numbers<[1], [0], [0], [1], [0, 0, 1, 1], [], []>} : vector<64x128xbf16>, vector<128x128xbf16>, vector<64x128xf32> -> vector<64x128xf32>
    %c0_3 = arith.constant 0 : index
    %c0_4 = arith.constant 0 : index
    %3 = vector.load %arg3[%c0_3, %c0_4] : memref<1x128xf32, #tpu.memory_space<vmem>>, vector<1x128xf32>
    %4 = vector.broadcast %3 : vector<1x128xf32> to vector<64x128xf32>
    %5 = arith.addf %2, %4 : vector<64x128xf32>
    %cst_5 = arith.constant 0.000000e+00 : f32
    %cst_6 = arith.constant 2.000000e+01 : f32
    %6 = vector.broadcast %cst_5 : f32 to vector<64x128xf32>
    %7 = arith.maximumf %6, %5 : vector<64x128xf32>
    %8 = vector.broadcast %cst_6 : f32 to vector<64x128xf32>
    %9 = arith.minimumf %8, %7 : vector<64x128xf32>
    %10 = arith.truncf %9 : vector<64x128xf32> to vector<64x128xbf16>
    %c0_7 = arith.constant 0 : index
    %c0_8 = arith.constant 0 : index
    %11 = vector.load %arg4[%c0_7, %c0_8] : memref<128x128xbf16, #tpu.memory_space<vmem>>, vector<128x128xbf16>
    %cst_9 = arith.constant dense<0.000000e+00> : vector<64x128xf32>
    %12 = tpu.matmul %10, %11, %cst_9 {dimension_numbers = #tpu.dot_dimension_numbers<[1], [0], [0], [1], [0, 0, 1, 1], [], []>} : vector<64x128xbf16>, vector<128x128xbf16>, vector<64x128xf32> -> vector<64x128xf32>
    %c0_10 = arith.constant 0 : index
    %c0_11 = arith.constant 0 : index
    %13 = vector.load %arg5[%c0_10, %c0_11] : memref<1x128xf32, #tpu.memory_space<vmem>>, vector<1x128xf32>
    %14 = vector.broadcast %13 : vector<1x128xf32> to vector<64x128xf32>
    %15 = arith.addf %12, %14 : vector<64x128xf32>
    %cst_12 = arith.constant 0.000000e+00 : f32
    %cst_13 = arith.constant 2.000000e+01 : f32
    %16 = vector.broadcast %cst_12 : f32 to vector<64x128xf32>
    %17 = arith.maximumf %16, %15 : vector<64x128xf32>
    %18 = vector.broadcast %cst_13 : f32 to vector<64x128xf32>
    %19 = arith.minimumf %18, %17 : vector<64x128xf32>
    %20 = arith.truncf %19 : vector<64x128xf32> to vector<64x128xbf16>
    %c0_14 = arith.constant 0 : index
    %c0_15 = arith.constant 0 : index
    %21 = vector.load %arg6[%c0_14, %c0_15] : memref<128x128xbf16, #tpu.memory_space<vmem>>, vector<128x128xbf16>
    %cst_16 = arith.constant dense<0.000000e+00> : vector<64x128xf32>
    %22 = tpu.matmul %20, %21, %cst_16 {dimension_numbers = #tpu.dot_dimension_numbers<[1], [0], [0], [1], [0, 0, 1, 1], [], []>} : vector<64x128xbf16>, vector<128x128xbf16>, vector<64x128xf32> -> vector<64x128xf32>
    %c0_17 = arith.constant 0 : index
    %c0_18 = arith.constant 0 : index
    %23 = vector.load %arg7[%c0_17, %c0_18] : memref<1x128xf32, #tpu.memory_space<vmem>>, vector<1x128xf32>
    %24 = vector.broadcast %23 : vector<1x128xf32> to vector<64x128xf32>
    %25 = arith.addf %22, %24 : vector<64x128xf32>
    %cst_19 = arith.constant 0.000000e+00 : f32
    %cst_20 = arith.constant 2.000000e+01 : f32
    %26 = vector.broadcast %cst_19 : f32 to vector<64x128xf32>
    %27 = arith.maximumf %26, %25 : vector<64x128xf32>
    %28 = vector.broadcast %cst_20 : f32 to vector<64x128xf32>
    %29 = arith.minimumf %28, %27 : vector<64x128xf32>
    %30 = arith.truncf %29 : vector<64x128xf32> to vector<64x128xbf16>
    %c0_21 = arith.constant 0 : index
    %c0_22 = arith.constant 0 : index
    %31 = vector.load %arg8[%c0_21, %c0_22] : memref<128x512xbf16, #tpu.memory_space<vmem>>, vector<128x512xbf16>
    %cst_23 = arith.constant dense<0.000000e+00> : vector<64x512xf32>
    %32 = tpu.matmul %30, %31, %cst_23 {dimension_numbers = #tpu.dot_dimension_numbers<[1], [0], [0], [1], [0, 0, 1, 1], [], []>} : vector<64x128xbf16>, vector<128x512xbf16>, vector<64x512xf32> -> vector<64x512xf32>
    %c0_24 = arith.constant 0 : index
    %c0_25 = arith.constant 0 : index
    %33 = vector.load %arg9[%c0_24, %c0_25] : memref<1x512xf32, #tpu.memory_space<vmem>>, vector<1x512xf32>
    %34 = vector.broadcast %33 : vector<1x512xf32> to vector<64x512xf32>
    %35 = arith.addf %32, %34 : vector<64x512xf32>
    %c0_26 = arith.constant 0 : index
    %c0_27 = arith.constant 0 : index
    %36 = vector.load %arg10[%c0_26, %c0_27] : memref<64x512xf32, #tpu.memory_space<vmem>>, vector<64x512xf32>
    tpu.vector_store %arg10[%c0_26, %c0_27], %35 {strides = array<i32>} : memref<64x512xf32, #tpu.memory_space<vmem>>, vector<64x512xf32>,
    return
  }
  func.func @transform_0(%arg0: i32) -> (i32, i32) {
    %c0_i32 = arith.constant 0 : i32
    %c0_i32_0 = arith.constant 0 : i32
    return %arg0, %c0_i32 : i32, i32
  }
  func.func @transform_1(%arg0: i32) -> (i32, i32) {
    %c0_i32 = arith.constant 0 : i32
    %c0_i32_0 = arith.constant 0 : i32
    %c0_i32_1 = arith.constant 0 : i32
    return %c0_i32, %c0_i32_0 : i32, i32
  }
  func.func @transform_2(%arg0: i32) -> (i32, i32) {
    %c0_i32 = arith.constant 0 : i32
    %c0_i32_0 = arith.constant 0 : i32
    %c0_i32_1 = arith.constant 0 : i32
    return %c0_i32, %c0_i32_0 : i32, i32
  }
  func.func @transform_3(%arg0: i32) -> (i32, i32) {
    %c0_i32 = arith.constant 0 : i32
    %c0_i32_0 = arith.constant 0 : i32
    %c0_i32_1 = arith.constant 0 : i32
    return %c0_i32, %c0_i32_0 : i32, i32
  }
  func.func @transform_4(%arg0: i32) -> (i32, i32) {
    %c0_i32 = arith.constant 0 : i32
    %c0_i32_0 = arith.constant 0 : i32
    %c0_i32_1 = arith.constant 0 : i32
    return %c0_i32, %c0_i32_0 : i32, i32
  }
  func.func @transform_5(%arg0: i32) -> (i32, i32) {
    %c0_i32 = arith.constant 0 : i32
    %c0_i32_0 = arith.constant 0 : i32
    %c0_i32_1 = arith.constant 0 : i32
    return %c0_i32, %c0_i32_0 : i32, i32
  }
  func.func @transform_6(%arg0: i32) -> (i32, i32) {
    %c0_i32 = arith.constant 0 : i32
    %c0_i32_0 = arith.constant 0 : i32
    %c0_i32_1 = arith.constant 0 : i32
    return %c0_i32, %c0_i32_0 : i32, i32
  }
  func.func @transform_7(%arg0: i32) -> (i32, i32) {
    %c0_i32 = arith.constant 0 : i32
    %c0_i32_0 = arith.constant 0 : i32
    %c0_i32_1 = arith.constant 0 : i32
    return %c0_i32, %c0_i32_0 : i32, i32
  }
  func.func @transform_8(%arg0: i32) -> (i32, i32) {
    %c0_i32 = arith.constant 0 : i32
    %c0_i32_0 = arith.constant 0 : i32
    %c0_i32_1 = arith.constant 0 : i32
    return %c0_i32, %c0_i32_0 : i32, i32
  }
  func.func @transform_9(%arg0: i32) -> (i32, i32) {
    %c0_i32 = arith.constant 0 : i32
    %c0_i32_0 = arith.constant 0 : i32
    return %arg0, %c0_i32 : i32, i32
  }
}

module attributes {stable_mosaic.version = 11 : i64} {
  func.func @_lstm_chunk_kernel(%arg0: i32, %arg1: memref<8x8x512xf32, #tpu.memory_space<vmem>>, %arg2: memref<128x512xbf16, #tpu.memory_space<vmem>>, %arg3: memref<8x128xf32, #tpu.memory_space<vmem>>, %arg4: memref<8x128xf32, #tpu.memory_space<vmem>>, %arg5: memref<8x8x128xbf16, #tpu.memory_space<vmem>>, %arg6: memref<8x128xf32, #tpu.memory_space<vmem>>, %arg7: memref<8x128xf32, #tpu.memory_space<vmem>>, %arg8: memref<8x128xf32, #tpu.memory_space<vmem>>, %arg9: memref<8x128xf32, #tpu.memory_space<vmem>>) attributes {dimension_semantics = [#tpu.dimension_semantics<arbitrary>], iteration_bounds = array<i64: 1>, scalar_prefetch = 0 : i64, scratch_operands = 2 : i64, tpu.core_type = #tpu.core_type<tc>, window_params = [{transform_indices = @transform_0, window_bounds = array<i64: 8, 8, 512>}, {pipeline_mode = #tpu.pipeline_mode<synchronous>, transform_indices = @transform_1, window_bounds = array<i64: 128, 512>}, {pipeline_mode = #tpu.pipeline_mode<synchronous>, transform_indices = @transform_2, window_bounds = array<i64: 8, 128>}, {pipeline_mode = #tpu.pipeline_mode<synchronous>, transform_indices = @transform_3, window_bounds = array<i64: 8, 128>}, {transform_indices = @transform_4, window_bounds = array<i64: 8, 8, 128>}, {pipeline_mode = #tpu.pipeline_mode<synchronous>, transform_indices = @transform_5, window_bounds = array<i64: 8, 128>}, {pipeline_mode = #tpu.pipeline_mode<synchronous>, transform_indices = @transform_6, window_bounds = array<i64: 8, 128>}]} {
    %c0_i32 = arith.constant 0 : i32
    %0 = arith.cmpi eq, %arg0, %c0_i32 : i32
    %1 = arith.extui %0 : i1 to i32
    %c0_i32_0 = arith.constant 0 : i32
    %2 = arith.cmpi ne, %1, %c0_i32_0 : i32
    scf.if %2 {
      %c0_132 = arith.constant 0 : index
      %c0_133 = arith.constant 0 : index
      %327 = vector.load %arg3[%c0_132, %c0_133] : memref<8x128xf32, #tpu.memory_space<vmem>>, vector<8x128xf32>
      %c0_134 = arith.constant 0 : index
      %c0_135 = arith.constant 0 : index
      %328 = vector.load %arg8[%c0_134, %c0_135] : memref<8x128xf32, #tpu.memory_space<vmem>>, vector<8x128xf32>
      tpu.vector_store %arg8[%c0_134, %c0_135], %327 {strides = array<i32>} : memref<8x128xf32, #tpu.memory_space<vmem>>, vector<8x128xf32>,
      %c0_136 = arith.constant 0 : index
      %c0_137 = arith.constant 0 : index
      %329 = vector.load %arg4[%c0_136, %c0_137] : memref<8x128xf32, #tpu.memory_space<vmem>>, vector<8x128xf32>
      %c0_138 = arith.constant 0 : index
      %c0_139 = arith.constant 0 : index
      %330 = vector.load %arg9[%c0_138, %c0_139] : memref<8x128xf32, #tpu.memory_space<vmem>>, vector<8x128xf32>
      tpu.vector_store %arg9[%c0_138, %c0_139], %329 {strides = array<i32>} : memref<8x128xf32, #tpu.memory_space<vmem>>, vector<8x128xf32>,
    } else {
    }
    %c0 = arith.constant 0 : index
    %c0_1 = arith.constant 0 : index
    %3 = vector.load %arg2[%c0, %c0_1] : memref<128x512xbf16, #tpu.memory_space<vmem>>, vector<128x512xbf16>
    %c0_i32_2 = arith.constant 0 : i32
    %c0_3 = arith.constant 0 : index
    %c0_4 = arith.constant 0 : index
    %4 = vector.load %arg8[%c0_3, %c0_4] : memref<8x128xf32, #tpu.memory_space<vmem>>, vector<8x128xf32>
    %c0_5 = arith.constant 0 : index
    %c0_6 = arith.constant 0 : index
    %5 = vector.load %arg9[%c0_5, %c0_6] : memref<8x128xf32, #tpu.memory_space<vmem>>, vector<8x128xf32>
    %6 = arith.index_cast %c0_i32_2 : i32 to index
    %c0_7 = arith.constant 0 : index
    %c0_8 = arith.constant 0 : index
    %7 = vector.load %arg1[%6, %c0_7, %c0_8] : memref<8x8x512xf32, #tpu.memory_space<vmem>>, vector<1x8x512xf32>
    %8 = vector.shape_cast %7 : vector<1x8x512xf32> to vector<8x512xf32>
    %9 = arith.truncf %4 : vector<8x128xf32> to vector<8x128xbf16>
    %cst = arith.constant dense<0.000000e+00> : vector<8x512xf32>
    %10 = tpu.matmul %9, %3, %cst {dimension_numbers = #tpu.dot_dimension_numbers<[1], [0], [0], [1], [0, 0, 1, 1], [], []>} : vector<8x128xbf16>, vector<128x512xbf16>, vector<8x512xf32> -> vector<8x512xf32>
    %11 = arith.addf %8, %10 : vector<8x512xf32>
    %12 = vector.extract_strided_slice %11 {offsets = [0, 0], sizes = [8, 128], strides = [1, 1]} : vector<8x512xf32> to vector<8x128xf32>
    %13 = arith.negf %12 : vector<8x128xf32>
    %14 = math.exp %13 : vector<8x128xf32>
    %cst_9 = arith.constant 1.000000e+00 : f32
    %15 = vector.broadcast %cst_9 : f32 to vector<8x128xf32>
    %16 = arith.addf %15, %14 : vector<8x128xf32>
    %17 = arith.divf %15, %16 : vector<8x128xf32>
    %18 = vector.extract_strided_slice %11 {offsets = [0, 128], sizes = [8, 128], strides = [1, 1]} : vector<8x512xf32> to vector<8x128xf32>
    %19 = arith.negf %18 : vector<8x128xf32>
    %20 = math.exp %19 : vector<8x128xf32>
    %cst_10 = arith.constant 1.000000e+00 : f32
    %21 = vector.broadcast %cst_10 : f32 to vector<8x128xf32>
    %22 = arith.addf %21, %20 : vector<8x128xf32>
    %23 = arith.divf %21, %22 : vector<8x128xf32>
    %24 = vector.extract_strided_slice %11 {offsets = [0, 256], sizes = [8, 128], strides = [1, 1]} : vector<8x512xf32> to vector<8x128xf32>
    %25 = math.tanh %24 : vector<8x128xf32>
    %26 = vector.extract_strided_slice %11 {offsets = [0, 384], sizes = [8, 128], strides = [1, 1]} : vector<8x512xf32> to vector<8x128xf32>
    %27 = arith.negf %26 : vector<8x128xf32>
    %28 = math.exp %27 : vector<8x128xf32>
    %cst_11 = arith.constant 1.000000e+00 : f32
    %29 = vector.broadcast %cst_11 : f32 to vector<8x128xf32>
    %30 = arith.addf %29, %28 : vector<8x128xf32>
    %31 = arith.divf %29, %30 : vector<8x128xf32>
    %32 = arith.mulf %23, %5 : vector<8x128xf32>
    %33 = arith.mulf %17, %25 : vector<8x128xf32>
    %34 = arith.addf %32, %33 : vector<8x128xf32>
    %35 = math.tanh %34 : vector<8x128xf32>
    %36 = arith.mulf %31, %35 : vector<8x128xf32>
    %c0_12 = arith.constant 0 : index
    %c0_13 = arith.constant 0 : index
    %37 = vector.load %arg8[%c0_12, %c0_13] : memref<8x128xf32, #tpu.memory_space<vmem>>, vector<8x128xf32>
    tpu.vector_store %arg8[%c0_12, %c0_13], %36 {strides = array<i32>} : memref<8x128xf32, #tpu.memory_space<vmem>>, vector<8x128xf32>,
    %c0_14 = arith.constant 0 : index
    %c0_15 = arith.constant 0 : index
    %38 = vector.load %arg9[%c0_14, %c0_15] : memref<8x128xf32, #tpu.memory_space<vmem>>, vector<8x128xf32>
    tpu.vector_store %arg9[%c0_14, %c0_15], %34 {strides = array<i32>} : memref<8x128xf32, #tpu.memory_space<vmem>>, vector<8x128xf32>,
    %39 = arith.truncf %36 : vector<8x128xf32> to vector<8x128xbf16>
    %40 = arith.index_cast %c0_i32_2 : i32 to index
    %c0_16 = arith.constant 0 : index
    %c0_17 = arith.constant 0 : index
    %41 = vector.load %arg5[%40, %c0_16, %c0_17] : memref<8x8x128xbf16, #tpu.memory_space<vmem>>, vector<1x8x128xbf16>
    %42 = vector.shape_cast %41 : vector<1x8x128xbf16> to vector<8x128xbf16>
    %43 = vector.shape_cast %39 : vector<8x128xbf16> to vector<1x8x128xbf16>
    tpu.vector_store %arg5[%40, %c0_16, %c0_17], %43 {strides = array<i32>} : memref<8x8x128xbf16, #tpu.memory_space<vmem>>, vector<1x8x128xbf16>,
    %c1_i32 = arith.constant 1 : i32
    %c0_18 = arith.constant 0 : index
    %c0_19 = arith.constant 0 : index
    %44 = vector.load %arg8[%c0_18, %c0_19] : memref<8x128xf32, #tpu.memory_space<vmem>>, vector<8x128xf32>
    %c0_20 = arith.constant 0 : index
    %c0_21 = arith.constant 0 : index
    %45 = vector.load %arg9[%c0_20, %c0_21] : memref<8x128xf32, #tpu.memory_space<vmem>>, vector<8x128xf32>
    %46 = arith.index_cast %c1_i32 : i32 to index
    %c0_22 = arith.constant 0 : index
    %c0_23 = arith.constant 0 : index
    %47 = vector.load %arg1[%46, %c0_22, %c0_23] : memref<8x8x512xf32, #tpu.memory_space<vmem>>, vector<1x8x512xf32>
    %48 = vector.shape_cast %47 : vector<1x8x512xf32> to vector<8x512xf32>
    %49 = arith.truncf %44 : vector<8x128xf32> to vector<8x128xbf16>
    %cst_24 = arith.constant dense<0.000000e+00> : vector<8x512xf32>
    %50 = tpu.matmul %49, %3, %cst_24 {dimension_numbers = #tpu.dot_dimension_numbers<[1], [0], [0], [1], [0, 0, 1, 1], [], []>} : vector<8x128xbf16>, vector<128x512xbf16>, vector<8x512xf32> -> vector<8x512xf32>
    %51 = arith.addf %48, %50 : vector<8x512xf32>
    %52 = vector.extract_strided_slice %51 {offsets = [0, 0], sizes = [8, 128], strides = [1, 1]} : vector<8x512xf32> to vector<8x128xf32>
    %53 = arith.negf %52 : vector<8x128xf32>
    %54 = math.exp %53 : vector<8x128xf32>
    %cst_25 = arith.constant 1.000000e+00 : f32
    %55 = vector.broadcast %cst_25 : f32 to vector<8x128xf32>
    %56 = arith.addf %55, %54 : vector<8x128xf32>
    %57 = arith.divf %55, %56 : vector<8x128xf32>
    %58 = vector.extract_strided_slice %51 {offsets = [0, 128], sizes = [8, 128], strides = [1, 1]} : vector<8x512xf32> to vector<8x128xf32>
    %59 = arith.negf %58 : vector<8x128xf32>
    %60 = math.exp %59 : vector<8x128xf32>
    %cst_26 = arith.constant 1.000000e+00 : f32
    %61 = vector.broadcast %cst_26 : f32 to vector<8x128xf32>
    %62 = arith.addf %61, %60 : vector<8x128xf32>
    %63 = arith.divf %61, %62 : vector<8x128xf32>
    %64 = vector.extract_strided_slice %51 {offsets = [0, 256], sizes = [8, 128], strides = [1, 1]} : vector<8x512xf32> to vector<8x128xf32>
    %65 = math.tanh %64 : vector<8x128xf32>
    %66 = vector.extract_strided_slice %51 {offsets = [0, 384], sizes = [8, 128], strides = [1, 1]} : vector<8x512xf32> to vector<8x128xf32>
    %67 = arith.negf %66 : vector<8x128xf32>
    %68 = math.exp %67 : vector<8x128xf32>
    %cst_27 = arith.constant 1.000000e+00 : f32
    %69 = vector.broadcast %cst_27 : f32 to vector<8x128xf32>
    %70 = arith.addf %69, %68 : vector<8x128xf32>
    %71 = arith.divf %69, %70 : vector<8x128xf32>
    %72 = arith.mulf %63, %45 : vector<8x128xf32>
    %73 = arith.mulf %57, %65 : vector<8x128xf32>
    %74 = arith.addf %72, %73 : vector<8x128xf32>
    %75 = math.tanh %74 : vector<8x128xf32>
    %76 = arith.mulf %71, %75 : vector<8x128xf32>
    %c0_28 = arith.constant 0 : index
    %c0_29 = arith.constant 0 : index
    %77 = vector.load %arg8[%c0_28, %c0_29] : memref<8x128xf32, #tpu.memory_space<vmem>>, vector<8x128xf32>
    tpu.vector_store %arg8[%c0_28, %c0_29], %76 {strides = array<i32>} : memref<8x128xf32, #tpu.memory_space<vmem>>, vector<8x128xf32>,
    %c0_30 = arith.constant 0 : index
    %c0_31 = arith.constant 0 : index
    %78 = vector.load %arg9[%c0_30, %c0_31] : memref<8x128xf32, #tpu.memory_space<vmem>>, vector<8x128xf32>
    tpu.vector_store %arg9[%c0_30, %c0_31], %74 {strides = array<i32>} : memref<8x128xf32, #tpu.memory_space<vmem>>, vector<8x128xf32>,
    %79 = arith.truncf %76 : vector<8x128xf32> to vector<8x128xbf16>
    %80 = arith.index_cast %c1_i32 : i32 to index
    %c0_32 = arith.constant 0 : index
    %c0_33 = arith.constant 0 : index
    %81 = vector.load %arg5[%80, %c0_32, %c0_33] : memref<8x8x128xbf16, #tpu.memory_space<vmem>>, vector<1x8x128xbf16>
    %82 = vector.shape_cast %81 : vector<1x8x128xbf16> to vector<8x128xbf16>
    %83 = vector.shape_cast %79 : vector<8x128xbf16> to vector<1x8x128xbf16>
    tpu.vector_store %arg5[%80, %c0_32, %c0_33], %83 {strides = array<i32>} : memref<8x8x128xbf16, #tpu.memory_space<vmem>>, vector<1x8x128xbf16>,
    %c2_i32 = arith.constant 2 : i32
    %c0_34 = arith.constant 0 : index
    %c0_35 = arith.constant 0 : index
    %84 = vector.load %arg8[%c0_34, %c0_35] : memref<8x128xf32, #tpu.memory_space<vmem>>, vector<8x128xf32>
    %c0_36 = arith.constant 0 : index
    %c0_37 = arith.constant 0 : index
    %85 = vector.load %arg9[%c0_36, %c0_37] : memref<8x128xf32, #tpu.memory_space<vmem>>, vector<8x128xf32>
    %86 = arith.index_cast %c2_i32 : i32 to index
    %c0_38 = arith.constant 0 : index
    %c0_39 = arith.constant 0 : index
    %87 = vector.load %arg1[%86, %c0_38, %c0_39] : memref<8x8x512xf32, #tpu.memory_space<vmem>>, vector<1x8x512xf32>
    %88 = vector.shape_cast %87 : vector<1x8x512xf32> to vector<8x512xf32>
    %89 = arith.truncf %84 : vector<8x128xf32> to vector<8x128xbf16>
    %cst_40 = arith.constant dense<0.000000e+00> : vector<8x512xf32>
    %90 = tpu.matmul %89, %3, %cst_40 {dimension_numbers = #tpu.dot_dimension_numbers<[1], [0], [0], [1], [0, 0, 1, 1], [], []>} : vector<8x128xbf16>, vector<128x512xbf16>, vector<8x512xf32> -> vector<8x512xf32>
    %91 = arith.addf %88, %90 : vector<8x512xf32>
    %92 = vector.extract_strided_slice %91 {offsets = [0, 0], sizes = [8, 128], strides = [1, 1]} : vector<8x512xf32> to vector<8x128xf32>
    %93 = arith.negf %92 : vector<8x128xf32>
    %94 = math.exp %93 : vector<8x128xf32>
    %cst_41 = arith.constant 1.000000e+00 : f32
    %95 = vector.broadcast %cst_41 : f32 to vector<8x128xf32>
    %96 = arith.addf %95, %94 : vector<8x128xf32>
    %97 = arith.divf %95, %96 : vector<8x128xf32>
    %98 = vector.extract_strided_slice %91 {offsets = [0, 128], sizes = [8, 128], strides = [1, 1]} : vector<8x512xf32> to vector<8x128xf32>
    %99 = arith.negf %98 : vector<8x128xf32>
    %100 = math.exp %99 : vector<8x128xf32>
    %cst_42 = arith.constant 1.000000e+00 : f32
    %101 = vector.broadcast %cst_42 : f32 to vector<8x128xf32>
    %102 = arith.addf %101, %100 : vector<8x128xf32>
    %103 = arith.divf %101, %102 : vector<8x128xf32>
    %104 = vector.extract_strided_slice %91 {offsets = [0, 256], sizes = [8, 128], strides = [1, 1]} : vector<8x512xf32> to vector<8x128xf32>
    %105 = math.tanh %104 : vector<8x128xf32>
    %106 = vector.extract_strided_slice %91 {offsets = [0, 384], sizes = [8, 128], strides = [1, 1]} : vector<8x512xf32> to vector<8x128xf32>
    %107 = arith.negf %106 : vector<8x128xf32>
    %108 = math.exp %107 : vector<8x128xf32>
    %cst_43 = arith.constant 1.000000e+00 : f32
    %109 = vector.broadcast %cst_43 : f32 to vector<8x128xf32>
    %110 = arith.addf %109, %108 : vector<8x128xf32>
    %111 = arith.divf %109, %110 : vector<8x128xf32>
    %112 = arith.mulf %103, %85 : vector<8x128xf32>
    %113 = arith.mulf %97, %105 : vector<8x128xf32>
    %114 = arith.addf %112, %113 : vector<8x128xf32>
    %115 = math.tanh %114 : vector<8x128xf32>
    %116 = arith.mulf %111, %115 : vector<8x128xf32>
    %c0_44 = arith.constant 0 : index
    %c0_45 = arith.constant 0 : index
    %117 = vector.load %arg8[%c0_44, %c0_45] : memref<8x128xf32, #tpu.memory_space<vmem>>, vector<8x128xf32>
    tpu.vector_store %arg8[%c0_44, %c0_45], %116 {strides = array<i32>} : memref<8x128xf32, #tpu.memory_space<vmem>>, vector<8x128xf32>,
    %c0_46 = arith.constant 0 : index
    %c0_47 = arith.constant 0 : index
    %118 = vector.load %arg9[%c0_46, %c0_47] : memref<8x128xf32, #tpu.memory_space<vmem>>, vector<8x128xf32>
    tpu.vector_store %arg9[%c0_46, %c0_47], %114 {strides = array<i32>} : memref<8x128xf32, #tpu.memory_space<vmem>>, vector<8x128xf32>,
    %119 = arith.truncf %116 : vector<8x128xf32> to vector<8x128xbf16>
    %120 = arith.index_cast %c2_i32 : i32 to index
    %c0_48 = arith.constant 0 : index
    %c0_49 = arith.constant 0 : index
    %121 = vector.load %arg5[%120, %c0_48, %c0_49] : memref<8x8x128xbf16, #tpu.memory_space<vmem>>, vector<1x8x128xbf16>
    %122 = vector.shape_cast %121 : vector<1x8x128xbf16> to vector<8x128xbf16>
    %123 = vector.shape_cast %119 : vector<8x128xbf16> to vector<1x8x128xbf16>
    tpu.vector_store %arg5[%120, %c0_48, %c0_49], %123 {strides = array<i32>} : memref<8x8x128xbf16, #tpu.memory_space<vmem>>, vector<1x8x128xbf16>,
    %c3_i32 = arith.constant 3 : i32
    %c0_50 = arith.constant 0 : index
    %c0_51 = arith.constant 0 : index
    %124 = vector.load %arg8[%c0_50, %c0_51] : memref<8x128xf32, #tpu.memory_space<vmem>>, vector<8x128xf32>
    %c0_52 = arith.constant 0 : index
    %c0_53 = arith.constant 0 : index
    %125 = vector.load %arg9[%c0_52, %c0_53] : memref<8x128xf32, #tpu.memory_space<vmem>>, vector<8x128xf32>
    %126 = arith.index_cast %c3_i32 : i32 to index
    %c0_54 = arith.constant 0 : index
    %c0_55 = arith.constant 0 : index
    %127 = vector.load %arg1[%126, %c0_54, %c0_55] : memref<8x8x512xf32, #tpu.memory_space<vmem>>, vector<1x8x512xf32>
    %128 = vector.shape_cast %127 : vector<1x8x512xf32> to vector<8x512xf32>
    %129 = arith.truncf %124 : vector<8x128xf32> to vector<8x128xbf16>
    %cst_56 = arith.constant dense<0.000000e+00> : vector<8x512xf32>
    %130 = tpu.matmul %129, %3, %cst_56 {dimension_numbers = #tpu.dot_dimension_numbers<[1], [0], [0], [1], [0, 0, 1, 1], [], []>} : vector<8x128xbf16>, vector<128x512xbf16>, vector<8x512xf32> -> vector<8x512xf32>
    %131 = arith.addf %128, %130 : vector<8x512xf32>
    %132 = vector.extract_strided_slice %131 {offsets = [0, 0], sizes = [8, 128], strides = [1, 1]} : vector<8x512xf32> to vector<8x128xf32>
    %133 = arith.negf %132 : vector<8x128xf32>
    %134 = math.exp %133 : vector<8x128xf32>
    %cst_57 = arith.constant 1.000000e+00 : f32
    %135 = vector.broadcast %cst_57 : f32 to vector<8x128xf32>
    %136 = arith.addf %135, %134 : vector<8x128xf32>
    %137 = arith.divf %135, %136 : vector<8x128xf32>
    %138 = vector.extract_strided_slice %131 {offsets = [0, 128], sizes = [8, 128], strides = [1, 1]} : vector<8x512xf32> to vector<8x128xf32>
    %139 = arith.negf %138 : vector<8x128xf32>
    %140 = math.exp %139 : vector<8x128xf32>
    %cst_58 = arith.constant 1.000000e+00 : f32
    %141 = vector.broadcast %cst_58 : f32 to vector<8x128xf32>
    %142 = arith.addf %141, %140 : vector<8x128xf32>
    %143 = arith.divf %141, %142 : vector<8x128xf32>
    %144 = vector.extract_strided_slice %131 {offsets = [0, 256], sizes = [8, 128], strides = [1, 1]} : vector<8x512xf32> to vector<8x128xf32>
    %145 = math.tanh %144 : vector<8x128xf32>
    %146 = vector.extract_strided_slice %131 {offsets = [0, 384], sizes = [8, 128], strides = [1, 1]} : vector<8x512xf32> to vector<8x128xf32>
    %147 = arith.negf %146 : vector<8x128xf32>
    %148 = math.exp %147 : vector<8x128xf32>
    %cst_59 = arith.constant 1.000000e+00 : f32
    %149 = vector.broadcast %cst_59 : f32 to vector<8x128xf32>
    %150 = arith.addf %149, %148 : vector<8x128xf32>
    %151 = arith.divf %149, %150 : vector<8x128xf32>
    %152 = arith.mulf %143, %125 : vector<8x128xf32>
    %153 = arith.mulf %137, %145 : vector<8x128xf32>
    %154 = arith.addf %152, %153 : vector<8x128xf32>
    %155 = math.tanh %154 : vector<8x128xf32>
    %156 = arith.mulf %151, %155 : vector<8x128xf32>
    %c0_60 = arith.constant 0 : index
    %c0_61 = arith.constant 0 : index
    %157 = vector.load %arg8[%c0_60, %c0_61] : memref<8x128xf32, #tpu.memory_space<vmem>>, vector<8x128xf32>
    tpu.vector_store %arg8[%c0_60, %c0_61], %156 {strides = array<i32>} : memref<8x128xf32, #tpu.memory_space<vmem>>, vector<8x128xf32>,
    %c0_62 = arith.constant 0 : index
    %c0_63 = arith.constant 0 : index
    %158 = vector.load %arg9[%c0_62, %c0_63] : memref<8x128xf32, #tpu.memory_space<vmem>>, vector<8x128xf32>
    tpu.vector_store %arg9[%c0_62, %c0_63], %154 {strides = array<i32>} : memref<8x128xf32, #tpu.memory_space<vmem>>, vector<8x128xf32>,
    %159 = arith.truncf %156 : vector<8x128xf32> to vector<8x128xbf16>
    %160 = arith.index_cast %c3_i32 : i32 to index
    %c0_64 = arith.constant 0 : index
    %c0_65 = arith.constant 0 : index
    %161 = vector.load %arg5[%160, %c0_64, %c0_65] : memref<8x8x128xbf16, #tpu.memory_space<vmem>>, vector<1x8x128xbf16>
    %162 = vector.shape_cast %161 : vector<1x8x128xbf16> to vector<8x128xbf16>
    %163 = vector.shape_cast %159 : vector<8x128xbf16> to vector<1x8x128xbf16>
    tpu.vector_store %arg5[%160, %c0_64, %c0_65], %163 {strides = array<i32>} : memref<8x8x128xbf16, #tpu.memory_space<vmem>>, vector<1x8x128xbf16>,
    %c4_i32 = arith.constant 4 : i32
    %c0_66 = arith.constant 0 : index
    %c0_67 = arith.constant 0 : index
    %164 = vector.load %arg8[%c0_66, %c0_67] : memref<8x128xf32, #tpu.memory_space<vmem>>, vector<8x128xf32>
    %c0_68 = arith.constant 0 : index
    %c0_69 = arith.constant 0 : index
    %165 = vector.load %arg9[%c0_68, %c0_69] : memref<8x128xf32, #tpu.memory_space<vmem>>, vector<8x128xf32>
    %166 = arith.index_cast %c4_i32 : i32 to index
    %c0_70 = arith.constant 0 : index
    %c0_71 = arith.constant 0 : index
    %167 = vector.load %arg1[%166, %c0_70, %c0_71] : memref<8x8x512xf32, #tpu.memory_space<vmem>>, vector<1x8x512xf32>
    %168 = vector.shape_cast %167 : vector<1x8x512xf32> to vector<8x512xf32>
    %169 = arith.truncf %164 : vector<8x128xf32> to vector<8x128xbf16>
    %cst_72 = arith.constant dense<0.000000e+00> : vector<8x512xf32>
    %170 = tpu.matmul %169, %3, %cst_72 {dimension_numbers = #tpu.dot_dimension_numbers<[1], [0], [0], [1], [0, 0, 1, 1], [], []>} : vector<8x128xbf16>, vector<128x512xbf16>, vector<8x512xf32> -> vector<8x512xf32>
    %171 = arith.addf %168, %170 : vector<8x512xf32>
    %172 = vector.extract_strided_slice %171 {offsets = [0, 0], sizes = [8, 128], strides = [1, 1]} : vector<8x512xf32> to vector<8x128xf32>
    %173 = arith.negf %172 : vector<8x128xf32>
    %174 = math.exp %173 : vector<8x128xf32>
    %cst_73 = arith.constant 1.000000e+00 : f32
    %175 = vector.broadcast %cst_73 : f32 to vector<8x128xf32>
    %176 = arith.addf %175, %174 : vector<8x128xf32>
    %177 = arith.divf %175, %176 : vector<8x128xf32>
    %178 = vector.extract_strided_slice %171 {offsets = [0, 128], sizes = [8, 128], strides = [1, 1]} : vector<8x512xf32> to vector<8x128xf32>
    %179 = arith.negf %178 : vector<8x128xf32>
    %180 = math.exp %179 : vector<8x128xf32>
    %cst_74 = arith.constant 1.000000e+00 : f32
    %181 = vector.broadcast %cst_74 : f32 to vector<8x128xf32>
    %182 = arith.addf %181, %180 : vector<8x128xf32>
    %183 = arith.divf %181, %182 : vector<8x128xf32>
    %184 = vector.extract_strided_slice %171 {offsets = [0, 256], sizes = [8, 128], strides = [1, 1]} : vector<8x512xf32> to vector<8x128xf32>
    %185 = math.tanh %184 : vector<8x128xf32>
    %186 = vector.extract_strided_slice %171 {offsets = [0, 384], sizes = [8, 128], strides = [1, 1]} : vector<8x512xf32> to vector<8x128xf32>
    %187 = arith.negf %186 : vector<8x128xf32>
    %188 = math.exp %187 : vector<8x128xf32>
    %cst_75 = arith.constant 1.000000e+00 : f32
    %189 = vector.broadcast %cst_75 : f32 to vector<8x128xf32>
    %190 = arith.addf %189, %188 : vector<8x128xf32>
    %191 = arith.divf %189, %190 : vector<8x128xf32>
    %192 = arith.mulf %183, %165 : vector<8x128xf32>
    %193 = arith.mulf %177, %185 : vector<8x128xf32>
    %194 = arith.addf %192, %193 : vector<8x128xf32>
    %195 = math.tanh %194 : vector<8x128xf32>
    %196 = arith.mulf %191, %195 : vector<8x128xf32>
    %c0_76 = arith.constant 0 : index
    %c0_77 = arith.constant 0 : index
    %197 = vector.load %arg8[%c0_76, %c0_77] : memref<8x128xf32, #tpu.memory_space<vmem>>, vector<8x128xf32>
    tpu.vector_store %arg8[%c0_76, %c0_77], %196 {strides = array<i32>} : memref<8x128xf32, #tpu.memory_space<vmem>>, vector<8x128xf32>,
    %c0_78 = arith.constant 0 : index
    %c0_79 = arith.constant 0 : index
    %198 = vector.load %arg9[%c0_78, %c0_79] : memref<8x128xf32, #tpu.memory_space<vmem>>, vector<8x128xf32>
    tpu.vector_store %arg9[%c0_78, %c0_79], %194 {strides = array<i32>} : memref<8x128xf32, #tpu.memory_space<vmem>>, vector<8x128xf32>,
    %199 = arith.truncf %196 : vector<8x128xf32> to vector<8x128xbf16>
    %200 = arith.index_cast %c4_i32 : i32 to index
    %c0_80 = arith.constant 0 : index
    %c0_81 = arith.constant 0 : index
    %201 = vector.load %arg5[%200, %c0_80, %c0_81] : memref<8x8x128xbf16, #tpu.memory_space<vmem>>, vector<1x8x128xbf16>
    %202 = vector.shape_cast %201 : vector<1x8x128xbf16> to vector<8x128xbf16>
    %203 = vector.shape_cast %199 : vector<8x128xbf16> to vector<1x8x128xbf16>
    tpu.vector_store %arg5[%200, %c0_80, %c0_81], %203 {strides = array<i32>} : memref<8x8x128xbf16, #tpu.memory_space<vmem>>, vector<1x8x128xbf16>,
    %c5_i32 = arith.constant 5 : i32
    %c0_82 = arith.constant 0 : index
    %c0_83 = arith.constant 0 : index
    %204 = vector.load %arg8[%c0_82, %c0_83] : memref<8x128xf32, #tpu.memory_space<vmem>>, vector<8x128xf32>
    %c0_84 = arith.constant 0 : index
    %c0_85 = arith.constant 0 : index
    %205 = vector.load %arg9[%c0_84, %c0_85] : memref<8x128xf32, #tpu.memory_space<vmem>>, vector<8x128xf32>
    %206 = arith.index_cast %c5_i32 : i32 to index
    %c0_86 = arith.constant 0 : index
    %c0_87 = arith.constant 0 : index
    %207 = vector.load %arg1[%206, %c0_86, %c0_87] : memref<8x8x512xf32, #tpu.memory_space<vmem>>, vector<1x8x512xf32>
    %208 = vector.shape_cast %207 : vector<1x8x512xf32> to vector<8x512xf32>
    %209 = arith.truncf %204 : vector<8x128xf32> to vector<8x128xbf16>
    %cst_88 = arith.constant dense<0.000000e+00> : vector<8x512xf32>
    %210 = tpu.matmul %209, %3, %cst_88 {dimension_numbers = #tpu.dot_dimension_numbers<[1], [0], [0], [1], [0, 0, 1, 1], [], []>} : vector<8x128xbf16>, vector<128x512xbf16>, vector<8x512xf32> -> vector<8x512xf32>
    %211 = arith.addf %208, %210 : vector<8x512xf32>
    %212 = vector.extract_strided_slice %211 {offsets = [0, 0], sizes = [8, 128], strides = [1, 1]} : vector<8x512xf32> to vector<8x128xf32>
    %213 = arith.negf %212 : vector<8x128xf32>
    %214 = math.exp %213 : vector<8x128xf32>
    %cst_89 = arith.constant 1.000000e+00 : f32
    %215 = vector.broadcast %cst_89 : f32 to vector<8x128xf32>
    %216 = arith.addf %215, %214 : vector<8x128xf32>
    %217 = arith.divf %215, %216 : vector<8x128xf32>
    %218 = vector.extract_strided_slice %211 {offsets = [0, 128], sizes = [8, 128], strides = [1, 1]} : vector<8x512xf32> to vector<8x128xf32>
    %219 = arith.negf %218 : vector<8x128xf32>
    %220 = math.exp %219 : vector<8x128xf32>
    %cst_90 = arith.constant 1.000000e+00 : f32
    %221 = vector.broadcast %cst_90 : f32 to vector<8x128xf32>
    %222 = arith.addf %221, %220 : vector<8x128xf32>
    %223 = arith.divf %221, %222 : vector<8x128xf32>
    %224 = vector.extract_strided_slice %211 {offsets = [0, 256], sizes = [8, 128], strides = [1, 1]} : vector<8x512xf32> to vector<8x128xf32>
    %225 = math.tanh %224 : vector<8x128xf32>
    %226 = vector.extract_strided_slice %211 {offsets = [0, 384], sizes = [8, 128], strides = [1, 1]} : vector<8x512xf32> to vector<8x128xf32>
    %227 = arith.negf %226 : vector<8x128xf32>
    %228 = math.exp %227 : vector<8x128xf32>
    %cst_91 = arith.constant 1.000000e+00 : f32
    %229 = vector.broadcast %cst_91 : f32 to vector<8x128xf32>
    %230 = arith.addf %229, %228 : vector<8x128xf32>
    %231 = arith.divf %229, %230 : vector<8x128xf32>
    %232 = arith.mulf %223, %205 : vector<8x128xf32>
    %233 = arith.mulf %217, %225 : vector<8x128xf32>
    %234 = arith.addf %232, %233 : vector<8x128xf32>
    %235 = math.tanh %234 : vector<8x128xf32>
    %236 = arith.mulf %231, %235 : vector<8x128xf32>
    %c0_92 = arith.constant 0 : index
    %c0_93 = arith.constant 0 : index
    %237 = vector.load %arg8[%c0_92, %c0_93] : memref<8x128xf32, #tpu.memory_space<vmem>>, vector<8x128xf32>
    tpu.vector_store %arg8[%c0_92, %c0_93], %236 {strides = array<i32>} : memref<8x128xf32, #tpu.memory_space<vmem>>, vector<8x128xf32>,
    %c0_94 = arith.constant 0 : index
    %c0_95 = arith.constant 0 : index
    %238 = vector.load %arg9[%c0_94, %c0_95] : memref<8x128xf32, #tpu.memory_space<vmem>>, vector<8x128xf32>
    tpu.vector_store %arg9[%c0_94, %c0_95], %234 {strides = array<i32>} : memref<8x128xf32, #tpu.memory_space<vmem>>, vector<8x128xf32>,
    %239 = arith.truncf %236 : vector<8x128xf32> to vector<8x128xbf16>
    %240 = arith.index_cast %c5_i32 : i32 to index
    %c0_96 = arith.constant 0 : index
    %c0_97 = arith.constant 0 : index
    %241 = vector.load %arg5[%240, %c0_96, %c0_97] : memref<8x8x128xbf16, #tpu.memory_space<vmem>>, vector<1x8x128xbf16>
    %242 = vector.shape_cast %241 : vector<1x8x128xbf16> to vector<8x128xbf16>
    %243 = vector.shape_cast %239 : vector<8x128xbf16> to vector<1x8x128xbf16>
    tpu.vector_store %arg5[%240, %c0_96, %c0_97], %243 {strides = array<i32>} : memref<8x8x128xbf16, #tpu.memory_space<vmem>>, vector<1x8x128xbf16>,
    %c6_i32 = arith.constant 6 : i32
    %c0_98 = arith.constant 0 : index
    %c0_99 = arith.constant 0 : index
    %244 = vector.load %arg8[%c0_98, %c0_99] : memref<8x128xf32, #tpu.memory_space<vmem>>, vector<8x128xf32>
    %c0_100 = arith.constant 0 : index
    %c0_101 = arith.constant 0 : index
    %245 = vector.load %arg9[%c0_100, %c0_101] : memref<8x128xf32, #tpu.memory_space<vmem>>, vector<8x128xf32>
    %246 = arith.index_cast %c6_i32 : i32 to index
    %c0_102 = arith.constant 0 : index
    %c0_103 = arith.constant 0 : index
    %247 = vector.load %arg1[%246, %c0_102, %c0_103] : memref<8x8x512xf32, #tpu.memory_space<vmem>>, vector<1x8x512xf32>
    %248 = vector.shape_cast %247 : vector<1x8x512xf32> to vector<8x512xf32>
    %249 = arith.truncf %244 : vector<8x128xf32> to vector<8x128xbf16>
    %cst_104 = arith.constant dense<0.000000e+00> : vector<8x512xf32>
    %250 = tpu.matmul %249, %3, %cst_104 {dimension_numbers = #tpu.dot_dimension_numbers<[1], [0], [0], [1], [0, 0, 1, 1], [], []>} : vector<8x128xbf16>, vector<128x512xbf16>, vector<8x512xf32> -> vector<8x512xf32>
    %251 = arith.addf %248, %250 : vector<8x512xf32>
    %252 = vector.extract_strided_slice %251 {offsets = [0, 0], sizes = [8, 128], strides = [1, 1]} : vector<8x512xf32> to vector<8x128xf32>
    %253 = arith.negf %252 : vector<8x128xf32>
    %254 = math.exp %253 : vector<8x128xf32>
    %cst_105 = arith.constant 1.000000e+00 : f32
    %255 = vector.broadcast %cst_105 : f32 to vector<8x128xf32>
    %256 = arith.addf %255, %254 : vector<8x128xf32>
    %257 = arith.divf %255, %256 : vector<8x128xf32>
    %258 = vector.extract_strided_slice %251 {offsets = [0, 128], sizes = [8, 128], strides = [1, 1]} : vector<8x512xf32> to vector<8x128xf32>
    %259 = arith.negf %258 : vector<8x128xf32>
    %260 = math.exp %259 : vector<8x128xf32>
    %cst_106 = arith.constant 1.000000e+00 : f32
    %261 = vector.broadcast %cst_106 : f32 to vector<8x128xf32>
    %262 = arith.addf %261, %260 : vector<8x128xf32>
    %263 = arith.divf %261, %262 : vector<8x128xf32>
    %264 = vector.extract_strided_slice %251 {offsets = [0, 256], sizes = [8, 128], strides = [1, 1]} : vector<8x512xf32> to vector<8x128xf32>
    %265 = math.tanh %264 : vector<8x128xf32>
    %266 = vector.extract_strided_slice %251 {offsets = [0, 384], sizes = [8, 128], strides = [1, 1]} : vector<8x512xf32> to vector<8x128xf32>
    %267 = arith.negf %266 : vector<8x128xf32>
    %268 = math.exp %267 : vector<8x128xf32>
    %cst_107 = arith.constant 1.000000e+00 : f32
    %269 = vector.broadcast %cst_107 : f32 to vector<8x128xf32>
    %270 = arith.addf %269, %268 : vector<8x128xf32>
    %271 = arith.divf %269, %270 : vector<8x128xf32>
    %272 = arith.mulf %263, %245 : vector<8x128xf32>
    %273 = arith.mulf %257, %265 : vector<8x128xf32>
    %274 = arith.addf %272, %273 : vector<8x128xf32>
    %275 = math.tanh %274 : vector<8x128xf32>
    %276 = arith.mulf %271, %275 : vector<8x128xf32>
    %c0_108 = arith.constant 0 : index
    %c0_109 = arith.constant 0 : index
    %277 = vector.load %arg8[%c0_108, %c0_109] : memref<8x128xf32, #tpu.memory_space<vmem>>, vector<8x128xf32>
    tpu.vector_store %arg8[%c0_108, %c0_109], %276 {strides = array<i32>} : memref<8x128xf32, #tpu.memory_space<vmem>>, vector<8x128xf32>,
    %c0_110 = arith.constant 0 : index
    %c0_111 = arith.constant 0 : index
    %278 = vector.load %arg9[%c0_110, %c0_111] : memref<8x128xf32, #tpu.memory_space<vmem>>, vector<8x128xf32>
    tpu.vector_store %arg9[%c0_110, %c0_111], %274 {strides = array<i32>} : memref<8x128xf32, #tpu.memory_space<vmem>>, vector<8x128xf32>,
    %279 = arith.truncf %276 : vector<8x128xf32> to vector<8x128xbf16>
    %280 = arith.index_cast %c6_i32 : i32 to index
    %c0_112 = arith.constant 0 : index
    %c0_113 = arith.constant 0 : index
    %281 = vector.load %arg5[%280, %c0_112, %c0_113] : memref<8x8x128xbf16, #tpu.memory_space<vmem>>, vector<1x8x128xbf16>
    %282 = vector.shape_cast %281 : vector<1x8x128xbf16> to vector<8x128xbf16>
    %283 = vector.shape_cast %279 : vector<8x128xbf16> to vector<1x8x128xbf16>
    tpu.vector_store %arg5[%280, %c0_112, %c0_113], %283 {strides = array<i32>} : memref<8x8x128xbf16, #tpu.memory_space<vmem>>, vector<1x8x128xbf16>,
    %c7_i32 = arith.constant 7 : i32
    %c0_114 = arith.constant 0 : index
    %c0_115 = arith.constant 0 : index
    %284 = vector.load %arg8[%c0_114, %c0_115] : memref<8x128xf32, #tpu.memory_space<vmem>>, vector<8x128xf32>
    %c0_116 = arith.constant 0 : index
    %c0_117 = arith.constant 0 : index
    %285 = vector.load %arg9[%c0_116, %c0_117] : memref<8x128xf32, #tpu.memory_space<vmem>>, vector<8x128xf32>
    %286 = arith.index_cast %c7_i32 : i32 to index
    %c0_118 = arith.constant 0 : index
    %c0_119 = arith.constant 0 : index
    %287 = vector.load %arg1[%286, %c0_118, %c0_119] : memref<8x8x512xf32, #tpu.memory_space<vmem>>, vector<1x8x512xf32>
    %288 = vector.shape_cast %287 : vector<1x8x512xf32> to vector<8x512xf32>
    %289 = arith.truncf %284 : vector<8x128xf32> to vector<8x128xbf16>
    %cst_120 = arith.constant dense<0.000000e+00> : vector<8x512xf32>
    %290 = tpu.matmul %289, %3, %cst_120 {dimension_numbers = #tpu.dot_dimension_numbers<[1], [0], [0], [1], [0, 0, 1, 1], [], []>} : vector<8x128xbf16>, vector<128x512xbf16>, vector<8x512xf32> -> vector<8x512xf32>
    %291 = arith.addf %288, %290 : vector<8x512xf32>
    %292 = vector.extract_strided_slice %291 {offsets = [0, 0], sizes = [8, 128], strides = [1, 1]} : vector<8x512xf32> to vector<8x128xf32>
    %293 = arith.negf %292 : vector<8x128xf32>
    %294 = math.exp %293 : vector<8x128xf32>
    %cst_121 = arith.constant 1.000000e+00 : f32
    %295 = vector.broadcast %cst_121 : f32 to vector<8x128xf32>
    %296 = arith.addf %295, %294 : vector<8x128xf32>
    %297 = arith.divf %295, %296 : vector<8x128xf32>
    %298 = vector.extract_strided_slice %291 {offsets = [0, 128], sizes = [8, 128], strides = [1, 1]} : vector<8x512xf32> to vector<8x128xf32>
    %299 = arith.negf %298 : vector<8x128xf32>
    %300 = math.exp %299 : vector<8x128xf32>
    %cst_122 = arith.constant 1.000000e+00 : f32
    %301 = vector.broadcast %cst_122 : f32 to vector<8x128xf32>
    %302 = arith.addf %301, %300 : vector<8x128xf32>
    %303 = arith.divf %301, %302 : vector<8x128xf32>
    %304 = vector.extract_strided_slice %291 {offsets = [0, 256], sizes = [8, 128], strides = [1, 1]} : vector<8x512xf32> to vector<8x128xf32>
    %305 = math.tanh %304 : vector<8x128xf32>
    %306 = vector.extract_strided_slice %291 {offsets = [0, 384], sizes = [8, 128], strides = [1, 1]} : vector<8x512xf32> to vector<8x128xf32>
    %307 = arith.negf %306 : vector<8x128xf32>
    %308 = math.exp %307 : vector<8x128xf32>
    %cst_123 = arith.constant 1.000000e+00 : f32
    %309 = vector.broadcast %cst_123 : f32 to vector<8x128xf32>
    %310 = arith.addf %309, %308 : vector<8x128xf32>
    %311 = arith.divf %309, %310 : vector<8x128xf32>
    %312 = arith.mulf %303, %285 : vector<8x128xf32>
    %313 = arith.mulf %297, %305 : vector<8x128xf32>
    %314 = arith.addf %312, %313 : vector<8x128xf32>
    %315 = math.tanh %314 : vector<8x128xf32>
    %316 = arith.mulf %311, %315 : vector<8x128xf32>
    %c0_124 = arith.constant 0 : index
    %c0_125 = arith.constant 0 : index
    %317 = vector.load %arg8[%c0_124, %c0_125] : memref<8x128xf32, #tpu.memory_space<vmem>>, vector<8x128xf32>
    tpu.vector_store %arg8[%c0_124, %c0_125], %316 {strides = array<i32>} : memref<8x128xf32, #tpu.memory_space<vmem>>, vector<8x128xf32>,
    %c0_126 = arith.constant 0 : index
    %c0_127 = arith.constant 0 : index
    %318 = vector.load %arg9[%c0_126, %c0_127] : memref<8x128xf32, #tpu.memory_space<vmem>>, vector<8x128xf32>
    tpu.vector_store %arg9[%c0_126, %c0_127], %314 {strides = array<i32>} : memref<8x128xf32, #tpu.memory_space<vmem>>, vector<8x128xf32>,
    %319 = arith.truncf %316 : vector<8x128xf32> to vector<8x128xbf16>
    %320 = arith.index_cast %c7_i32 : i32 to index
    %c0_128 = arith.constant 0 : index
    %c0_129 = arith.constant 0 : index
    %321 = vector.load %arg5[%320, %c0_128, %c0_129] : memref<8x8x128xbf16, #tpu.memory_space<vmem>>, vector<1x8x128xbf16>
    %322 = vector.shape_cast %321 : vector<1x8x128xbf16> to vector<8x128xbf16>
    %323 = vector.shape_cast %319 : vector<8x128xbf16> to vector<1x8x128xbf16>
    tpu.vector_store %arg5[%320, %c0_128, %c0_129], %323 {strides = array<i32>} : memref<8x8x128xbf16, #tpu.memory_space<vmem>>, vector<1x8x128xbf16>,
    %c8_i32 = arith.constant 8 : i32
    %c0_i32_130 = arith.constant 0 : i32
    %324 = arith.cmpi eq, %arg0, %c0_i32_130 : i32
    %325 = arith.extui %324 : i1 to i32
    %c0_i32_131 = arith.constant 0 : i32
    %326 = arith.cmpi ne, %325, %c0_i32_131 : i32
    scf.if %326 {
      %c0_132 = arith.constant 0 : index
      %c0_133 = arith.constant 0 : index
      %327 = vector.load %arg8[%c0_132, %c0_133] : memref<8x128xf32, #tpu.memory_space<vmem>>, vector<8x128xf32>
      %c0_134 = arith.constant 0 : index
      %c0_135 = arith.constant 0 : index
      %328 = vector.load %arg6[%c0_134, %c0_135] : memref<8x128xf32, #tpu.memory_space<vmem>>, vector<8x128xf32>
      tpu.vector_store %arg6[%c0_134, %c0_135], %327 {strides = array<i32>} : memref<8x128xf32, #tpu.memory_space<vmem>>, vector<8x128xf32>,
      %c0_136 = arith.constant 0 : index
      %c0_137 = arith.constant 0 : index
      %329 = vector.load %arg9[%c0_136, %c0_137] : memref<8x128xf32, #tpu.memory_space<vmem>>, vector<8x128xf32>
      %c0_138 = arith.constant 0 : index
      %c0_139 = arith.constant 0 : index
      %330 = vector.load %arg7[%c0_138, %c0_139] : memref<8x128xf32, #tpu.memory_space<vmem>>, vector<8x128xf32>
      tpu.vector_store %arg7[%c0_138, %c0_139], %329 {strides = array<i32>} : memref<8x128xf32, #tpu.memory_space<vmem>>, vector<8x128xf32>,
    } else {
    }
    return
  }
  func.func @transform_0(%arg0: i32) -> (i32, i32, i32) {
    %c0_i32 = arith.constant 0 : i32
    %c0_i32_0 = arith.constant 0 : i32
    %c0_i32_1 = arith.constant 0 : i32
    return %arg0, %c0_i32, %c0_i32_0 : i32, i32, i32
  }
  func.func @transform_1(%arg0: i32) -> (i32, i32) {
    %c0_i32 = arith.constant 0 : i32
    %c0_i32_0 = arith.constant 0 : i32
    %c0_i32_1 = arith.constant 0 : i32
    return %c0_i32, %c0_i32_0 : i32, i32
  }
  func.func @transform_2(%arg0: i32) -> (i32, i32) {
    %c0_i32 = arith.constant 0 : i32
    %c0_i32_0 = arith.constant 0 : i32
    %c0_i32_1 = arith.constant 0 : i32
    return %c0_i32, %c0_i32_0 : i32, i32
  }
  func.func @transform_3(%arg0: i32) -> (i32, i32) {
    %c0_i32 = arith.constant 0 : i32
    %c0_i32_0 = arith.constant 0 : i32
    %c0_i32_1 = arith.constant 0 : i32
    return %c0_i32, %c0_i32_0 : i32, i32
  }
  func.func @transform_4(%arg0: i32) -> (i32, i32, i32) {
    %c0_i32 = arith.constant 0 : i32
    %c0_i32_0 = arith.constant 0 : i32
    %c0_i32_1 = arith.constant 0 : i32
    return %arg0, %c0_i32, %c0_i32_0 : i32, i32, i32
  }
  func.func @transform_5(%arg0: i32) -> (i32, i32) {
    %c0_i32 = arith.constant 0 : i32
    %c0_i32_0 = arith.constant 0 : i32
    %c0_i32_1 = arith.constant 0 : i32
    return %c0_i32, %c0_i32_0 : i32, i32
  }
  func.func @transform_6(%arg0: i32) -> (i32, i32) {
    %c0_i32 = arith.constant 0 : i32
    %c0_i32_0 = arith.constant 0 : i32
    %c0_i32_1 = arith.constant 0 : i32
    return %c0_i32, %c0_i32_0 : i32, i32
  }
}

module attributes {stable_mosaic.version = 11 : i64} {
  func.func @_fc_chain_kernel(%arg0: i32, %arg1: memref<64x128xbf16, #tpu.memory_space<vmem>>, %arg2: memref<128x128xbf16, #tpu.memory_space<vmem>>, %arg3: memref<1x128xf32, #tpu.memory_space<vmem>>, %arg4: memref<128x128xbf16, #tpu.memory_space<vmem>>, %arg5: memref<1x128xf32, #tpu.memory_space<vmem>>, %arg6: memref<64x128xf32, #tpu.memory_space<vmem>>) attributes {dimension_semantics = [#tpu.dimension_semantics<parallel>], iteration_bounds = array<i64: 1>, scalar_prefetch = 0 : i64, scratch_operands = 0 : i64, tpu.core_type = #tpu.core_type<tc>, window_params = [{transform_indices = @transform_0, window_bounds = array<i64: 64, 128>}, {pipeline_mode = #tpu.pipeline_mode<synchronous>, transform_indices = @transform_1, window_bounds = array<i64: 128, 128>}, {pipeline_mode = #tpu.pipeline_mode<synchronous>, transform_indices = @transform_2, window_bounds = array<i64: 1, 128>}, {pipeline_mode = #tpu.pipeline_mode<synchronous>, transform_indices = @transform_3, window_bounds = array<i64: 128, 128>}, {pipeline_mode = #tpu.pipeline_mode<synchronous>, transform_indices = @transform_4, window_bounds = array<i64: 1, 128>}, {transform_indices = @transform_5, window_bounds = array<i64: 64, 128>}]} {
    %c0 = arith.constant 0 : index
    %c0_0 = arith.constant 0 : index
    %0 = vector.load %arg1[%c0, %c0_0] : memref<64x128xbf16, #tpu.memory_space<vmem>>, vector<64x128xbf16>
    %c0_1 = arith.constant 0 : index
    %c0_2 = arith.constant 0 : index
    %1 = vector.load %arg2[%c0_1, %c0_2] : memref<128x128xbf16, #tpu.memory_space<vmem>>, vector<128x128xbf16>
    %cst = arith.constant dense<0.000000e+00> : vector<64x128xf32>
    %2 = tpu.matmul %0, %1, %cst {dimension_numbers = #tpu.dot_dimension_numbers<[1], [0], [0], [1], [0, 0, 1, 1], [], []>} : vector<64x128xbf16>, vector<128x128xbf16>, vector<64x128xf32> -> vector<64x128xf32>
    %c0_3 = arith.constant 0 : index
    %c0_4 = arith.constant 0 : index
    %3 = vector.load %arg3[%c0_3, %c0_4] : memref<1x128xf32, #tpu.memory_space<vmem>>, vector<1x128xf32>
    %4 = vector.broadcast %3 : vector<1x128xf32> to vector<64x128xf32>
    %5 = arith.addf %2, %4 : vector<64x128xf32>
    %cst_5 = arith.constant 0.000000e+00 : f32
    %cst_6 = arith.constant 2.000000e+01 : f32
    %6 = vector.broadcast %cst_5 : f32 to vector<64x128xf32>
    %7 = arith.maximumf %6, %5 : vector<64x128xf32>
    %8 = vector.broadcast %cst_6 : f32 to vector<64x128xf32>
    %9 = arith.minimumf %8, %7 : vector<64x128xf32>
    %10 = arith.truncf %9 : vector<64x128xf32> to vector<64x128xbf16>
    %c0_7 = arith.constant 0 : index
    %c0_8 = arith.constant 0 : index
    %11 = vector.load %arg4[%c0_7, %c0_8] : memref<128x128xbf16, #tpu.memory_space<vmem>>, vector<128x128xbf16>
    %cst_9 = arith.constant dense<0.000000e+00> : vector<64x128xf32>
    %12 = tpu.matmul %10, %11, %cst_9 {dimension_numbers = #tpu.dot_dimension_numbers<[1], [0], [0], [1], [0, 0, 1, 1], [], []>} : vector<64x128xbf16>, vector<128x128xbf16>, vector<64x128xf32> -> vector<64x128xf32>
    %c0_10 = arith.constant 0 : index
    %c0_11 = arith.constant 0 : index
    %13 = vector.load %arg5[%c0_10, %c0_11] : memref<1x128xf32, #tpu.memory_space<vmem>>, vector<1x128xf32>
    %14 = vector.broadcast %13 : vector<1x128xf32> to vector<64x128xf32>
    %15 = arith.addf %12, %14 : vector<64x128xf32>
    %c0_12 = arith.constant 0 : index
    %c0_13 = arith.constant 0 : index
    %16 = vector.load %arg6[%c0_12, %c0_13] : memref<64x128xf32, #tpu.memory_space<vmem>>, vector<64x128xf32>
    tpu.vector_store %arg6[%c0_12, %c0_13], %15 {strides = array<i32>} : memref<64x128xf32, #tpu.memory_space<vmem>>, vector<64x128xf32>,
    return
  }
  func.func @transform_0(%arg0: i32) -> (i32, i32) {
    %c0_i32 = arith.constant 0 : i32
    %c0_i32_0 = arith.constant 0 : i32
    return %arg0, %c0_i32 : i32, i32
  }
  func.func @transform_1(%arg0: i32) -> (i32, i32) {
    %c0_i32 = arith.constant 0 : i32
    %c0_i32_0 = arith.constant 0 : i32
    %c0_i32_1 = arith.constant 0 : i32
    return %c0_i32, %c0_i32_0 : i32, i32
  }
  func.func @transform_2(%arg0: i32) -> (i32, i32) {
    %c0_i32 = arith.constant 0 : i32
    %c0_i32_0 = arith.constant 0 : i32
    %c0_i32_1 = arith.constant 0 : i32
    return %c0_i32, %c0_i32_0 : i32, i32
  }
  func.func @transform_3(%arg0: i32) -> (i32, i32) {
    %c0_i32 = arith.constant 0 : i32
    %c0_i32_0 = arith.constant 0 : i32
    %c0_i32_1 = arith.constant 0 : i32
    return %c0_i32, %c0_i32_0 : i32, i32
  }
  func.func @transform_4(%arg0: i32) -> (i32, i32) {
    %c0_i32 = arith.constant 0 : i32
    %c0_i32_0 = arith.constant 0 : i32
    %c0_i32_1 = arith.constant 0 : i32
    return %c0_i32, %c0_i32_0 : i32, i32
  }
  func.func @transform_5(%arg0: i32) -> (i32, i32) {
    %c0_i32 = arith.constant 0 : i32
    %c0_i32_0 = arith.constant 0 : i32
    return %arg0, %c0_i32 : i32, i32
  }
}

</mosaic_0001>

<bundles_post_ra>
// kernel: collapse_args_ds1.5
= control target key start
LH: loop header
LB: loop body
LE: loop exit
PB: predicated region body
PF: predicated region fallthrough
CT: control target
= control target key end

     0   :  { %s591_s1 = inlined_call_operand.vmem [shape: bf16[128,128], index: 1, kind: input, shape index: {}]   ;;  %s592_s0 = inlined_call_operand.vmem [shape: bf16[64,128], index: 0, kind: input, shape index: {}]   ;;  %s593_s3 = inlined_call_operand.vmem [shape: bf16[128,128], index: 3, kind: input, shape index: {}]   ;;  %s594_s2 = inlined_call_operand.vmem [shape: f32[1,128], index: 2, kind: input, shape index: {}]   ;;  %s595_s4 = inlined_call_operand.vmem [shape: f32[1,128], index: 4, kind: input, shape index: {}]   ;;  %s596_s5 = inlined_call_operand.vmem [shape: f32[64,128], index: 5, kind: output, shape index: {}]  }
   0x1   :  { %v451_v0 = vld [vmem:[%s591_s1 + $0x38] sm:$0xff]   ;;  %v452_v1 = vld [vmem:[%s591_s1 + $0x30] sm:$0xff]   ;;  %v453_v2 = vld [vmem:[%s591_s1 + $0x28] sm:$0xff]  }
   0x2   :  { %403 = vmatprep.subr.bf16.mxu0 %v451_v0  ;;  %v454_v3 = vld [vmem:[%s591_s1 + $0x20] sm:$0xff]   ;;  %v455_v5 = vld [vmem:[%s591_s1 + $0x18] sm:$0xff]   ;;  %v464_v7 = vld [vmem:[%s593_s3 + $0x30] sm:$0xff]  }
   0x3   :  { %404 = vmatpush3.bf16.msra.mxu0 %v451_v0  ;;  %v459_v4 = vld [vmem:[%s592_s0] sm:$0xff]   ;;  %v463_v6 = vld [vmem:[%s593_s3 + $0x38] sm:$0xff]   ;;  %v456_v8 = vld [vmem:[%s591_s1 + $0x10] sm:$0xff]  }
   0x4   :  { %405 = vmatprep.subr.bf16.mxu0 %v452_v1  ;;  %419 = vmatprep.mubr.bf16.mxu0 %v459_v4  ;;  %v465_v9 = vld [vmem:[%s593_s3 + $0x28] sm:$0xff]   ;;  %v466_v11 = vld [vmem:[%s593_s3 + $0x20] sm:$0xff]   ;;  %v461_v14 = vld [vmem:[%s592_s0 + $0x10] sm:$0xff]  }
   0x5   :  { %427 = vmatprep.subr.bf16.mxu1 %v463_v6  ;;  %v457_v10 = vld [vmem:[%s591_s1 + $0x8] sm:$0xff]   ;;  %v458_v12 = vld [vmem:[%s591_s1] sm:$0xff]   ;;  %v462_v15 = vld [vmem:[%s592_s0 + $0x18] sm:$0xff]  }
   0x6   :  { %428 = vmatpush3.bf16.msra.mxu1 %v463_v6  ;;  %v460_v13 = vld [vmem:[%s592_s0 + $0x8] sm:$0xff]   ;;  %v467_v16 = vld [vmem:[%s593_s3 + $0x18] sm:$0xff]   ;;  %v468_v17 = vld [vmem:[%s593_s3 + $0x10] sm:$0xff]  }
   0x7   :  { %406 = vmatpush3.bf16.msra.mxu0 %v452_v1  ;;  %429 = vmatprep.subr.bf16.mxu1 %v464_v7  ;;  %v469_v18 = vld [vmem:[%s593_s3 + $0x8] sm:$0xff]   ;;  %v470_v19 = vld [vmem:[%s593_s3] sm:$0xff]  }
   0x8   :  { %407 = vmatprep.subr.bf16.mxu0 %v453_v2  ;;  %v357_v21 = vld [vmem:[%s594_s2] ss:$0 sm:$0xff] }
   0x9   :  { %v370_v57 = vld [vmem:[%s595_s4] ss:$0 sm:$0xff] }
   0xa   :  { %430 = vmatpush3.bf16.msra.mxu1 %v464_v7 }
   0xb   :  { %408 = vmatpush3.bf16.msra.mxu0 %v453_v2  ;;  %431 = vmatprep.subr.bf16.mxu1 %v465_v9 }
   0xc   :  { %409 = vmatprep.subr.bf16.mxu0 %v454_v3 }
   0xe   :  { %432 = vmatpush3.bf16.msra.mxu1 %v465_v9 }
   0xf   :  { %410 = vmatpush3.bf16.msra.mxu0 %v454_v3  ;;  %433 = vmatprep.subr.bf16.mxu1 %v466_v11 }
  0x10   :  { %411 = vmatprep.subr.bf16.mxu0 %v455_v5 }
  0x12   :  { %434 = vmatpush3.bf16.msra.mxu1 %v466_v11 }
  0x13   :  { %412 = vmatpush3.bf16.msra.mxu0 %v455_v5  ;;  %435 = vmatprep.subr.bf16.mxu1 %v467_v16 }
  0x14   :  { %413 = vmatprep.subr.bf16.mxu0 %v456_v8 }
  0x16   :  { %436 = vmatpush3.bf16.msra.mxu1 %v467_v16 }
  0x17   :  { %414 = vmatpush3.bf16.msra.mxu0 %v456_v8  ;;  %437 = vmatprep.subr.bf16.mxu1 %v468_v17 }
  0x18   :  { %415 = vmatprep.subr.bf16.mxu0 %v457_v10 }
  0x1a   :  { %438 = vmatpush3.bf16.msra.mxu1 %v468_v17 }
  0x1b   :  { %416 = vmatpush3.bf16.msra.mxu0 %v457_v10  ;;  %439 = vmatprep.subr.bf16.mxu1 %v469_v18 }
  0x1c   :  { %417 = vmatprep.subr.bf16.mxu0 %v458_v12 }
  0x1e   :  { %440 = vmatpush3.bf16.msra.mxu1 %v469_v18 }
  0x1f   :  { %418 = vmatpush3.bf16.msra.mxu0 %v458_v12  ;;  %441 = vmatprep.subr.bf16.mxu1 %v470_v19 }
  0x22   :  { %420 = vmatmul.mubr.bf16.vlgmr.msra.gmra.mxu0 %v460_v13  ;;  %442 = vmatpush3.bf16.msra.mxu1 %v470_v19 }
  0x23   :  { %423 = vmatprep.mubr.bf16.mxu0 %v461_v14 }
  0x2a   :  { %424 = vmatmul.mubr.bf16.gmra.mxu0 %v462_v15 }
  0xe2   :  { %v421_v20 = vpop.f32.mrf.mxu0 }
  0xe3   :  { %v167_v24 = vadd.f32 %v421_v20, %v357_v21 }
  0xe4   :  { %v158_v22 = vpop.f32.mrf.mxu0 }
  0xe5   :  { %v159_v23 = vadd.f32 %v357_v21, %v158_v22  ;;  %v191_v31 = vmax.f32 %v167_v24, 0.0 }
  0xe6   :  { %v422_v25 = vpop.f32.mrf.mxu0 }
  0xe7   :  { %v170_v26 = vadd.f32 %v422_v25, %v357_v21  ;;  %v189_v28 = vmax.f32 %v159_v23, 0.0  ;;  %v199_v39 = vmin.f32 %v191_v31, 20.0 }
  0xe8   :  { %v161_v27 = vpop.f32.mrf.mxu0 }
  0xe9   :  { %v192_v29 = vmax.f32 %v170_v26, 0.0  ;;  %v162_v30 = vadd.f32 %v357_v21, %v161_v27  ;;  %v197_v36 = vmin.f32 %v189_v28, 20.0 }
  0xea   :  { %v425_v32 = vpop.f32.mrf.mxu0 }
  0xeb   :  { %v190_v33 = vmax.f32 %v162_v30, 0.0  ;;  %v200_v34 = vmin.f32 %v192_v29, 20.0  ;;  %v183_v40 = vadd.f32 %v425_v32, %v357_v21 }
  0xec   :  { %v174_v35 = vpop.f32.mrf.mxu0 }
  0xed   :  { %v198_v37 = vmin.f32 %v190_v33, 20.0  ;;  %v175_v38 = vadd.f32 %v357_v21, %v174_v35  ;;  %v206_v44 = vpack.c.bf16 %v200_v34, %v199_v39  ;;  %v195_v49 = vmax.f32 %v183_v40, 0.0 }
  0xee   :  { %v426_v41 = vpop.f32.mrf.mxu0 }
  0xef   :  { %v186_v42 = vadd.f32 %v426_v41, %v357_v21  ;;  %v205_v43 = vpack.c.bf16 %v198_v37, %v197_v36  ;;  %v193_v46 = vmax.f32 %v175_v38, 0.0  ;;  %v203_v54 = vmin.f32 %v195_v49, 20.0 }
  0xf0   :  { %v177_v45 = vpop.f32.mrf.mxu0 }
  0xf1   :  { %v196_v47 = vmax.f32 %v186_v42, 0.0  ;;  %v178_v48 = vadd.f32 %v357_v21, %v177_v45  ;;  %443 = vmatprep.mubr.bf16.mxu1 %v205_v43  ;;  %v201_v52 = vmin.f32 %v193_v46, 20.0 }
  0xf2   :  { %444 = vmatmul.mubr.bf16.vlgmr.msra.gmra.mxu1 %v206_v44 }
  0xf3   :  { %v194_v50 = vmax.f32 %v178_v48, 0.0  ;;  %v204_v51 = vmin.f32 %v196_v47, 20.0 }
  0xf5   :  { %v202_v53 = vmin.f32 %v194_v50, 20.0  ;;  %v208_v56 = vpack.c.bf16 %v204_v51, %v203_v54 }
  0xf7   :  { %v207_v55 = vpack.c.bf16 %v202_v53, %v201_v52 }
  0xf9   :  { %447 = vmatprep.mubr.bf16.mxu1 %v207_v55 }
  0xfa   :  { %448 = vmatmul.mubr.bf16.gmra.mxu1 %v208_v56 }
 0x1b2   :  { %v445_v58 = vpop.f32.mrf.mxu1 }
 0x1b3   :  { %v323_v59 = vadd.f32 %v445_v58, %v370_v57 }
 0x1b4   :  { %v314_v60 = vpop.f32.mrf.mxu1 }
 0x1b5   :  { %347 = vst [vmem:[%s596_s5 + $0x10] sm:$0xff] %v323_v59  ;;  %v315_v61 = vadd.f32 %v370_v57, %v314_v60 }
 0x1b6   :  { %v446_v62 = vpop.f32.mrf.mxu1 }
 0x1b7   :  { %345 = vst [vmem:[%s596_s5] sm:$0xff] %v315_v61  ;;  %v326_v63 = vadd.f32 %v446_v62, %v370_v57 }
 0x1b8   :  { %v317_v0 = vpop.f32.mrf.mxu1 }
 0x1b9   :  { %348 = vst [vmem:[%s596_s5 + $0x18] sm:$0xff] %v326_v63  ;;  %v318_v1 = vadd.f32 %v370_v57, %v317_v0 }
 0x1ba   :  { %v449_v2 = vpop.f32.mrf.mxu1 }
 0x1bb   :  { %346 = vst [vmem:[%s596_s5 + $0x8] sm:$0xff] %v318_v1  ;;  %v339_v3 = vadd.f32 %v449_v2, %v370_v57 }
 0x1bc   :  { %v330_v4 = vpop.f32.mrf.mxu1 }
 0x1bd   :  { %351 = vst [vmem:[%s596_s5 + $0x30] sm:$0xff] %v339_v3  ;;  %v331_v5 = vadd.f32 %v370_v57, %v330_v4 }
 0x1be   :  { %v450_v6 = vpop.f32.mrf.mxu1 }
 0x1bf   :  { %349 = vst [vmem:[%s596_s5 + $0x20] sm:$0xff] %v331_v5  ;;  %v342_v7 = vadd.f32 %v450_v6, %v370_v57 }
 0x1c0   :  { %v333_v8 = vpop.f32.mrf.mxu1 }
 0x1c1   :  { %352 = vst [vmem:[%s596_s5 + $0x38] sm:$0xff] %v342_v7  ;;  %v334_v9 = vadd.f32 %v370_v57, %v333_v8 }
 0x1c3   :  { %350 = vst [vmem:[%s596_s5 + $0x28] sm:$0xff] %v334_v9 }

// kernel: collapse_args_ds1.3
= control target key start
LH: loop header
LB: loop body
LE: loop exit
PB: predicated region body
PF: predicated region fallthrough
CT: control target
= control target key end

     0   :  { %14 = vsyncpa [#allocation3], 0  ;;  %s1630_s0 = inlined_call_operand.vmem [shape: bf16[64,128], index: 0, kind: input, shape index: {}]   ;;  %s1631_s1 = inlined_call_operand.vmem [shape: bf16[128,128], index: 1, kind: input, shape index: {}]   ;;  %s1632_s2 = inlined_call_operand.vmem [shape: f32[1,128], index: 2, kind: input, shape index: {}]   ;;  %s1633_s3 = inlined_call_operand.hbm [shape: bf16[128,128], index: 3, kind: input, shape index: {}]   ;;  %s1634_s4 = inlined_call_operand.vmem [shape: f32[1,128], index: 4, kind: input, shape index: {}]   ;;  %s1635_s5 = inlined_call_operand.hbm [shape: bf16[128,128], index: 5, kind: input, shape index: {}]   ;;  %s1636_s6 = inlined_call_operand.vmem [shape: f32[1,128], index: 6, kind: input, shape index: {}]   ;;  %s1637_s7 = inlined_call_operand.hbm [shape: bf16[128,512], index: 7, kind: input, shape index: {}]   ;;  %s1638_s8 = inlined_call_operand.vmem [shape: f32[1,512], index: 8, kind: input, shape index: {}]   ;;  %s1639_s9 = inlined_call_operand.vmem [shape: f32[64,512], index: 9, kind: output, shape index: {}]  }
   0x1   :  { %15 = vsyncpa [#allocation5], 0  ;;  %s1307_s30 = smov [#allocation4]   ;;  %s1308_s11 = smov [#allocation2]  }
   0x2   :  { %s41_s10 = sshll.u32 %s1307_s30, 4  ;;  %s27_s12 = sshll.u32 %s1308_s11, 4  ;;  %s42_s10 = int_to_ptr.vmem [resolvable:$true] %s41_s10  ;;  %s28_s12 = int_to_ptr.vmem [resolvable:$true] %s27_s12 }
   0x3   :  { %s1251_s13 = scalar_lea.vmem %s42_s10, 1024  ;;  %p1256_p1 = scmp.lt.s32.totalorder %s42_s10, %s42_s10 }
   0x4   :  { %p1252_p0 = scmp.ne.s32.totalorder %s42_s10, %s1251_s13  ;;  %p1257_p2 = scmp.lt.s32.totalorder %s1251_s13, %s1251_s13 }
   0x6   :  { %p1258_p3 = por %p1257_p2, %p1256_p1 }
   0x8   :  { %p1259_p4 = pnand %p1258_p3, %p1252_p0 }
   0xa   :  { %1262 = shalt.err (!%p1259_p4)
}
   0xb   :  { %s1309_s14 = smov 64   ;;  %s1310_s15 = smov 4  }
   0xc   :  { %47 = dma.hbm_to_vmem [thread:$0]  %s1635_s5, 1024, %s42_s10, [#allocation5], %s1309_s14, %s1309_s14, %s1310_s15  }
   0xd   :  { %s1271_s18 = scalar_lea.vmem %s28_s12, 1024  ;;  %p1276_p6 = scmp.lt.s32.totalorder %s28_s12, %s28_s12 }
   0xe   :  { %p1272_p5 = scmp.ne.s32.totalorder %s28_s12, %s1271_s18  ;;  %p1277_p7 = scmp.lt.s32.totalorder %s1271_s18, %s1271_s18 }
  0x10   :  { %p1278_p8 = por %p1277_p7, %p1276_p6 }
  0x12   :  { %p1279_p9 = pnand %p1278_p8, %p1272_p5 }
  0x14   :  { %1282 = shalt.err (!%p1279_p9)
}
  0x15   :  { %33 = dma.hbm_to_vmem [thread:$0]  %s1633_s3, 1024, %s28_s12, [#allocation3], %s1309_s14, %s1309_s14, %s1310_s15  }
  0x16   :  { %s1311_s21 = smov [#allocation6]  }
  0x17   :  { %s55_s22 = sshll.u32 %s1311_s21, 4  ;;  %s56_s22 = int_to_ptr.vmem [resolvable:$true] %s55_s22 }
  0x18   :  { %s1291_s23 = scalar_lea.vmem %s56_s22, 4096  ;;  %p1296_p11 = scmp.lt.s32.totalorder %s56_s22, %s56_s22 }
  0x19   :  { %p1292_p10 = scmp.ne.s32.totalorder %s56_s22, %s1291_s23  ;;  %p1297_p12 = scmp.lt.s32.totalorder %s1291_s23, %s1291_s23 }
  0x1b   :  { %p1298_p13 = por %p1297_p12, %p1296_p11 }
  0x1d   :  { %p1299_p0 = pnand %p1298_p13, %p1292_p10 }
  0x1f   :  { %1302 = shalt.err (!%p1299_p0)
}
  0x20   :  { %s1312_s5 = smov 256   ;;  %s1313_s24 = smov 16  }
  0x21   :  { %61 = dma.hbm_to_vmem [thread:$0]  %s1637_s7, 4096, %s56_s22, [#allocation5], %s1312_s5, %s1312_s5, %s1313_s24  }
  0x22   :  { %1303 = dma.done.wait [#allocation3], 1024  }
  0x23   :  { %1304 = vsyncadd [#allocation3], 4294966272 }
  0x24   :  { %1305 = dma.done.wait [#allocation5], 5120  }
  0x25   :  { %1306 = vsyncadd [#allocation5], 4294962176  ;;  %v1167_v0 = vld [vmem:[%s1631_s1 + $0x38] sm:$0xff]   ;;  %v1168_v1 = vld [vmem:[%s1631_s1 + $0x30] sm:$0xff]  }
  0x26   :  { %1071 = vmatprep.subr.bf16.mxu0 %v1167_v0  ;;  %v1169_v2 = vld [vmem:[%s1631_s1 + $0x28] sm:$0xff]   ;;  %v1170_v3 = vld [vmem:[%s1631_s1 + $0x20] sm:$0xff]   ;;  %v1171_v5 = vld [vmem:[%s1631_s1 + $0x18] sm:$0xff]  }
  0x27   :  { %1072 = vmatpush3.bf16.msra.mxu0 %v1167_v0  ;;  %v1175_v4 = vld [vmem:[%s1630_s0] sm:$0xff]   ;;  %v1179_v6 = vld [vmem:[#allocation2 + $0x38] sm:$0xff]   ;;  %v1180_v7 = vld [vmem:[#allocation2 + $0x30] sm:$0xff]  }
  0x28   :  { %1073 = vmatprep.subr.bf16.mxu0 %v1168_v1  ;;  %1087 = vmatprep.mubr.bf16.mxu0 %v1175_v4  ;;  %v1172_v8 = vld [vmem:[%s1631_s1 + $0x10] sm:$0xff]   ;;  %v1181_v9 = vld [vmem:[#allocation2 + $0x28] sm:$0xff]   ;;  %v1182_v11 = vld [vmem:[#allocation2 + $0x20] sm:$0xff]  }
  0x29   :  { %1095 = vmatprep.subr.bf16.mxu1 %v1179_v6  ;;  %v1173_v10 = vld [vmem:[%s1631_s1 + $0x8] sm:$0xff]   ;;  %v1174_v12 = vld [vmem:[%s1631_s1] sm:$0xff]   ;;  %v1177_v14 = vld [vmem:[%s1630_s0 + $0x10] sm:$0xff]  }
  0x2a   :  { %1096 = vmatpush3.bf16.msra.mxu1 %v1179_v6  ;;  %v1176_v13 = vld [vmem:[%s1630_s0 + $0x8] sm:$0xff]   ;;  %v1178_v15 = vld [vmem:[%s1630_s0 + $0x18] sm:$0xff]   ;;  %v1184_v17 = vld [vmem:[#allocation2 + $0x10] sm:$0xff]  }
  0x2b   :  { %1074 = vmatpush3.bf16.msra.mxu0 %v1168_v1  ;;  %1097 = vmatprep.subr.bf16.mxu1 %v1180_v7  ;;  %v1183_v16 = vld [vmem:[#allocation2 + $0x18] sm:$0xff]   ;;  %v1185_v18 = vld [vmem:[#allocation2 + $0x8] sm:$0xff]   ;;  %v1186_v19 = vld [vmem:[#allocation2] sm:$0xff]  }
  0x2c   :  { %1075 = vmatprep.subr.bf16.mxu0 %v1169_v2  ;;  %v1187_v20 = vld [vmem:[#allocation4 + $0x38] sm:$0xff]   ;;  %v1188_v21 = vld [vmem:[#allocation4 + $0x30] sm:$0xff]   ;;  %v1189_v22 = vld [vmem:[#allocation4 + $0x28] sm:$0xff]  }
  0x2d   :  { %v1190_v23 = vld [vmem:[#allocation4 + $0x20] sm:$0xff]   ;;  %v1191_v61 = vld [vmem:[#allocation4 + $0x18] sm:$0xff]   ;;  %v1192_v62 = vld [vmem:[#allocation4 + $0x10] sm:$0xff]  }
  0x2e   :  { %1098 = vmatpush3.bf16.msra.mxu1 %v1180_v7  ;;  %v972_v25 = vld [vmem:[%s1632_s2] ss:$0 sm:$0xff]  ;;  %v1193_v63 = vld [vmem:[#allocation4 + $0x8] sm:$0xff]   ;;  %v1203_v4 = vld [vmem:[#allocation6 + $0xc4] ss:$16 sps:$4 sm:$0xff]  }
  0x2f   :  { %1076 = vmatpush3.bf16.msra.mxu0 %v1169_v2  ;;  %1099 = vmatprep.subr.bf16.mxu1 %v1181_v9  ;;  %v1194_v0 = vld [vmem:[#allocation4] sm:$0xff]  }
  0x30   :  { %1077 = vmatprep.subr.bf16.mxu0 %v1170_v3  ;;  %v1195_v1 = vld [vmem:[#allocation6 + $0xe0] ss:$16 sps:$4 sm:$0xff]   ;;  %v1197_v2 = vld [vmem:[#allocation6 + $0xe4] ss:$16 sps:$4 sm:$0xff]  }
  0x31   :  { %v1209_v6 = vld [vmem:[#allocation6 + $0xa4] ss:$16 sps:$4 sm:$0xff]   ;;  %v1207_v7 = vld [vmem:[#allocation6 + $0xa0] ss:$16 sps:$4 sm:$0xff]  }
  0x32   :  { %1100 = vmatpush3.bf16.msra.mxu1 %v1181_v9  ;;  %v1213_v9 = vld [vmem:[#allocation6 + $0x80] ss:$16 sps:$4 sm:$0xff]  }
  0x33   :  { %1078 = vmatpush3.bf16.msra.mxu0 %v1170_v3  ;;  %1101 = vmatprep.subr.bf16.mxu1 %v1182_v11  ;;  %v1413_v3 = vld [vmem:[#allocation6 + $0xec] ss:$16 sps:$4 sm:$0xff]  }
  0x34   :  { %1079 = vmatprep.subr.bf16.mxu0 %v1171_v5 }
  0x36   :  { %1102 = vmatpush3.bf16.msra.mxu1 %v1182_v11  ;;  %v1219_v11 = vld [vmem:[#allocation6 + $0x60] ss:$16 sps:$4 sm:$0xff]  }
  0x37   :  { %1080 = vmatpush3.bf16.msra.mxu0 %v1171_v5  ;;  %1103 = vmatprep.subr.bf16.mxu1 %v1183_v16  ;;  %v1201_v5 = vld [vmem:[#allocation6 + $0xc0] ss:$16 sps:$4 sm:$0xff]  }
  0x38   :  { %1081 = vmatprep.subr.bf16.mxu0 %v1172_v8 }
  0x3a   :  { %1104 = vmatpush3.bf16.msra.mxu1 %v1183_v16 }
  0x3b   :  { %1082 = vmatpush3.bf16.msra.mxu0 %v1172_v8  ;;  %1105 = vmatprep.subr.bf16.mxu1 %v1184_v17  ;;  %v1215_v8 = vld [vmem:[#allocation6 + $0x84] ss:$16 sps:$4 sm:$0xff]  }
  0x3c   :  { %1083 = vmatprep.subr.bf16.mxu0 %v1173_v10 }
  0x3e   :  { %1106 = vmatpush3.bf16.msra.mxu1 %v1184_v17 }
  0x3f   :  { %1084 = vmatpush3.bf16.msra.mxu0 %v1173_v10  ;;  %1107 = vmatprep.subr.bf16.mxu1 %v1185_v18  ;;  %v1221_v10 = vld [vmem:[#allocation6 + $0x64] ss:$16 sps:$4 sm:$0xff]  }
  0x40   :  { %1085 = vmatprep.subr.bf16.mxu0 %v1174_v12 }
  0x42   :  { %1108 = vmatpush3.bf16.msra.mxu1 %v1185_v18 }
  0x43   :  { %1086 = vmatpush3.bf16.msra.mxu0 %v1174_v12  ;;  %1109 = vmatprep.subr.bf16.mxu1 %v1186_v19 }
  0x44   :  { %1119 = vmatprep.subr.bf16.mxu0 %v1187_v20 }
  0x46   :  { %1088 = vmatmul.mubr.bf16.vlgmr.msra.gmra.mxu0 %v1176_v13  ;;  %1110 = vmatpush3.bf16.msra.mxu1 %v1186_v19  ;;  %v985_v13 = vld [vmem:[%s1634_s4] ss:$0 sm:$0xff] }
  0x47   :  { %1091 = vmatprep.mubr.bf16.mxu0 %v1177_v14  ;;  %1120 = vmatpush3.bf16.msra.mxu0 %v1187_v20 }
  0x48   :  { %1121 = vmatprep.subr.bf16.mxu0 %v1188_v21  ;;  %788 = vmatprep.subr.bf16.mxu1 %v1197_v2  ;;  %v1239_v2 = vld [vmem:[#allocation6 + $0x4] ss:$16 sps:$4 sm:$0xff]  }
  0x4b   :  { %1122 = vmatpush3.bf16.msra.mxu0 %v1188_v21 }
  0x4c   :  { %1123 = vmatprep.subr.bf16.mxu0 %v1189_v22 }
  0x4e   :  { %1092 = vmatmul.mubr.bf16.gmra.mxu0 %v1178_v15 }
  0x4f   :  { %1124 = vmatpush3.bf16.msra.mxu0 %v1189_v22 }
  0x50   :  { %1125 = vmatprep.subr.bf16.mxu0 %v1190_v23 }
  0x53   :  { %1126 = vmatpush3.bf16.msra.mxu0 %v1190_v23 }
  0x54   :  { %1127 = vmatprep.subr.bf16.mxu0 %v1191_v61 }
  0x57   :  { %1128 = vmatpush3.bf16.msra.mxu0 %v1191_v61  ;;  %v1448_v61 = vld [vmem:[#allocation6 + $0x48] ss:$16 sps:$4 sm:$0xff]  }
  0x58   :  { %1129 = vmatprep.subr.bf16.mxu0 %v1192_v62 }
  0x5b   :  { %1130 = vmatpush3.bf16.msra.mxu0 %v1192_v62  ;;  %v1233_v62 = vld [vmem:[#allocation6 + $0x24] ss:$16 sps:$4 sm:$0xff]  }
  0x5c   :  { %1131 = vmatprep.subr.bf16.mxu0 %v1193_v63 }
  0x5f   :  { %1132 = vmatpush3.bf16.msra.mxu0 %v1193_v63  ;;  %v1452_v63 = vld [vmem:[#allocation6 + $0x2c] ss:$16 sps:$4 sm:$0xff]  }
  0x60   :  { %1133 = vmatprep.subr.bf16.mxu0 %v1194_v0 }
  0x63   :  { %1134 = vmatpush3.bf16.msra.mxu0 %v1194_v0  ;;  %v1231_v0 = vld [vmem:[#allocation6 + $0x20] ss:$16 sps:$4 sm:$0xff]  }
  0x64   :  { %861 = vmatprep.subr.bf16.mxu0 %v1413_v3 }
 0x106   :  { %v1089_v24 = vpop.f32.mrf.mxu0 }
 0x107   :  { %v220_v28 = vadd.f32 %v1089_v24, %v972_v25 }
 0x108   :  { %v211_v26 = vpop.f32.mrf.mxu0 }
 0x109   :  { %v212_v27 = vadd.f32 %v972_v25, %v211_v26  ;;  %v244_v35 = vmax.f32 %v220_v28, 0.0 }
 0x10a   :  { %v1090_v29 = vpop.f32.mrf.mxu0 }
 0x10b   :  { %v223_v30 = vadd.f32 %v1090_v29, %v972_v25  ;;  %v242_v32 = vmax.f32 %v212_v27, 0.0  ;;  %v252_v44 = vmin.f32 %v244_v35, 20.0 }
 0x10c   :  { %v214_v31 = vpop.f32.mrf.mxu0 }
 0x10d   :  { %v245_v33 = vmax.f32 %v223_v30, 0.0  ;;  %v215_v34 = vadd.f32 %v972_v25, %v214_v31  ;;  %v250_v41 = vmin.f32 %v242_v32, 20.0 }
 0x10e   :  { %v1093_v36 = vpop.f32.mrf.mxu0 }
 0x10f   :  { %v243_v37 = vmax.f32 %v215_v34, 0.0  ;;  %v236_v38 = vadd.f32 %v1093_v36, %v972_v25  ;;  %v253_v39 = vmin.f32 %v245_v33, 20.0  ;;  %v1419_v36 = vld [vmem:[#allocation6 + $0xe8] ss:$16 sps:$4 sm:$0xff]  }
 0x110   :  { %v227_v40 = vpop.f32.mrf.mxu0 }
 0x111   :  { %v251_v42 = vmin.f32 %v243_v37, 20.0  ;;  %v228_v43 = vadd.f32 %v972_v25, %v227_v40  ;;  %v248_v45 = vmax.f32 %v236_v38, 0.0  ;;  %v259_v50 = vpack.c.bf16 %v253_v39, %v252_v44  ;;  %v1421_v39 = vld [vmem:[#allocation6 + $0xcc] ss:$16 sps:$4 sm:$0xff]  }
 0x112   :  { %v1094_v46 = vpop.f32.mrf.mxu0 }
 0x113   :  { %v246_v47 = vmax.f32 %v228_v43, 0.0  ;;  %v239_v48 = vadd.f32 %v1094_v46, %v972_v25  ;;  %v258_v49 = vpack.c.bf16 %v251_v42, %v250_v41  ;;  %v256_v54 = vmin.f32 %v248_v45, 20.0  ;;  %v1424_v45 = vld [vmem:[#allocation6 + $0xc8] ss:$16 sps:$4 sm:$0xff]  }
 0x114   :  { %v230_v51 = vpop.f32.mrf.mxu0 }
 0x115   :  { %v249_v52 = vmax.f32 %v239_v48, 0.0  ;;  %v231_v53 = vadd.f32 %v972_v25, %v230_v51  ;;  %1111 = vmatprep.mubr.bf16.mxu1 %v258_v49  ;;  %v254_v55 = vmin.f32 %v246_v47, 20.0  ;;  %v1427_v47 = vld [vmem:[#allocation6 + $0xac] ss:$16 sps:$4 sm:$0xff]  }
 0x116   :  { %1112 = vmatmul.mubr.bf16.vlgmr.msra.gmra.mxu1 %v259_v50 }
 0x117   :  { %v257_v56 = vmin.f32 %v249_v52, 20.0  ;;  %v247_v57 = vmax.f32 %v231_v53, 0.0  ;;  %789 = vmatpush1.bf16.msra.mxu1 %v1195_v1  ;;  %v1430_v52 = vld [vmem:[#allocation6 + $0xa8] ss:$16 sps:$4 sm:$0xff]  }
 0x118   :  { %790 = vmatprep.subr.bf16.mxu1 %v1203_v4  ;;  %v1454_v1 = vld [vmem:[#allocation6 + $0x28] ss:$16 sps:$4 sm:$0xff]   ;;  %v1458_v4 = vld [vmem:[#allocation6 + $0xc] ss:$16 sps:$4 sm:$0xff]  }
 0x119   :  { %v255_v58 = vmin.f32 %v247_v57, 20.0  ;;  %v261_v59 = vpack.c.bf16 %v257_v56, %v256_v54  ;;  %v1433_v54 = vld [vmem:[#allocation6 + $0x8c] ss:$16 sps:$4 sm:$0xff]   ;;  %v1442_v57 = vld [vmem:[#allocation6 + $0x68] ss:$16 sps:$4 sm:$0xff]  }
 0x11a   :  { %v1439_v56 = vld [vmem:[#allocation6 + $0x6c] ss:$16 sps:$4 sm:$0xff]  }
 0x11b   :  { %v260_v60 = vpack.c.bf16 %v255_v58, %v254_v55  ;;  %791 = vmatpush1.bf16.msra.mxu1 %v1201_v5  ;;  %v1436_v55 = vld [vmem:[#allocation6 + $0x88] ss:$16 sps:$4 sm:$0xff]   ;;  %v1227_v58 = vld [vmem:[#allocation6 + $0x44] ss:$16 sps:$4 sm:$0xff]   ;;  %v1237_v5 = vld [vmem:[#allocation6] ss:$16 sps:$4 sm:$0xff]  }
 0x11c   :  { %792 = vmatprep.subr.bf16.mxu1 %v1209_v6  ;;  %v1460_v6 = vld [vmem:[#allocation6 + $0x8] ss:$16 sps:$4 sm:$0xff]  }
 0x11d   :  { %1115 = vmatprep.mubr.bf16.mxu1 %v260_v60  ;;  %v1225_v60 = vld [vmem:[#allocation6 + $0x40] ss:$16 sps:$4 sm:$0xff]  }
 0x11e   :  { %1116 = vmatmul.mubr.bf16.gmra.mxu1 %v261_v59  ;;  %v1446_v59 = vld [vmem:[#allocation6 + $0x4c] ss:$16 sps:$4 sm:$0xff]  }
 0x11f   :  { %793 = vmatpush1.bf16.msra.mxu1 %v1207_v7  ;;  %v1314_v7 = vmov 0  }
 0x120   :  { %794 = vmatprep.subr.bf16.mxu1 %v1215_v8  ;;  %820 = vmatprep.mubr.bf16.mxu1 %v1314_v7 }
 0x123   :  { %795 = vmatpush1.bf16.msra.mxu1 %v1213_v9  ;;  %v994_v9 = vld [vmem:[%s1636_s6] ss:$0 sm:$0xff] }
 0x124   :  { %796 = vmatprep.subr.bf16.mxu1 %v1221_v10 }
 0x127   :  { %797 = vmatpush1.bf16.msra.mxu1 %v1219_v11 }
 0x128   :  { %798 = vmatprep.subr.bf16.mxu1 %v1227_v58 }
 0x12b   :  { %799 = vmatpush1.bf16.msra.mxu1 %v1225_v60 }
 0x12c   :  { %800 = vmatprep.subr.bf16.mxu1 %v1233_v62 }
 0x12f   :  { %801 = vmatpush1.bf16.msra.mxu1 %v1231_v0 }
 0x130   :  { %802 = vmatprep.subr.bf16.mxu1 %v1239_v2 }
 0x133   :  { %803 = vmatpush1.bf16.msra.mxu1 %v1237_v5 }
 0x134   :  { %1143 = vmatprep.subr.bf16.mxu1 %v1413_v3 }
 0x1d6   :  { %v1113_v12 = vpop.f32.mrf.mxu1 }
 0x1d7   :  { %v376_v16 = vadd.f32 %v1113_v12, %v985_v13 }
 0x1d8   :  { %v367_v14 = vpop.f32.mrf.mxu1 }
 0x1d9   :  { %v368_v15 = vadd.f32 %v985_v13, %v367_v14  ;;  %v400_v23 = vmax.f32 %v376_v16, 0.0 }
 0x1da   :  { %v1114_v17 = vpop.f32.mrf.mxu1 }
 0x1db   :  { %v379_v18 = vadd.f32 %v1114_v17, %v985_v13  ;;  %v398_v20 = vmax.f32 %v368_v15, 0.0  ;;  %v408_v31 = vmin.f32 %v400_v23, 20.0 }
 0x1dc   :  { %v370_v19 = vpop.f32.mrf.mxu1 }
 0x1dd   :  { %v401_v21 = vmax.f32 %v379_v18, 0.0  ;;  %v371_v22 = vadd.f32 %v985_v13, %v370_v19  ;;  %v406_v28 = vmin.f32 %v398_v20, 20.0 }
 0x1de   :  { %v1117_v24 = vpop.f32.mrf.mxu1 }
 0x1df   :  { %v399_v25 = vmax.f32 %v371_v22, 0.0  ;;  %v409_v26 = vmin.f32 %v401_v21, 20.0  ;;  %v392_v32 = vadd.f32 %v1117_v24, %v985_v13 }
 0x1e0   :  { %v383_v27 = vpop.f32.mrf.mxu1 }
 0x1e1   :  { %v407_v29 = vmin.f32 %v399_v25, 20.0  ;;  %v384_v30 = vadd.f32 %v985_v13, %v383_v27  ;;  %v415_v37 = vpack.c.bf16 %v409_v26, %v408_v31  ;;  %v404_v43 = vmax.f32 %v392_v32, 0.0 }
 0x1e2   :  { %v1118_v33 = vpop.f32.mrf.mxu1 }
 0x1e3   :  { %v414_v34 = vpack.c.bf16 %v407_v29, %v406_v28  ;;  %v395_v35 = vadd.f32 %v1118_v33, %v985_v13  ;;  %v402_v40 = vmax.f32 %v384_v30, 0.0  ;;  %v412_v50 = vmin.f32 %v404_v43, 20.0 }
 0x1e4   :  { %v386_v38 = vpop.f32.mrf.mxu1 }
 0x1e5   :  { %v405_v41 = vmax.f32 %v395_v35, 0.0  ;;  %v387_v42 = vadd.f32 %v985_v13, %v386_v38  ;;  %1135 = vmatprep.mubr.bf16.mxu0 %v414_v34  ;;  %v410_v48 = vmin.f32 %v402_v40, 20.0 }
 0x1e6   :  { %1136 = vmatmul.mubr.bf16.vlgmr.msra.gmra.mxu0 %v415_v37 }
 0x1e7   :  { %v403_v44 = vmax.f32 %v387_v42, 0.0  ;;  %862 = vmatpush1.bf16.msra.mxu0 %v1419_v36  ;;  %v413_v46 = vmin.f32 %v405_v41, 20.0 }
 0x1e8   :  { %863 = vmatprep.subr.bf16.mxu0 %v1421_v39 }
 0x1e9   :  { %v411_v49 = vmin.f32 %v403_v44, 20.0  ;;  %v417_v53 = vpack.c.bf16 %v413_v46, %v412_v50  ;;  %v608_v44 = vlaneseq }
 0x1eb   :  { %v416_v51 = vpack.c.bf16 %v411_v49, %v410_v48  ;;  %864 = vmatpush1.bf16.msra.mxu0 %v1424_v45  ;;  %v606_v48 = vld [vmem:[%s1638_s8] sm:$0xf] }
 0x1ec   :  { %865 = vmatprep.subr.bf16.mxu0 %v1427_v47 }
 0x1ed   :  { %1139 = vmatprep.mubr.bf16.mxu0 %v416_v51 }
 0x1ee   :  { %1140 = vmatmul.mubr.bf16.gmra.mxu0 %v417_v53 }
 0x1ef   :  { %866 = vmatpush1.bf16.msra.mxu0 %v1430_v52  ;;  %893 = vmatprep.mubr.bf16.mxu0 %v1314_v7 }
 0x1f0   :  { %867 = vmatprep.subr.bf16.mxu0 %v1433_v54 }
 0x1f3   :  { %868 = vmatpush1.bf16.msra.mxu0 %v1436_v55 }
 0x1f4   :  { %869 = vmatprep.subr.bf16.mxu0 %v1439_v56 }
 0x1f7   :  { %870 = vmatpush1.bf16.msra.mxu0 %v1442_v57 }
 0x1f8   :  { %871 = vmatprep.subr.bf16.mxu0 %v1446_v59 }
 0x1fb   :  { %872 = vmatpush1.bf16.msra.mxu0 %v1448_v61 }
 0x1fc   :  { %873 = vmatprep.subr.bf16.mxu0 %v1452_v63 }
 0x1ff   :  { %874 = vmatpush1.bf16.msra.mxu0 %v1454_v1 }
 0x200   :  { %875 = vmatprep.subr.bf16.mxu0 %v1458_v4 }
 0x203   :  { %876 = vmatpush1.bf16.msra.mxu0 %v1460_v6 }
 0x2a6   :  { %v1137_v8 = vpop.f32.mrf.mxu0 }
 0x2a7   :  { %v532_v19 = vadd.f32 %v1137_v8, %v994_v9 }
 0x2a8   :  { %v523_v10 = vpop.f32.mrf.mxu0 }
 0x2a9   :  { %v524_v11 = vadd.f32 %v994_v9, %v523_v10  ;;  %v556_v26 = vmax.f32 %v532_v19, 0.0 }
 0x2aa   :  { %v1138_v12 = vpop.f32.mrf.mxu0 }
 0x2ab   :  { %v554_v14 = vmax.f32 %v524_v11, 0.0  ;;  %v535_v17 = vadd.f32 %v1138_v12, %v994_v9  ;;  %v564_v29 = vmin.f32 %v556_v26, 20.0 }
 0x2ac   :  { %v526_v13 = vpop.f32.mrf.mxu0 }
 0x2ad   :  { %v527_v15 = vadd.f32 %v994_v9, %v526_v13  ;;  %v562_v20 = vmin.f32 %v554_v14, 20.0  ;;  %v557_v23 = vmax.f32 %v535_v17, 0.0 }
 0x2ae   :  { %v1141_v16 = vpop.f32.mrf.mxu0 }
 0x2af   :  { %v555_v18 = vmax.f32 %v527_v15, 0.0  ;;  %v565_v27 = vmin.f32 %v557_v23, 20.0 }
 0x2b0   :  { %v539_v3 = vpop.f32.mrf.mxu0 }
 0x2b1   :  { %v563_v21 = vmin.f32 %v555_v18, 20.0  ;;  %v540_v30 = vadd.f32 %v994_v9, %v539_v3  ;;  %v571_v31 = vpack.c.bf16 %v565_v27, %v564_v29 }
 0x2b2   :  { %v1142_v22 = vpop.f32.mrf.mxu0 }
 0x2b3   :  { %v570_v24 = vpack.c.bf16 %v563_v21, %v562_v20  ;;  %v558_v33 = vmax.f32 %v540_v30, 0.0  ;;  %v551_v34 = vadd.f32 %v1142_v22, %v994_v9 }
 0x2b4   :  { %v542_v25 = vpop.f32.mrf.mxu0 }
 0x2b5   :  { %821 = vmatmul.mubr.bf16.vlgmr.msra.gmra.mxu1 %v570_v24  ;;  %894 = vmatmul.mubr.bf16.vlgmr.msra.gmra.mxu0 %v570_v24  ;;  %v543_v28 = vadd.f32 %v994_v9, %v542_v25  ;;  %v566_v37 = vmin.f32 %v558_v33, 20.0  ;;  %v561_v38 = vmax.f32 %v551_v34, 0.0 }
 0x2b6   :  { %1151 = vmatpush1.bf16.msra.mxu1 %v1419_v36  ;;  %830 = vmatprep.mubr.bf16.mxu1 %v1314_v7  ;;  %v548_v36 = vadd.f32 %v1141_v16, %v994_v9 }
 0x2b7   :  { %1144 = vmatprep.subr.bf16.mxu1 %v1421_v39  ;;  %903 = vmatprep.mubr.bf16.mxu0 %v1314_v7  ;;  %v559_v32 = vmax.f32 %v543_v28, 0.0  ;;  %v569_v41 = vmin.f32 %v561_v38, 20.0 }
 0x2b8   :  { %v560_v40 = vmax.f32 %v548_v36, 0.0 }
 0x2b9   :  { %v567_v35 = vmin.f32 %v559_v32, 20.0 }
 0x2ba   :  { %1152 = vmatpush1.bf16.msra.mxu1 %v1424_v45  ;;  %v568_v42 = vmin.f32 %v560_v40, 20.0  ;;  %v609_v45 = vshrl.u32 %v608_v44, 7 }
 0x2bb   :  { %1145 = vmatprep.subr.bf16.mxu1 %v1427_v47  ;;  %v572_v39 = vpack.c.bf16 %v567_v35, %v566_v37 }
 0x2bc   :  { %v573_v43 = vpack.c.bf16 %v569_v41, %v568_v42  ;;  %v610_v46 = vsub.s32 0, %v609_v45  ;;  %v618_v47 = vsub.s32 2, %v609_v45  ;;  %v614_v49 = vsub.s32 1, %v609_v45 }
 0x2bd   :  { %831 = vmatmul.mubr.bf16.gmra.mxu1 %v571_v31  ;;  %904 = vmatmul.mubr.bf16.gmra.mxu0 %v571_v31  ;;  %v622_v50 = vsub.s32 3, %v609_v45 }
 0x2be   :  { %1153 = vmatpush1.bf16.msra.mxu1 %v1430_v52  ;;  %840 = vmatprep.mubr.bf16.mxu1 %v1314_v7  ;;  %v1494_v51 = vrot.slane %v606_v48, %v610_v46  ;;  %v1496_v52 = vrot.slane %v606_v48, %v618_v47  ;;  %v1498_v53 = vrot.slane %v606_v48, %v614_v49 }
 0x2bf   :  { %1146 = vmatprep.subr.bf16.mxu1 %v1433_v54  ;;  %v1500_v54 = vrot.slane %v606_v48, %v622_v50 }
 0x2c2   :  { %1154 = vmatpush1.bf16.msra.mxu1 %v1436_v55 }
 0x2c3   :  { %1147 = vmatprep.subr.bf16.mxu1 %v1439_v56 }
 0x2c5   :  { %841 = vmatmul.mubr.bf16.gmra.mxu1 %v572_v39 }
 0x2c6   :  { %1155 = vmatpush1.bf16.msra.mxu1 %v1442_v57  ;;  %850 = vmatprep.mubr.bf16.mxu1 %v1314_v7 }
 0x2c7   :  { %1148 = vmatprep.subr.bf16.mxu1 %v1446_v59 }
 0x2ca   :  { %1156 = vmatpush1.bf16.msra.mxu1 %v1448_v61 }
 0x2cb   :  { %1149 = vmatprep.subr.bf16.mxu1 %v1452_v63 }
 0x2cd   :  { %851 = vmatmul.mubr.bf16.gmra.mxu1 %v573_v43 }
 0x2ce   :  { %1157 = vmatpush1.bf16.msra.mxu1 %v1454_v1  ;;  %913 = vmatprep.mubr.bf16.mxu1 %v1314_v7 }
 0x2cf   :  { %1150 = vmatprep.subr.bf16.mxu1 %v1458_v4 }
 0x2d2   :  { %1158 = vmatpush1.bf16.msra.mxu1 %v1460_v6 }
 0x2d5   :  { %914 = vmatmul.mubr.bf16.vlgmr.msra.gmra.mxu1 %v572_v39 }
 0x2d6   :  { %923 = vmatprep.mubr.bf16.mxu1 %v1314_v7 }
 0x2dd   :  { %924 = vmatmul.mubr.bf16.gmra.mxu1 %v573_v43 }
 0x375   :  { %v822_v55 = vpop.f32.mrf.mxu1  ;;  %v895_v56 = vpop.f32.mrf.mxu0 }
 0x376   :  { %v823_v57 = vadd.f32 %v822_v55, %v1494_v51  ;;  %v896_v58 = vadd.f32 %v895_v56, %v1496_v52 }
 0x377   :  { %v824_v59 = vpop.f32.mrf.mxu1  ;;  %v897_v60 = vpop.f32.mrf.mxu0 }
 0x378   :  { %934 = vst [vmem:[%s1639_s9] sm:$0xff] %v823_v57  ;;  %936 = vst [vmem:[%s1639_s9 + $0x10] sm:$0xff] %v896_v58  ;;  %v825_v61 = vadd.f32 %v824_v59, %v1498_v53  ;;  %v898_v62 = vadd.f32 %v897_v60, %v1500_v54 }
 0x379   :  { %v826_v63 = vpop.f32.mrf.mxu1  ;;  %v899_v0 = vpop.f32.mrf.mxu0 }
 0x37a   :  { %935 = vst [vmem:[%s1639_s9 + $0x8] sm:$0xff] %v825_v61  ;;  %937 = vst [vmem:[%s1639_s9 + $0x18] sm:$0xff] %v898_v62  ;;  %v827_v1 = vadd.f32 %v826_v63, %v1494_v51  ;;  %v900_v2 = vadd.f32 %v899_v0, %v1496_v52 }
 0x37b   :  { %v828_v4 = vpop.f32.mrf.mxu1  ;;  %v901_v5 = vpop.f32.mrf.mxu0 }
 0x37c   :  { %938 = vst [vmem:[%s1639_s9 + $0x20] sm:$0xff] %v827_v1  ;;  %940 = vst [vmem:[%s1639_s9 + $0x30] sm:$0xff] %v900_v2  ;;  %v829_v6 = vadd.f32 %v828_v4, %v1498_v53  ;;  %v902_v7 = vadd.f32 %v901_v5, %v1500_v54 }
 0x37d   :  { %v832_v8 = vpop.f32.mrf.mxu1  ;;  %v905_v9 = vpop.f32.mrf.mxu0 }
 0x37e   :  { %939 = vst [vmem:[%s1639_s9 + $0x28] sm:$0xff] %v829_v6  ;;  %941 = vst [vmem:[%s1639_s9 + $0x38] sm:$0xff] %v902_v7  ;;  %v833_v10 = vadd.f32 %v832_v8, %v1494_v51  ;;  %v906_v11 = vadd.f32 %v905_v9, %v1496_v52 }
 0x37f   :  { %v834_v12 = vpop.f32.mrf.mxu1  ;;  %v907_v13 = vpop.f32.mrf.mxu0 }
 0x380   :  { %942 = vst [vmem:[%s1639_s9 + $0x40] sm:$0xff] %v833_v10  ;;  %944 = vst [vmem:[%s1639_s9 + $0x50] sm:$0xff] %v906_v11  ;;  %v835_v14 = vadd.f32 %v834_v12, %v1498_v53  ;;  %v908_v15 = vadd.f32 %v907_v13, %v1500_v54 }
 0x381   :  { %v836_v16 = vpop.f32.mrf.mxu1  ;;  %v909_v17 = vpop.f32.mrf.mxu0 }
 0x382   :  { %943 = vst [vmem:[%s1639_s9 + $0x48] sm:$0xff] %v835_v14  ;;  %945 = vst [vmem:[%s1639_s9 + $0x58] sm:$0xff] %v908_v15  ;;  %v837_v18 = vadd.f32 %v836_v16, %v1494_v51  ;;  %v910_v3 = vadd.f32 %v909_v17, %v1496_v52 }
 0x383   :  { %v838_v19 = vpop.f32.mrf.mxu1  ;;  %v911_v20 = vpop.f32.mrf.mxu0 }
 0x384   :  { %946 = vst [vmem:[%s1639_s9 + $0x60] sm:$0xff] %v837_v18  ;;  %948 = vst [vmem:[%s1639_s9 + $0x70] sm:$0xff] %v910_v3  ;;  %v839_v21 = vadd.f32 %v838_v19, %v1498_v53  ;;  %v912_v22 = vadd.f32 %v911_v20, %v1500_v54 }
 0x385   :  { %v842_v23 = vpop.f32.mrf.mxu1 }
 0x386   :  { %947 = vst [vmem:[%s1639_s9 + $0x68] sm:$0xff] %v839_v21  ;;  %949 = vst [vmem:[%s1639_s9 + $0x78] sm:$0xff] %v912_v22  ;;  %v843_v24 = vadd.f32 %v842_v23, %v1494_v51 }
 0x387   :  { %v844_v25 = vpop.f32.mrf.mxu1 }
 0x388   :  { %950 = vst [vmem:[%s1639_s9 + $0x80] sm:$0xff] %v843_v24  ;;  %v845_v26 = vadd.f32 %v844_v25, %v1498_v53 }
 0x389   :  { %v846_v27 = vpop.f32.mrf.mxu1 }
 0x38a   :  { %951 = vst [vmem:[%s1639_s9 + $0x88] sm:$0xff] %v845_v26  ;;  %v847_v28 = vadd.f32 %v846_v27, %v1494_v51 }
 0x38b   :  { %v848_v29 = vpop.f32.mrf.mxu1 }
 0x38c   :  { %954 = vst [vmem:[%s1639_s9 + $0xa0] sm:$0xff] %v847_v28  ;;  %v849_v30 = vadd.f32 %v848_v29, %v1498_v53 }
 0x38d   :  { %v852_v31 = vpop.f32.mrf.mxu1 }
 0x38e   :  { %955 = vst [vmem:[%s1639_s9 + $0xa8] sm:$0xff] %v849_v30  ;;  %v853_v32 = vadd.f32 %v852_v31, %v1494_v51 }
 0x38f   :  { %v854_v33 = vpop.f32.mrf.mxu1 }
 0x390   :  { %958 = vst [vmem:[%s1639_s9 + $0xc0] sm:$0xff] %v853_v32  ;;  %v855_v34 = vadd.f32 %v854_v33, %v1498_v53 }
 0x391   :  { %v856_v35 = vpop.f32.mrf.mxu1 }
 0x392   :  { %959 = vst [vmem:[%s1639_s9 + $0xc8] sm:$0xff] %v855_v34  ;;  %v857_v36 = vadd.f32 %v856_v35, %v1494_v51 }
 0x393   :  { %v858_v37 = vpop.f32.mrf.mxu1 }
 0x394   :  { %962 = vst [vmem:[%s1639_s9 + $0xe0] sm:$0xff] %v857_v36  ;;  %v859_v38 = vadd.f32 %v858_v37, %v1498_v53 }
 0x395   :  { %v915_v39 = vpop.f32.mrf.mxu1 }
 0x396   :  { %963 = vst [vmem:[%s1639_s9 + $0xe8] sm:$0xff] %v859_v38  ;;  %v916_v40 = vadd.f32 %v915_v39, %v1496_v52 }
 0x397   :  { %v917_v41 = vpop.f32.mrf.mxu1 }
 0x398   :  { %952 = vst [vmem:[%s1639_s9 + $0x90] sm:$0xff] %v916_v40  ;;  %v918_v42 = vadd.f32 %v917_v41, %v1500_v54 }
 0x399   :  { %v919_v43 = vpop.f32.mrf.mxu1 }
 0x39a   :  { %953 = vst [vmem:[%s1639_s9 + $0x98] sm:$0xff] %v918_v42  ;;  %v920_v44 = vadd.f32 %v919_v43, %v1496_v52 }
 0x39b   :  { %v921_v45 = vpop.f32.mrf.mxu1 }
 0x39c   :  { %956 = vst [vmem:[%s1639_s9 + $0xb0] sm:$0xff] %v920_v44  ;;  %v922_v46 = vadd.f32 %v921_v45, %v1500_v54 }
 0x39d   :  { %v925_v47 = vpop.f32.mrf.mxu1 }
 0x39e   :  { %957 = vst [vmem:[%s1639_s9 + $0xb8] sm:$0xff] %v922_v46  ;;  %v926_v48 = vadd.f32 %v925_v47, %v1496_v52 }
 0x39f   :  { %v927_v49 = vpop.f32.mrf.mxu1 }
 0x3a0   :  { %960 = vst [vmem:[%s1639_s9 + $0xd0] sm:$0xff] %v926_v48  ;;  %v928_v50 = vadd.f32 %v927_v49, %v1500_v54 }
 0x3a1   :  { %v929_v51 = vpop.f32.mrf.mxu1 }
 0x3a2   :  { %961 = vst [vmem:[%s1639_s9 + $0xd8] sm:$0xff] %v928_v50  ;;  %v930_v53 = vadd.f32 %v929_v51, %v1496_v52 }
 0x3a3   :  { %v931_v55 = vpop.f32.mrf.mxu1 }
 0x3a4   :  { %964 = vst [vmem:[%s1639_s9 + $0xf0] sm:$0xff] %v930_v53  ;;  %v932_v56 = vadd.f32 %v931_v55, %v1500_v54 }
 0x3a6   :  { %965 = vst [vmem:[%s1639_s9 + $0xf8] sm:$0xff] %v932_v56 }
 0x3a7   :  { %970 = vsyncpa [#allocation3], 1 }
 0x3a8   :  { %971 = vsyncpa [#allocation5], 1 }

// kernel: collapse_args_ds1.4
= control target key start
LH: loop header
LB: loop body
LE: loop exit
PB: predicated region body
PF: predicated region fallthrough
CT: control target
= control target key end

     0   :  { %v1522_v1 = vmov 0   ;;  %s2210_s1 = inlined_call_operand.vmem [shape: bf16[128,512], index: 1, kind: input, shape index: {}]   ;;  %s2211_s2 = inlined_call_operand.vmem [shape: f32[8,128], index: 2, kind: input, shape index: {}]   ;;  %s2212_s0 = inlined_call_operand.vmem [shape: f32[8,8,512], index: 0, kind: input, shape index: {}]   ;;  %s2213_s3 = inlined_call_operand.vmem [shape: f32[8,128], index: 3, kind: input, shape index: {}]   ;;  %s2214_s4 = inlined_call_operand.vmem [shape: bf16[8,8,128], index: 4, kind: output, shape index: {0}]   ;;  %s2215_s6 = inlined_call_operand.vmem [shape: f32[8,128], index: 6, kind: output, shape index: {2}]   ;;  %s2216_s5 = inlined_call_operand.vmem [shape: f32[8,128], index: 5, kind: output, shape index: {1}]  }
   0x1   :  { %v1561_v0 = vld [vmem:[%s2210_s1 + $0xe4] ss:$16 sps:$4 sm:$0xff]   ;;  %260 = vmatprep.mubr.bf16.mxu0 %v1522_v1  ;;  %301 = vmatprep.mubr.bf16.mxu1 %v1522_v1  ;;  %v1568_v2 = vld [vmem:[%s2210_s1 + $0xe0] ss:$16 sps:$4 sm:$0xff]   ;;  %v1591_v6 = vld [vmem:[%s2210_s1 + $0xec] ss:$16 sps:$4 sm:$0xff]  }
   0x2   :  { %228 = vmatprep.subr.bf16.mxu0 %v1561_v0  ;;  %v1574_v3 = vld [vmem:[%s2210_s1 + $0xc4] ss:$16 sps:$4 sm:$0xff]   ;;  %v1580_v4 = vld [vmem:[%s2210_s1 + $0xc0] ss:$16 sps:$4 sm:$0xff]   ;;  %v1596_v7 = vld [vmem:[%s2210_s1 + $0xe8] ss:$16 sps:$4 sm:$0xff]   ;;  %269 = vmatprep.subr.bf16.mxu1 %v1591_v6 }
   0x3   :  { %229 = vmatpush1.bf16.msra.mxu0 %v1568_v2  ;;  %v1586_v5 = vld [vmem:[%s2210_s1 + $0xa4] ss:$16 sps:$4 sm:$0xff]   ;;  %v1602_v8 = vld [vmem:[%s2210_s1 + $0xa0] ss:$16 sps:$4 sm:$0xff]   ;;  %270 = vmatpush1.bf16.msra.mxu1 %v1596_v7  ;;  %v1615_v10 = vld [vmem:[%s2210_s1 + $0xcc] ss:$16 sps:$4 sm:$0xff]  }
   0x4   :  { %230 = vmatprep.subr.bf16.mxu0 %v1574_v3  ;;  %v1609_v9 = vld [vmem:[%s2210_s1 + $0x84] ss:$16 sps:$4 sm:$0xff]   ;;  %v1620_v11 = vld [vmem:[%s2210_s1 + $0xc8] ss:$16 sps:$4 sm:$0xff]   ;;  %271 = vmatprep.subr.bf16.mxu1 %v1615_v10  ;;  %v1627_v12 = vld [vmem:[%s2210_s1 + $0x80] ss:$16 sps:$4 sm:$0xff]  }
   0x5   :  { %v1632_v13 = vld [vmem:[%s2210_s1 + $0x64] ss:$16 sps:$4 sm:$0xff]   ;;  %v1637_v14 = vld [vmem:[%s2210_s1 + $0xac] ss:$16 sps:$4 sm:$0xff]   ;;  %v1644_v15 = vld [vmem:[%s2210_s1 + $0xa8] ss:$16 sps:$4 sm:$0xff]  }
   0x6   :  { %v1650_v16 = vld [vmem:[%s2210_s1 + $0x8c] ss:$16 sps:$4 sm:$0xff]   ;;  %v1656_v17 = vld [vmem:[%s2210_s1 + $0x60] ss:$16 sps:$4 sm:$0xff]   ;;  %v1662_v18 = vld [vmem:[%s2210_s1 + $0x44] ss:$16 sps:$4 sm:$0xff]  }
   0x7   :  { %231 = vmatpush1.bf16.msra.mxu0 %v1580_v4  ;;  %272 = vmatpush1.bf16.msra.mxu1 %v1620_v11  ;;  %v1668_v19 = vld [vmem:[%s2210_s1 + $0x88] ss:$16 sps:$4 sm:$0xff]   ;;  %v1674_v20 = vld [vmem:[%s2210_s1 + $0x6c] ss:$16 sps:$4 sm:$0xff]   ;;  %v1679_v21 = vld [vmem:[%s2210_s1 + $0x40] ss:$16 sps:$4 sm:$0xff]  }
   0x8   :  { %232 = vmatprep.subr.bf16.mxu0 %v1586_v5  ;;  %273 = vmatprep.subr.bf16.mxu1 %v1637_v14  ;;  %v1685_v22 = vld [vmem:[%s2210_s1 + $0x24] ss:$16 sps:$4 sm:$0xff]   ;;  %v1692_v23 = vld [vmem:[%s2210_s1 + $0x68] ss:$16 sps:$4 sm:$0xff]   ;;  %v1698_v24 = vld [vmem:[%s2210_s1 + $0x4c] ss:$16 sps:$4 sm:$0xff]  }
   0x9   :  { %v1704_v25 = vld [vmem:[%s2210_s1 + $0x20] ss:$16 sps:$4 sm:$0xff]   ;;  %v1710_v26 = vld [vmem:[%s2210_s1 + $0x4] ss:$16 sps:$4 sm:$0xff]   ;;  %v1716_v27 = vld [vmem:[%s2210_s1 + $0x48] ss:$16 sps:$4 sm:$0xff]  }
   0xa   :  { %v1722_v28 = vld [vmem:[%s2210_s1 + $0x2c] ss:$16 sps:$4 sm:$0xff]   ;;  %v1728_v29 = vld [vmem:[%s2210_s1] ss:$16 sps:$4 sm:$0xff]   ;;  %v1738_v31 = vld [vmem:[%s2210_s1 + $0x28] ss:$16 sps:$4 sm:$0xff]  }
   0xb   :  { %233 = vmatpush1.bf16.msra.mxu0 %v1602_v8  ;;  %274 = vmatpush1.bf16.msra.mxu1 %v1644_v15  ;;  %v25_v30 = vld [vmem:[%s2211_s2] sm:$0xff]  ;;  %v1744_v32 = vld [vmem:[%s2210_s1 + $0xc] ss:$16 sps:$4 sm:$0xff]   ;;  %v1751_v34 = vld [vmem:[%s2210_s1 + $0x8] ss:$16 sps:$4 sm:$0xff]  }
   0xc   :  { %234 = vmatprep.subr.bf16.mxu0 %v1609_v9  ;;  %275 = vmatprep.subr.bf16.mxu1 %v1650_v16  ;;  %v67_v33 = vpack.c.bf16 %v25_v30, %v25_v30  ;;  %v63_v35 = vld [vmem:[%s2212_s0] sm:$0xff]  ;;  %v64_v37 = vld [vmem:[%s2212_s0 + $0x8] sm:$0xff]  ;;  %v66_v47 = vld [vmem:[%s2212_s0 + $0x18] sm:$0xff] }
   0xd   :  { %v65_v50 = vld [vmem:[%s2212_s0 + $0x10] sm:$0xff]  ;;  %v27_v61 = vld [vmem:[%s2213_s3] sm:$0xff] }
   0xf   :  { %235 = vmatpush1.bf16.msra.mxu0 %v1627_v12  ;;  %276 = vmatpush1.bf16.msra.mxu1 %v1668_v19 }
  0x10   :  { %236 = vmatprep.subr.bf16.mxu0 %v1632_v13  ;;  %277 = vmatprep.subr.bf16.mxu1 %v1674_v20 }
  0x13   :  { %237 = vmatpush1.bf16.msra.mxu0 %v1656_v17  ;;  %278 = vmatpush1.bf16.msra.mxu1 %v1692_v23 }
  0x14   :  { %238 = vmatprep.subr.bf16.mxu0 %v1662_v18  ;;  %279 = vmatprep.subr.bf16.mxu1 %v1698_v24 }
  0x17   :  { %239 = vmatpush1.bf16.msra.mxu0 %v1679_v21  ;;  %280 = vmatpush1.bf16.msra.mxu1 %v1716_v27 }
  0x18   :  { %240 = vmatprep.subr.bf16.mxu0 %v1685_v22  ;;  %281 = vmatprep.subr.bf16.mxu1 %v1722_v28 }
  0x1b   :  { %241 = vmatpush1.bf16.msra.mxu0 %v1704_v25  ;;  %282 = vmatpush1.bf16.msra.mxu1 %v1738_v31 }
  0x1c   :  { %242 = vmatprep.subr.bf16.mxu0 %v1710_v26  ;;  %283 = vmatprep.subr.bf16.mxu1 %v1744_v32 }
  0x1f   :  { %243 = vmatpush1.bf16.msra.mxu0 %v1728_v29  ;;  %284 = vmatpush1.bf16.msra.mxu1 %v1751_v34 }
  0x20   :  { %350 = vmatprep.subr.bf16.mxu0 %v1561_v0  ;;  %391 = vmatprep.subr.bf16.mxu1 %v1591_v6 }
  0x22   :  { %261 = vmatmul.mubr.bf16.vlgmr.msra.gmra.mxu0 %v67_v33  ;;  %302 = vmatmul.mubr.bf16.vlgmr.msra.gmra.mxu1 %v67_v33 }
  0x23   :  { %351 = vmatpush1.bf16.msra.mxu0 %v1568_v2  ;;  %382 = vmatprep.mubr.bf16.mxu0 %v1522_v1 }
  0x24   :  { %352 = vmatprep.subr.bf16.mxu0 %v1574_v3  ;;  %392 = vmatpush1.bf16.msra.mxu1 %v1596_v7 }
  0x25   :  { %393 = vmatprep.subr.bf16.mxu1 %v1615_v10  ;;  %423 = vmatprep.mubr.bf16.mxu1 %v1522_v1 }
  0x27   :  { %353 = vmatpush1.bf16.msra.mxu0 %v1580_v4 }
  0x28   :  { %354 = vmatprep.subr.bf16.mxu0 %v1586_v5  ;;  %394 = vmatpush1.bf16.msra.mxu1 %v1620_v11 }
  0x29   :  { %395 = vmatprep.subr.bf16.mxu1 %v1637_v14 }
  0x2b   :  { %355 = vmatpush1.bf16.msra.mxu0 %v1602_v8 }
  0x2c   :  { %356 = vmatprep.subr.bf16.mxu0 %v1609_v9  ;;  %396 = vmatpush1.bf16.msra.mxu1 %v1644_v15 }
  0x2d   :  { %397 = vmatprep.subr.bf16.mxu1 %v1650_v16 }
  0x2f   :  { %357 = vmatpush1.bf16.msra.mxu0 %v1627_v12 }
  0x30   :  { %358 = vmatprep.subr.bf16.mxu0 %v1632_v13  ;;  %398 = vmatpush1.bf16.msra.mxu1 %v1668_v19 }
  0x31   :  { %399 = vmatprep.subr.bf16.mxu1 %v1674_v20 }
  0x33   :  { %359 = vmatpush1.bf16.msra.mxu0 %v1656_v17 }
  0x34   :  { %360 = vmatprep.subr.bf16.mxu0 %v1662_v18  ;;  %400 = vmatpush1.bf16.msra.mxu1 %v1692_v23 }
  0x35   :  { %401 = vmatprep.subr.bf16.mxu1 %v1698_v24 }
  0x37   :  { %361 = vmatpush1.bf16.msra.mxu0 %v1679_v21 }
  0x38   :  { %362 = vmatprep.subr.bf16.mxu0 %v1685_v22  ;;  %402 = vmatpush1.bf16.msra.mxu1 %v1716_v27 }
  0x39   :  { %403 = vmatprep.subr.bf16.mxu1 %v1722_v28 }
  0x3b   :  { %363 = vmatpush1.bf16.msra.mxu0 %v1704_v25 }
  0x3c   :  { %364 = vmatprep.subr.bf16.mxu0 %v1710_v26  ;;  %404 = vmatpush1.bf16.msra.mxu1 %v1738_v31 }
  0x3d   :  { %405 = vmatprep.subr.bf16.mxu1 %v1744_v32 }
  0x3f   :  { %365 = vmatpush1.bf16.msra.mxu0 %v1728_v29 }
  0x40   :  { %473 = vmatprep.subr.bf16.mxu0 %v1561_v0  ;;  %406 = vmatpush1.bf16.msra.mxu1 %v1751_v34 }
  0x41   :  { %514 = vmatprep.subr.bf16.mxu1 %v1591_v6 }
  0xe2   :  { %v262_v36 = vpop.f32.mrf.mxu0  ;;  %v303_v44 = vpop.f32.mrf.mxu1 }
  0xe3   :  { %v310_v38 = vadd.f32 %v262_v36, %v63_v35  ;;  %v312_v52 = vadd.f32 %v303_v44, %v65_v50 }
  0xe4   :  { %v264_v39 = vpop.f32.mrf.mxu0  ;;  %v305_v46 = vpop.f32.mrf.mxu1 }
  0xe5   :  { %v1254_v40 = vmul.f32 -1.442695, %v310_v38  ;;  %v311_v41 = vadd.f32 %v264_v39, %v64_v37  ;;  %v313_v51 = vadd.f32 %v305_v46, %v66_v47 }
  0xe6   :  { %v266_v42 = vpop.f32.mrf.mxu0  ;;  %v307_v48 = vpop.f32.mrf.mxu1 }
  0xe7   :  { %1362 = vpow2.f32 %v1254_v40  ;;  %v1255_v43 = vmul.f32 -1.442695, %v311_v41  ;;  %v1256_v53 = vmul.f32 -1.442695, %v313_v51  ;;  %v1257_v40 = vld [vmem:[%s2212_s0 + $0x20] sm:$0xff] }
  0xe8   :  { %v267_v45 = vpop.f32.mrf.mxu0  ;;  %v308_v49 = vpop.f32.mrf.mxu1 }
  0xe9   :  { %1364 = vpow2.f32 %v1255_v43  ;;  %v1258_v43 = vld [vmem:[%s2212_s0 + $0x28] sm:$0xff] }
  0xea   :  { %1366 = vtanh.f32 %v312_v52 }
  0xeb   :  { %1368 = vpow2.f32 %v1256_v53 }
  0xf4   :  { %v1363_v54 = vpop.eup %1362 }
  0xf5   :  { %v317_v55 = vadd.f32 1.0, %v1363_v54  ;;  %v1260_v54 = vld [vmem:[%s2212_s0 + $0x38] sm:$0xff] }
  0xf6   :  { %v1365_v56 = vpop.eup %1364 }
  0xf7   :  { %1370 = vrcp.f32 %v317_v55  ;;  %v323_v57 = vadd.f32 1.0, %v1365_v56  ;;  %v1367_v58 = vpop.eup %1366  ;;  %v1259_v56 = vld [vmem:[%s2212_s0 + $0x30] sm:$0xff] }
  0xf8   :  { %v1369_v59 = vpop.eup %1368 }
  0xf9   :  { %1372 = vrcp.f32 %v323_v57  ;;  %v330_v63 = vadd.f32 1.0, %v1369_v59 }
  0xfb   :  { %1374 = vrcp.f32 %v330_v63 }
 0x104   :  { %v1371_v60 = vpop.eup %1370 }
 0x105   :  { %v334_v33 = vmul.f32 %v1371_v60, %v1367_v58 }
 0x106   :  { %v1373_v62 = vpop.eup %1372 }
 0x107   :  { %v333_v30 = vmul.f32 %v1373_v62, %v27_v61 }
 0x108   :  { %v1375_v36 = vpop.eup %1374 }
 0x109   :  { %v1806_v35 = vadd.f32 %v334_v33, %v333_v30 }
 0x10b   :  { %1376 = vtanh.f32 %v1806_v35 }
 0x118   :  { %v1377_v37 = vpop.eup %1376 }
 0x119   :  { %v337_v38 = vmul.f32 %v1377_v37, %v1375_v36 }
 0x11b   :  { %v340_v39 = vpack.c.bf16 %v337_v38, %v337_v38 }
 0x11d   :  { %341 = vst [vmem:[%s2214_s4] sm:$0xf] %v340_v39  ;;  %383 = vmatmul.mubr.bf16.vlgmr.msra.gmra.mxu0 %v340_v39  ;;  %424 = vmatmul.mubr.bf16.vlgmr.msra.gmra.mxu1 %v340_v39 }
 0x11e   :  { %474 = vmatpush1.bf16.msra.mxu0 %v1568_v2  ;;  %515 = vmatpush1.bf16.msra.mxu1 %v1596_v7 }
 0x11f   :  { %475 = vmatprep.subr.bf16.mxu0 %v1574_v3  ;;  %516 = vmatprep.subr.bf16.mxu1 %v1615_v10 }
 0x120   :  { %505 = vmatprep.mubr.bf16.mxu0 %v1522_v1  ;;  %546 = vmatprep.mubr.bf16.mxu1 %v1522_v1 }
 0x122   :  { %476 = vmatpush1.bf16.msra.mxu0 %v1580_v4  ;;  %517 = vmatpush1.bf16.msra.mxu1 %v1620_v11 }
 0x123   :  { %477 = vmatprep.subr.bf16.mxu0 %v1586_v5  ;;  %518 = vmatprep.subr.bf16.mxu1 %v1637_v14 }
 0x126   :  { %478 = vmatpush1.bf16.msra.mxu0 %v1602_v8  ;;  %519 = vmatpush1.bf16.msra.mxu1 %v1644_v15 }
 0x127   :  { %479 = vmatprep.subr.bf16.mxu0 %v1609_v9  ;;  %520 = vmatprep.subr.bf16.mxu1 %v1650_v16 }
 0x12a   :  { %480 = vmatpush1.bf16.msra.mxu0 %v1627_v12  ;;  %521 = vmatpush1.bf16.msra.mxu1 %v1668_v19 }
 0x12b   :  { %481 = vmatprep.subr.bf16.mxu0 %v1632_v13  ;;  %522 = vmatprep.subr.bf16.mxu1 %v1674_v20 }
 0x12e   :  { %482 = vmatpush1.bf16.msra.mxu0 %v1656_v17  ;;  %523 = vmatpush1.bf16.msra.mxu1 %v1692_v23 }
 0x12f   :  { %483 = vmatprep.subr.bf16.mxu0 %v1662_v18  ;;  %524 = vmatprep.subr.bf16.mxu1 %v1698_v24 }
 0x132   :  { %484 = vmatpush1.bf16.msra.mxu0 %v1679_v21  ;;  %525 = vmatpush1.bf16.msra.mxu1 %v1716_v27 }
 0x133   :  { %485 = vmatprep.subr.bf16.mxu0 %v1685_v22  ;;  %526 = vmatprep.subr.bf16.mxu1 %v1722_v28 }
 0x136   :  { %486 = vmatpush1.bf16.msra.mxu0 %v1704_v25  ;;  %527 = vmatpush1.bf16.msra.mxu1 %v1738_v31 }
 0x137   :  { %487 = vmatprep.subr.bf16.mxu0 %v1710_v26  ;;  %528 = vmatprep.subr.bf16.mxu1 %v1744_v32 }
 0x13a   :  { %488 = vmatpush1.bf16.msra.mxu0 %v1728_v29  ;;  %529 = vmatpush1.bf16.msra.mxu1 %v1751_v34 }
 0x13b   :  { %596 = vmatprep.subr.bf16.mxu0 %v1561_v0  ;;  %637 = vmatprep.subr.bf16.mxu1 %v1591_v6 }
 0x1dd   :  { %v384_v41 = vpop.f32.mrf.mxu0  ;;  %v425_v42 = vpop.f32.mrf.mxu1 }
 0x1de   :  { %v432_v44 = vadd.f32 %v1257_v40, %v384_v41  ;;  %v434_v59 = vadd.f32 %v1259_v56, %v425_v42 }
 0x1df   :  { %v386_v45 = vpop.f32.mrf.mxu0  ;;  %v427_v46 = vpop.f32.mrf.mxu1 }
 0x1e0   :  { %v1261_v47 = vmul.f32 -1.442695, %v432_v44  ;;  %v433_v48 = vadd.f32 %v1258_v43, %v386_v45  ;;  %v435_v55 = vadd.f32 %v1260_v54, %v427_v46 }
 0x1e1   :  { %v388_v49 = vpop.f32.mrf.mxu0  ;;  %v429_v50 = vpop.f32.mrf.mxu1 }
 0x1e2   :  { %1378 = vpow2.f32 %v1261_v47  ;;  %v1262_v51 = vmul.f32 -1.442695, %v433_v48  ;;  %v1263_v57 = vmul.f32 -1.442695, %v435_v55  ;;  %v1266_v47 = vld [vmem:[%s2212_s0 + $0x48] sm:$0xff] }
 0x1e3   :  { %v389_v52 = vpop.f32.mrf.mxu0  ;;  %v430_v53 = vpop.f32.mrf.mxu1 }
 0x1e4   :  { %1380 = vpow2.f32 %v1262_v51 }
 0x1e5   :  { %1382 = vpow2.f32 %v1263_v57 }
 0x1ef   :  { %v1379_v58 = vpop.eup %1378 }
 0x1f0   :  { %v439_v60 = vadd.f32 1.0, %v1379_v58  ;;  %v1268_v58 = vld [vmem:[%s2212_s0 + $0x58] sm:$0xff] }
 0x1f1   :  { %v1381_v61 = vpop.eup %1380 }
 0x1f2   :  { %1384 = vrcp.f32 %v439_v60  ;;  %v445_v62 = vadd.f32 1.0, %v1381_v61  ;;  %v1383_v63 = vpop.eup %1382  ;;  %v1267_v60 = vld [vmem:[%s2212_s0 + $0x50] sm:$0xff] }
 0x1f3   :  { %1386 = vtanh.f32 %v434_v59  ;;  %v452_v37 = vadd.f32 1.0, %v1383_v63 }
 0x1f4   :  { %1388 = vrcp.f32 %v445_v62 }
 0x1f5   :  { %1390 = vrcp.f32 %v452_v37 }
 0x1ff   :  { %v1385_v30 = vpop.eup %1384 }
 0x200   :  { %v1387_v33 = vpop.eup %1386 }
 0x201   :  { %v1389_v36 = vpop.eup %1388  ;;  %v456_v38 = vmul.f32 %v1387_v33, %v1385_v30 }
 0x202   :  { %v455_v39 = vmul.f32 %v1389_v36, %v1806_v35  ;;  %v1391_v41 = vpop.eup %1390  ;;  %v1265_v35 = vld [vmem:[%s2212_s0 + $0x40] sm:$0xff] }
 0x204   :  { %v1859_v40 = vadd.f32 %v456_v38, %v455_v39 }
 0x206   :  { %1392 = vtanh.f32 %v1859_v40 }
 0x213   :  { %v1393_v42 = vpop.eup %1392 }
 0x214   :  { %v459_v43 = vmul.f32 %v1393_v42, %v1391_v41 }
 0x216   :  { %v462_v44 = vpack.c.bf16 %v459_v43, %v459_v43 }
 0x218   :  { %1264 = vst [vmem:[%s2214_s4 + $0x4] sm:$0xf] %v462_v44  ;;  %506 = vmatmul.mubr.bf16.vlgmr.msra.gmra.mxu0 %v462_v44  ;;  %547 = vmatmul.mubr.bf16.vlgmr.msra.gmra.mxu1 %v462_v44 }
 0x219   :  { %597 = vmatpush1.bf16.msra.mxu0 %v1568_v2  ;;  %638 = vmatpush1.bf16.msra.mxu1 %v1596_v7 }
 0x21a   :  { %598 = vmatprep.subr.bf16.mxu0 %v1574_v3  ;;  %639 = vmatprep.subr.bf16.mxu1 %v1615_v10 }
 0x21b   :  { %628 = vmatprep.mubr.bf16.mxu0 %v1522_v1  ;;  %669 = vmatprep.mubr.bf16.mxu1 %v1522_v1 }
 0x21d   :  { %599 = vmatpush1.bf16.msra.mxu0 %v1580_v4  ;;  %640 = vmatpush1.bf16.msra.mxu1 %v1620_v11 }
 0x21e   :  { %600 = vmatprep.subr.bf16.mxu0 %v1586_v5  ;;  %641 = vmatprep.subr.bf16.mxu1 %v1637_v14 }
 0x221   :  { %601 = vmatpush1.bf16.msra.mxu0 %v1602_v8  ;;  %642 = vmatpush1.bf16.msra.mxu1 %v1644_v15 }
 0x222   :  { %602 = vmatprep.subr.bf16.mxu0 %v1609_v9  ;;  %643 = vmatprep.subr.bf16.mxu1 %v1650_v16 }
 0x225   :  { %603 = vmatpush1.bf16.msra.mxu0 %v1627_v12  ;;  %644 = vmatpush1.bf16.msra.mxu1 %v1668_v19 }
 0x226   :  { %604 = vmatprep.subr.bf16.mxu0 %v1632_v13  ;;  %645 = vmatprep.subr.bf16.mxu1 %v1674_v20 }
 0x229   :  { %605 = vmatpush1.bf16.msra.mxu0 %v1656_v17  ;;  %646 = vmatpush1.bf16.msra.mxu1 %v1692_v23 }
 0x22a   :  { %606 = vmatprep.subr.bf16.mxu0 %v1662_v18  ;;  %647 = vmatprep.subr.bf16.mxu1 %v1698_v24 }
 0x22d   :  { %607 = vmatpush1.bf16.msra.mxu0 %v1679_v21  ;;  %648 = vmatpush1.bf16.msra.mxu1 %v1716_v27 }
 0x22e   :  { %608 = vmatprep.subr.bf16.mxu0 %v1685_v22  ;;  %649 = vmatprep.subr.bf16.mxu1 %v1722_v28 }
 0x231   :  { %609 = vmatpush1.bf16.msra.mxu0 %v1704_v25  ;;  %650 = vmatpush1.bf16.msra.mxu1 %v1738_v31 }
 0x232   :  { %610 = vmatprep.subr.bf16.mxu0 %v1710_v26  ;;  %651 = vmatprep.subr.bf16.mxu1 %v1744_v32 }
 0x235   :  { %611 = vmatpush1.bf16.msra.mxu0 %v1728_v29  ;;  %652 = vmatpush1.bf16.msra.mxu1 %v1751_v34 }
 0x236   :  { %719 = vmatprep.subr.bf16.mxu0 %v1561_v0  ;;  %760 = vmatprep.subr.bf16.mxu1 %v1591_v6 }
 0x2d8   :  { %v507_v45 = vpop.f32.mrf.mxu0  ;;  %v548_v46 = vpop.f32.mrf.mxu1 }
 0x2d9   :  { %v555_v48 = vadd.f32 %v1265_v35, %v507_v45  ;;  %v557_v63 = vadd.f32 %v1267_v60, %v548_v46 }
 0x2da   :  { %v509_v49 = vpop.f32.mrf.mxu0  ;;  %v550_v50 = vpop.f32.mrf.mxu1 }
 0x2db   :  { %v1269_v51 = vmul.f32 -1.442695, %v555_v48  ;;  %v556_v52 = vadd.f32 %v1266_v47, %v509_v49  ;;  %v558_v59 = vadd.f32 %v1268_v58, %v550_v50 }
 0x2dc   :  { %v511_v53 = vpop.f32.mrf.mxu0  ;;  %v552_v54 = vpop.f32.mrf.mxu1 }
 0x2dd   :  { %1394 = vpow2.f32 %v1269_v51  ;;  %v1270_v55 = vmul.f32 -1.442695, %v556_v52  ;;  %v1271_v61 = vmul.f32 -1.442695, %v558_v59  ;;  %v1274_v51 = vld [vmem:[%s2212_s0 + $0x68] sm:$0xff] }
 0x2de   :  { %v512_v56 = vpop.f32.mrf.mxu0  ;;  %v553_v57 = vpop.f32.mrf.mxu1 }
 0x2df   :  { %1396 = vpow2.f32 %v1270_v55 }
 0x2e0   :  { %1398 = vpow2.f32 %v1271_v61 }
 0x2ea   :  { %v1395_v62 = vpop.eup %1394 }
 0x2eb   :  { %v562_v30 = vadd.f32 1.0, %v1395_v62  ;;  %v1276_v62 = vld [vmem:[%s2212_s0 + $0x78] sm:$0xff] }
 0x2ec   :  { %v1397_v33 = vpop.eup %1396 }
 0x2ed   :  { %1400 = vrcp.f32 %v562_v30  ;;  %v568_v36 = vadd.f32 1.0, %v1397_v33  ;;  %v1399_v37 = vpop.eup %1398  ;;  %v1275_v30 = vld [vmem:[%s2212_s0 + $0x70] sm:$0xff] }
 0x2ee   :  { %1402 = vtanh.f32 %v557_v63  ;;  %v575_v42 = vadd.f32 1.0, %v1399_v37 }
 0x2ef   :  { %1404 = vrcp.f32 %v568_v36 }
 0x2f0   :  { %1406 = vrcp.f32 %v575_v42 }
 0x2fa   :  { %v1401_v38 = vpop.eup %1400 }
 0x2fb   :  { %v1403_v39 = vpop.eup %1402 }
 0x2fc   :  { %v1405_v41 = vpop.eup %1404  ;;  %v579_v43 = vmul.f32 %v1403_v39, %v1401_v38 }
 0x2fd   :  { %v578_v44 = vmul.f32 %v1405_v41, %v1859_v40  ;;  %v1407_v45 = vpop.eup %1406  ;;  %v1273_v40 = vld [vmem:[%s2212_s0 + $0x60] sm:$0xff] }
 0x2ff   :  { %v1912_v35 = vadd.f32 %v579_v43, %v578_v44 }
 0x301   :  { %1408 = vtanh.f32 %v1912_v35 }
 0x30e   :  { %v1409_v46 = vpop.eup %1408 }
 0x30f   :  { %v582_v47 = vmul.f32 %v1409_v46, %v1407_v45 }
 0x311   :  { %v585_v48 = vpack.c.bf16 %v582_v47, %v582_v47 }
 0x313   :  { %1272 = vst [vmem:[%s2214_s4 + $0x8] sm:$0xf] %v585_v48  ;;  %629 = vmatmul.mubr.bf16.vlgmr.msra.gmra.mxu0 %v585_v48  ;;  %670 = vmatmul.mubr.bf16.vlgmr.msra.gmra.mxu1 %v585_v48 }
 0x314   :  { %720 = vmatpush1.bf16.msra.mxu0 %v1568_v2  ;;  %761 = vmatpush1.bf16.msra.mxu1 %v1596_v7 }
 0x315   :  { %721 = vmatprep.subr.bf16.mxu0 %v1574_v3  ;;  %762 = vmatprep.subr.bf16.mxu1 %v1615_v10 }
 0x316   :  { %751 = vmatprep.mubr.bf16.mxu0 %v1522_v1  ;;  %792 = vmatprep.mubr.bf16.mxu1 %v1522_v1 }
 0x318   :  { %722 = vmatpush1.bf16.msra.mxu0 %v1580_v4  ;;  %763 = vmatpush1.bf16.msra.mxu1 %v1620_v11 }
 0x319   :  { %723 = vmatprep.subr.bf16.mxu0 %v1586_v5  ;;  %764 = vmatprep.subr.bf16.mxu1 %v1637_v14 }
 0x31c   :  { %724 = vmatpush1.bf16.msra.mxu0 %v1602_v8  ;;  %765 = vmatpush1.bf16.msra.mxu1 %v1644_v15 }
 0x31d   :  { %725 = vmatprep.subr.bf16.mxu0 %v1609_v9  ;;  %766 = vmatprep.subr.bf16.mxu1 %v1650_v16 }
 0x320   :  { %726 = vmatpush1.bf16.msra.mxu0 %v1627_v12  ;;  %767 = vmatpush1.bf16.msra.mxu1 %v1668_v19 }
 0x321   :  { %727 = vmatprep.subr.bf16.mxu0 %v1632_v13  ;;  %768 = vmatprep.subr.bf16.mxu1 %v1674_v20 }
 0x324   :  { %728 = vmatpush1.bf16.msra.mxu0 %v1656_v17  ;;  %769 = vmatpush1.bf16.msra.mxu1 %v1692_v23 }
 0x325   :  { %729 = vmatprep.subr.bf16.mxu0 %v1662_v18  ;;  %770 = vmatprep.subr.bf16.mxu1 %v1698_v24 }
 0x328   :  { %730 = vmatpush1.bf16.msra.mxu0 %v1679_v21  ;;  %771 = vmatpush1.bf16.msra.mxu1 %v1716_v27 }
 0x329   :  { %731 = vmatprep.subr.bf16.mxu0 %v1685_v22  ;;  %772 = vmatprep.subr.bf16.mxu1 %v1722_v28 }
 0x32c   :  { %732 = vmatpush1.bf16.msra.mxu0 %v1704_v25  ;;  %773 = vmatpush1.bf16.msra.mxu1 %v1738_v31 }
 0x32d   :  { %733 = vmatprep.subr.bf16.mxu0 %v1710_v26  ;;  %774 = vmatprep.subr.bf16.mxu1 %v1744_v32 }
 0x330   :  { %734 = vmatpush1.bf16.msra.mxu0 %v1728_v29  ;;  %775 = vmatpush1.bf16.msra.mxu1 %v1751_v34 }
 0x331   :  { %842 = vmatprep.subr.bf16.mxu0 %v1561_v0  ;;  %883 = vmatprep.subr.bf16.mxu1 %v1591_v6 }
 0x3d3   :  { %v630_v49 = vpop.f32.mrf.mxu0  ;;  %v671_v50 = vpop.f32.mrf.mxu1 }
 0x3d4   :  { %v678_v52 = vadd.f32 %v1273_v40, %v630_v49  ;;  %v680_v37 = vadd.f32 %v1275_v30, %v671_v50  ;;  %v1284_v30 = vld [vmem:[%s2212_s0 + $0x98] sm:$0xff] }
 0x3d5   :  { %v632_v53 = vpop.f32.mrf.mxu0  ;;  %v673_v54 = vpop.f32.mrf.mxu1 }
 0x3d6   :  { %v1277_v55 = vmul.f32 -1.442695, %v678_v52  ;;  %v679_v56 = vadd.f32 %v1274_v51, %v632_v53  ;;  %v681_v63 = vadd.f32 %v1276_v62, %v673_v54 }
 0x3d7   :  { %v634_v57 = vpop.f32.mrf.mxu0  ;;  %v675_v58 = vpop.f32.mrf.mxu1 }
 0x3d8   :  { %1410 = vpow2.f32 %v1277_v55  ;;  %v1278_v59 = vmul.f32 -1.442695, %v679_v56  ;;  %v1279_v33 = vmul.f32 -1.442695, %v681_v63  ;;  %v1282_v55 = vld [vmem:[%s2212_s0 + $0x88] sm:$0xff] }
 0x3d9   :  { %v635_v60 = vpop.f32.mrf.mxu0  ;;  %v676_v61 = vpop.f32.mrf.mxu1 }
 0x3da   :  { %1412 = vpow2.f32 %v1278_v59 }
 0x3db   :  { %1414 = vpow2.f32 %v1279_v33 }
 0x3e5   :  { %v1411_v36 = vpop.eup %1410 }
 0x3e6   :  { %v685_v38 = vadd.f32 1.0, %v1411_v36  ;;  %v1283_v36 = vld [vmem:[%s2212_s0 + $0x90] sm:$0xff] }
 0x3e7   :  { %v1413_v39 = vpop.eup %1412 }
 0x3e8   :  { %1416 = vrcp.f32 %v685_v38  ;;  %v691_v41 = vadd.f32 1.0, %v1413_v39  ;;  %v1415_v42 = vpop.eup %1414 }
 0x3e9   :  { %1418 = vtanh.f32 %v680_v37  ;;  %v698_v46 = vadd.f32 1.0, %v1415_v42 }
 0x3ea   :  { %1420 = vrcp.f32 %v691_v41 }
 0x3eb   :  { %1422 = vrcp.f32 %v698_v46 }
 0x3f5   :  { %v1417_v43 = vpop.eup %1416 }
 0x3f6   :  { %v1419_v44 = vpop.eup %1418 }
 0x3f7   :  { %v1421_v45 = vpop.eup %1420  ;;  %v702_v47 = vmul.f32 %v1419_v44, %v1417_v43 }
 0x3f8   :  { %v701_v48 = vmul.f32 %v1421_v45, %v1912_v35  ;;  %v1423_v49 = vpop.eup %1422  ;;  %v1281_v35 = vld [vmem:[%s2212_s0 + $0x80] sm:$0xff] }
 0x3fa   :  { %v1965_v40 = vadd.f32 %v702_v47, %v701_v48 }
 0x3fc   :  { %1424 = vtanh.f32 %v1965_v40 }
 0x409   :  { %v1425_v50 = vpop.eup %1424 }
 0x40a   :  { %v705_v51 = vmul.f32 %v1425_v50, %v1423_v49 }
 0x40c   :  { %v708_v52 = vpack.c.bf16 %v705_v51, %v705_v51 }
 0x40e   :  { %1280 = vst [vmem:[%s2214_s4 + $0xc] sm:$0xf] %v708_v52  ;;  %752 = vmatmul.mubr.bf16.vlgmr.msra.gmra.mxu0 %v708_v52  ;;  %793 = vmatmul.mubr.bf16.vlgmr.msra.gmra.mxu1 %v708_v52 }
 0x40f   :  { %843 = vmatpush1.bf16.msra.mxu0 %v1568_v2  ;;  %884 = vmatpush1.bf16.msra.mxu1 %v1596_v7 }
 0x410   :  { %844 = vmatprep.subr.bf16.mxu0 %v1574_v3  ;;  %885 = vmatprep.subr.bf16.mxu1 %v1615_v10 }
 0x411   :  { %874 = vmatprep.mubr.bf16.mxu0 %v1522_v1  ;;  %915 = vmatprep.mubr.bf16.mxu1 %v1522_v1 }
 0x413   :  { %845 = vmatpush1.bf16.msra.mxu0 %v1580_v4  ;;  %886 = vmatpush1.bf16.msra.mxu1 %v1620_v11 }
 0x414   :  { %846 = vmatprep.subr.bf16.mxu0 %v1586_v5  ;;  %887 = vmatprep.subr.bf16.mxu1 %v1637_v14 }
 0x417   :  { %847 = vmatpush1.bf16.msra.mxu0 %v1602_v8  ;;  %888 = vmatpush1.bf16.msra.mxu1 %v1644_v15 }
 0x418   :  { %848 = vmatprep.subr.bf16.mxu0 %v1609_v9  ;;  %889 = vmatprep.subr.bf16.mxu1 %v1650_v16 }
 0x41b   :  { %849 = vmatpush1.bf16.msra.mxu0 %v1627_v12  ;;  %890 = vmatpush1.bf16.msra.mxu1 %v1668_v19 }
 0x41c   :  { %850 = vmatprep.subr.bf16.mxu0 %v1632_v13  ;;  %891 = vmatprep.subr.bf16.mxu1 %v1674_v20 }
 0x41f   :  { %851 = vmatpush1.bf16.msra.mxu0 %v1656_v17  ;;  %892 = vmatpush1.bf16.msra.mxu1 %v1692_v23 }
 0x420   :  { %852 = vmatprep.subr.bf16.mxu0 %v1662_v18  ;;  %893 = vmatprep.subr.bf16.mxu1 %v1698_v24 }
 0x423   :  { %853 = vmatpush1.bf16.msra.mxu0 %v1679_v21  ;;  %894 = vmatpush1.bf16.msra.mxu1 %v1716_v27 }
 0x424   :  { %854 = vmatprep.subr.bf16.mxu0 %v1685_v22  ;;  %895 = vmatprep.subr.bf16.mxu1 %v1722_v28 }
 0x427   :  { %855 = vmatpush1.bf16.msra.mxu0 %v1704_v25  ;;  %896 = vmatpush1.bf16.msra.mxu1 %v1738_v31 }
 0x428   :  { %856 = vmatprep.subr.bf16.mxu0 %v1710_v26  ;;  %897 = vmatprep.subr.bf16.mxu1 %v1744_v32 }
 0x42b   :  { %857 = vmatpush1.bf16.msra.mxu0 %v1728_v29  ;;  %898 = vmatpush1.bf16.msra.mxu1 %v1751_v34 }
 0x42c   :  { %965 = vmatprep.subr.bf16.mxu0 %v1561_v0  ;;  %1006 = vmatprep.subr.bf16.mxu1 %v1591_v6 }
 0x4ce   :  { %v753_v53 = vpop.f32.mrf.mxu0  ;;  %v794_v54 = vpop.f32.mrf.mxu1 }
 0x4cf   :  { %v801_v56 = vadd.f32 %v1281_v35, %v753_v53  ;;  %v803_v39 = vadd.f32 %v1283_v36, %v794_v54  ;;  %v1499_v36 = vld [vmem:[%s2210_s1 + $0xac] ss:$16 sps:$4 sm:$0xff]  }
 0x4d0   :  { %v755_v57 = vpop.f32.mrf.mxu0  ;;  %v796_v58 = vpop.f32.mrf.mxu1 }
 0x4d1   :  { %v1285_v59 = vmul.f32 -1.442695, %v801_v56  ;;  %v802_v60 = vadd.f32 %v1282_v55, %v755_v57  ;;  %v804_v33 = vadd.f32 %v1284_v30, %v796_v58  ;;  %v1497_v30 = vld [vmem:[%s2210_s1 + $0xc8] ss:$16 sps:$4 sm:$0xff]  }
 0x4d2   :  { %v757_v61 = vpop.f32.mrf.mxu0  ;;  %v798_v62 = vpop.f32.mrf.mxu1 }
 0x4d3   :  { %1426 = vpow2.f32 %v1285_v59  ;;  %v1286_v0 = vmul.f32 -1.442695, %v802_v60  ;;  %v1287_v37 = vmul.f32 -1.442695, %v804_v33  ;;  %v1492_v61 = vld [vmem:[%s2210_s1 + $0xe0] ss:$16 sps:$4 sm:$0xff]  }
 0x4d4   :  { %v758_v6 = vpop.f32.mrf.mxu0  ;;  %v799_v63 = vpop.f32.mrf.mxu1  ;;  %v1493_v62 = vld [vmem:[%s2210_s1 + $0xe8] ss:$16 sps:$4 sm:$0xff]   ;;  %v1498_v33 = vld [vmem:[%s2210_s1 + $0xa4] ss:$16 sps:$4 sm:$0xff]  }
 0x4d5   :  { %1428 = vpow2.f32 %v1286_v0  ;;  %v1494_v0 = vld [vmem:[%s2210_s1 + $0xc4] ss:$16 sps:$4 sm:$0xff]   ;;  %v1495_v6 = vld [vmem:[%s2210_s1 + $0xcc] ss:$16 sps:$4 sm:$0xff]   ;;  %v1496_v63 = vld [vmem:[%s2210_s1 + $0xc0] ss:$16 sps:$4 sm:$0xff]  }
 0x4d6   :  { %1430 = vpow2.f32 %v1287_v37  ;;  %v1501_v37 = vld [vmem:[%s2210_s1 + $0xa8] ss:$16 sps:$4 sm:$0xff]  }
 0x4e0   :  { %v1427_v38 = vpop.eup %1426 }
 0x4e1   :  { %v808_v41 = vadd.f32 1.0, %v1427_v38  ;;  %v1502_v38 = vld [vmem:[%s2210_s1 + $0x84] ss:$16 sps:$4 sm:$0xff]  }
 0x4e2   :  { %v1429_v42 = vpop.eup %1428 }
 0x4e3   :  { %1432 = vrcp.f32 %v808_v41  ;;  %v814_v43 = vadd.f32 1.0, %v1429_v42  ;;  %v1431_v44 = vpop.eup %1430  ;;  %v1504_v41 = vld [vmem:[%s2210_s1 + $0x80] ss:$16 sps:$4 sm:$0xff]   ;;  %v1505_v42 = vld [vmem:[%s2210_s1 + $0x88] ss:$16 sps:$4 sm:$0xff]  }
 0x4e4   :  { %1434 = vtanh.f32 %v803_v39  ;;  %v821_v48 = vadd.f32 1.0, %v1431_v44  ;;  %v1503_v39 = vld [vmem:[%s2210_s1 + $0x8c] ss:$16 sps:$4 sm:$0xff]  }
 0x4e5   :  { %1436 = vrcp.f32 %v814_v43  ;;  %v1506_v43 = vld [vmem:[%s2210_s1 + $0x64] ss:$16 sps:$4 sm:$0xff]   ;;  %v1507_v44 = vld [vmem:[%s2210_s1 + $0x6c] ss:$16 sps:$4 sm:$0xff]  }
 0x4e6   :  { %1438 = vrcp.f32 %v821_v48  ;;  %v1511_v48 = vld [vmem:[%s2210_s1 + $0x4c] ss:$16 sps:$4 sm:$0xff]  }
 0x4f0   :  { %v1433_v45 = vpop.eup %1432 }
 0x4f1   :  { %v1435_v46 = vpop.eup %1434 }
 0x4f2   :  { %v1437_v47 = vpop.eup %1436  ;;  %v825_v49 = vmul.f32 %v1435_v46, %v1433_v45  ;;  %v1508_v45 = vld [vmem:[%s2210_s1 + $0x60] ss:$16 sps:$4 sm:$0xff]   ;;  %v1509_v46 = vld [vmem:[%s2210_s1 + $0x68] ss:$16 sps:$4 sm:$0xff]  }
 0x4f3   :  { %v824_v50 = vmul.f32 %v1437_v47, %v1965_v40  ;;  %v1439_v52 = vpop.eup %1438  ;;  %v1510_v47 = vld [vmem:[%s2210_s1 + $0x44] ss:$16 sps:$4 sm:$0xff]  }
 0x4f5   :  { %v2018_v51 = vadd.f32 %v825_v49, %v824_v50  ;;  %v1512_v49 = vld [vmem:[%s2210_s1 + $0x40] ss:$16 sps:$4 sm:$0xff]   ;;  %v1513_v50 = vld [vmem:[%s2210_s1 + $0x48] ss:$16 sps:$4 sm:$0xff]  }
 0x4f7   :  { %1440 = vtanh.f32 %v2018_v51 }
 0x504   :  { %v1441_v35 = vpop.eup %1440 }
 0x505   :  { %v828_v53 = vmul.f32 %v1441_v35, %v1439_v52  ;;  %v1515_v52 = vld [vmem:[%s2210_s1 + $0x2c] ss:$16 sps:$4 sm:$0xff]   ;;  %v1516_v35 = vld [vmem:[%s2210_s1 + $0x20] ss:$16 sps:$4 sm:$0xff]  }
 0x507   :  { %v831_v54 = vpack.c.bf16 %v828_v53, %v828_v53  ;;  %v1517_v53 = vld [vmem:[%s2210_s1 + $0x28] ss:$16 sps:$4 sm:$0xff]  }
 0x509   :  { %1288 = vst [vmem:[%s2214_s4 + $0x10] sm:$0xf] %v831_v54  ;;  %875 = vmatmul.mubr.bf16.vlgmr.msra.gmra.mxu0 %v831_v54  ;;  %916 = vmatmul.mubr.bf16.vlgmr.msra.gmra.mxu1 %v831_v54  ;;  %v1518_v54 = vld [vmem:[%s2210_s1 + $0x4] ss:$16 sps:$4 sm:$0xff]  }
 0x50a   :  { %966 = vmatpush1.bf16.msra.mxu0 %v1568_v2  ;;  %1007 = vmatpush1.bf16.msra.mxu1 %v1596_v7  ;;  %v1490_v2 = vld [vmem:[%s2210_s1 + $0xe4] ss:$16 sps:$4 sm:$0xff]  }
 0x50b   :  { %967 = vmatprep.subr.bf16.mxu0 %v1574_v3  ;;  %1008 = vmatprep.subr.bf16.mxu1 %v1615_v10  ;;  %v1491_v3 = vld [vmem:[%s2210_s1 + $0xec] ss:$16 sps:$4 sm:$0xff]  }
 0x50c   :  { %997 = vmatprep.mubr.bf16.mxu0 %v1522_v1  ;;  %1038 = vmatprep.mubr.bf16.mxu1 %v1522_v1 }
 0x50e   :  { %968 = vmatpush1.bf16.msra.mxu0 %v1580_v4  ;;  %1009 = vmatpush1.bf16.msra.mxu1 %v1620_v11  ;;  %v1289_v4 = vld [vmem:[%s2212_s0 + $0xa0] sm:$0xff] }
 0x50f   :  { %969 = vmatprep.subr.bf16.mxu0 %v1586_v5  ;;  %1010 = vmatprep.subr.bf16.mxu1 %v1637_v14 }
 0x512   :  { %970 = vmatpush1.bf16.msra.mxu0 %v1602_v8  ;;  %1011 = vmatpush1.bf16.msra.mxu1 %v1644_v15  ;;  %v1290_v8 = vld [vmem:[%s2212_s0 + $0xa8] sm:$0xff] }
 0x513   :  { %971 = vmatprep.subr.bf16.mxu0 %v1609_v9  ;;  %1012 = vmatprep.subr.bf16.mxu1 %v1650_v16 }
 0x516   :  { %972 = vmatpush1.bf16.msra.mxu0 %v1627_v12  ;;  %1013 = vmatpush1.bf16.msra.mxu1 %v1668_v19  ;;  %v1292_v19 = vld [vmem:[%s2212_s0 + $0xb8] sm:$0xff] }
 0x517   :  { %973 = vmatprep.subr.bf16.mxu0 %v1632_v13  ;;  %1014 = vmatprep.subr.bf16.mxu1 %v1674_v20 }
 0x51a   :  { %974 = vmatpush1.bf16.msra.mxu0 %v1656_v17  ;;  %1015 = vmatpush1.bf16.msra.mxu1 %v1692_v23 }
 0x51b   :  { %975 = vmatprep.subr.bf16.mxu0 %v1662_v18  ;;  %1016 = vmatprep.subr.bf16.mxu1 %v1698_v24 }
 0x51e   :  { %976 = vmatpush1.bf16.msra.mxu0 %v1679_v21  ;;  %1017 = vmatpush1.bf16.msra.mxu1 %v1716_v27  ;;  %v1291_v21 = vld [vmem:[%s2212_s0 + $0xb0] sm:$0xff] }
 0x51f   :  { %977 = vmatprep.subr.bf16.mxu0 %v1685_v22  ;;  %1018 = vmatprep.subr.bf16.mxu1 %v1722_v28 }
 0x522   :  { %978 = vmatpush1.bf16.msra.mxu0 %v1704_v25  ;;  %1019 = vmatpush1.bf16.msra.mxu1 %v1738_v31 }
 0x523   :  { %979 = vmatprep.subr.bf16.mxu0 %v1710_v26  ;;  %1020 = vmatprep.subr.bf16.mxu1 %v1744_v32 }
 0x526   :  { %980 = vmatpush1.bf16.msra.mxu0 %v1728_v29  ;;  %1021 = vmatpush1.bf16.msra.mxu1 %v1751_v34 }
 0x527   :  { %1088 = vmatprep.subr.bf16.mxu0 %v1490_v2  ;;  %1129 = vmatprep.subr.bf16.mxu1 %v1491_v3  ;;  %v1519_v2 = vld [vmem:[%s2210_s1 + $0xc] ss:$16 sps:$4 sm:$0xff]   ;;  %v1520_v3 = vld [vmem:[%s2210_s1] ss:$16 sps:$4 sm:$0xff]  }
 0x5c9   :  { %v876_v5 = vpop.f32.mrf.mxu0  ;;  %v917_v7 = vpop.f32.mrf.mxu1 }
 0x5ca   :  { %v924_v9 = vadd.f32 %v1289_v4, %v876_v5  ;;  %v926_v24 = vadd.f32 %v1291_v21, %v917_v7  ;;  %v1521_v4 = vld [vmem:[%s2210_s1 + $0x8] ss:$16 sps:$4 sm:$0xff]   ;;  %v1297_v5 = vld [vmem:[%s2212_s0 + $0xc0] sm:$0xff] }
 0x5cb   :  { %v878_v10 = vpop.f32.mrf.mxu0  ;;  %v919_v11 = vpop.f32.mrf.mxu1 }
 0x5cc   :  { %v1293_v12 = vmul.f32 -1.442695, %v924_v9  ;;  %v925_v13 = vadd.f32 %v1290_v8, %v878_v10  ;;  %v927_v20 = vadd.f32 %v1292_v19, %v919_v11  ;;  %v1298_v9 = vld [vmem:[%s2212_s0 + $0xc8] sm:$0xff] }
 0x5cd   :  { %v880_v14 = vpop.f32.mrf.mxu0  ;;  %v921_v15 = vpop.f32.mrf.mxu1 }
 0x5ce   :  { %1442 = vpow2.f32 %v1293_v12  ;;  %v1294_v16 = vmul.f32 -1.442695, %v925_v13  ;;  %v1295_v22 = vmul.f32 -1.442695, %v927_v20  ;;  %v1300_v20 = vld [vmem:[%s2212_s0 + $0xd8] sm:$0xff] }
 0x5cf   :  { %v881_v17 = vpop.f32.mrf.mxu0  ;;  %v922_v18 = vpop.f32.mrf.mxu1 }
 0x5d0   :  { %1444 = vpow2.f32 %v1294_v16 }
 0x5d1   :  { %1446 = vpow2.f32 %v1295_v22  ;;  %v1299_v22 = vld [vmem:[%s2212_s0 + $0xd0] sm:$0xff] }
 0x5db   :  { %v1443_v23 = vpop.eup %1442 }
 0x5dc   :  { %v931_v25 = vadd.f32 1.0, %v1443_v23 }
 0x5dd   :  { %v1445_v26 = vpop.eup %1444 }
 0x5de   :  { %1448 = vrcp.f32 %v931_v25  ;;  %v937_v27 = vadd.f32 1.0, %v1445_v26  ;;  %v1447_v28 = vpop.eup %1446 }
 0x5df   :  { %1450 = vtanh.f32 %v926_v24  ;;  %v944_v34 = vadd.f32 1.0, %v1447_v28 }
 0x5e0   :  { %1452 = vrcp.f32 %v937_v27 }
 0x5e1   :  { %1454 = vrcp.f32 %v944_v34 }
 0x5eb   :  { %v1449_v29 = vpop.eup %1448 }
 0x5ec   :  { %v1451_v31 = vpop.eup %1450 }
 0x5ed   :  { %v1453_v32 = vpop.eup %1452  ;;  %v948_v40 = vmul.f32 %v1451_v31, %v1449_v29 }
 0x5ee   :  { %v947_v55 = vmul.f32 %v1453_v32, %v2018_v51  ;;  %v1455_v57 = vpop.eup %1454  ;;  %v1514_v51 = vld [vmem:[%s2210_s1 + $0x24] ss:$16 sps:$4 sm:$0xff]  }
 0x5f0   :  { %v2075_v56 = vadd.f32 %v948_v40, %v947_v55 }
 0x5f2   :  { %1456 = vtanh.f32 %v2075_v56 }
 0x5ff   :  { %v1457_v58 = vpop.eup %1456 }
 0x600   :  { %v951_v59 = vmul.f32 %v1457_v58, %v1455_v57 }
 0x602   :  { %v954_v60 = vpack.c.bf16 %v951_v59, %v951_v59 }
 0x604   :  { %1296 = vst [vmem:[%s2214_s4 + $0x14] sm:$0xf] %v954_v60  ;;  %998 = vmatmul.mubr.bf16.vlgmr.msra.gmra.mxu0 %v954_v60  ;;  %1039 = vmatmul.mubr.bf16.vlgmr.msra.gmra.mxu1 %v954_v60 }
 0x605   :  { %1089 = vmatpush1.bf16.msra.mxu0 %v1492_v61  ;;  %1130 = vmatpush1.bf16.msra.mxu1 %v1493_v62 }
 0x606   :  { %1090 = vmatprep.subr.bf16.mxu0 %v1494_v0  ;;  %1131 = vmatprep.subr.bf16.mxu1 %v1495_v6  ;;  %v1305_v0 = vld [vmem:[%s2212_s0 + $0xe0] sm:$0xff] }
 0x607   :  { %1120 = vmatprep.mubr.bf16.mxu0 %v1522_v1  ;;  %1161 = vmatprep.mubr.bf16.mxu1 %v1522_v1  ;;  %v1500_v1 = vld [vmem:[%s2210_s1 + $0xa0] ss:$16 sps:$4 sm:$0xff]  }
 0x609   :  { %1091 = vmatpush1.bf16.msra.mxu0 %v1496_v63  ;;  %1132 = vmatpush1.bf16.msra.mxu1 %v1497_v30 }
 0x60a   :  { %1092 = vmatprep.subr.bf16.mxu0 %v1498_v33  ;;  %1133 = vmatprep.subr.bf16.mxu1 %v1499_v36 }
 0x60d   :  { %1093 = vmatpush1.bf16.msra.mxu0 %v1500_v1  ;;  %1134 = vmatpush1.bf16.msra.mxu1 %v1501_v37 }
 0x60e   :  { %1094 = vmatprep.subr.bf16.mxu0 %v1502_v38  ;;  %1135 = vmatprep.subr.bf16.mxu1 %v1503_v39 }
 0x611   :  { %1095 = vmatpush1.bf16.msra.mxu0 %v1504_v41  ;;  %1136 = vmatpush1.bf16.msra.mxu1 %v1505_v42 }
 0x612   :  { %1096 = vmatprep.subr.bf16.mxu0 %v1506_v43  ;;  %1137 = vmatprep.subr.bf16.mxu1 %v1507_v44  ;;  %v1308_v44 = vld [vmem:[%s2212_s0 + $0xf8] sm:$0xff] }
 0x615   :  { %1097 = vmatpush1.bf16.msra.mxu0 %v1508_v45  ;;  %1138 = vmatpush1.bf16.msra.mxu1 %v1509_v46  ;;  %v1307_v46 = vld [vmem:[%s2212_s0 + $0xf0] sm:$0xff] }
 0x616   :  { %1098 = vmatprep.subr.bf16.mxu0 %v1510_v47  ;;  %1139 = vmatprep.subr.bf16.mxu1 %v1511_v48 }
 0x619   :  { %1099 = vmatpush1.bf16.msra.mxu0 %v1512_v49  ;;  %1140 = vmatpush1.bf16.msra.mxu1 %v1513_v50 }
 0x61a   :  { %1100 = vmatprep.subr.bf16.mxu0 %v1514_v51  ;;  %1141 = vmatprep.subr.bf16.mxu1 %v1515_v52 }
 0x61d   :  { %1101 = vmatpush1.bf16.msra.mxu0 %v1516_v35  ;;  %1142 = vmatpush1.bf16.msra.mxu1 %v1517_v53 }
 0x61e   :  { %1102 = vmatprep.subr.bf16.mxu0 %v1518_v54  ;;  %1143 = vmatprep.subr.bf16.mxu1 %v1519_v2 }
 0x621   :  { %1103 = vmatpush1.bf16.msra.mxu0 %v1520_v3  ;;  %1144 = vmatpush1.bf16.msra.mxu1 %v1521_v4 }
 0x6c4   :  { %v999_v7 = vpop.f32.mrf.mxu0  ;;  %v1040_v8 = vpop.f32.mrf.mxu1 }
 0x6c5   :  { %v1047_v10 = vadd.f32 %v1297_v5, %v999_v7  ;;  %v1049_v25 = vadd.f32 %v1299_v22, %v1040_v8 }
 0x6c6   :  { %v1001_v11 = vpop.f32.mrf.mxu0  ;;  %v1042_v12 = vpop.f32.mrf.mxu1 }
 0x6c7   :  { %v1301_v13 = vmul.f32 -1.442695, %v1047_v10  ;;  %v1048_v14 = vadd.f32 %v1298_v9, %v1001_v11  ;;  %v1050_v21 = vadd.f32 %v1300_v20, %v1042_v12 }
 0x6c8   :  { %v1003_v15 = vpop.f32.mrf.mxu0  ;;  %v1044_v16 = vpop.f32.mrf.mxu1 }
 0x6c9   :  { %1458 = vpow2.f32 %v1301_v13  ;;  %v1302_v17 = vmul.f32 -1.442695, %v1048_v14  ;;  %v1303_v23 = vmul.f32 -1.442695, %v1050_v21 }
 0x6ca   :  { %v1004_v18 = vpop.f32.mrf.mxu0  ;;  %v1045_v19 = vpop.f32.mrf.mxu1 }
 0x6cb   :  { %1460 = vpow2.f32 %v1302_v17 }
 0x6cc   :  { %1462 = vpow2.f32 %v1303_v23 }
 0x6d6   :  { %v1459_v24 = vpop.eup %1458 }
 0x6d7   :  { %v1054_v26 = vadd.f32 1.0, %v1459_v24 }
 0x6d8   :  { %v1461_v27 = vpop.eup %1460 }
 0x6d9   :  { %1464 = vrcp.f32 %v1054_v26  ;;  %v1060_v28 = vadd.f32 1.0, %v1461_v27  ;;  %v1463_v29 = vpop.eup %1462 }
 0x6da   :  { %1466 = vtanh.f32 %v1049_v25  ;;  %v1067_v40 = vadd.f32 1.0, %v1463_v29 }
 0x6db   :  { %1468 = vrcp.f32 %v1060_v28 }
 0x6dc   :  { %1470 = vrcp.f32 %v1067_v40 }
 0x6e6   :  { %v1465_v31 = vpop.eup %1464 }
 0x6e7   :  { %v1467_v32 = vpop.eup %1466 }
 0x6e8   :  { %v1469_v34 = vpop.eup %1468  ;;  %v1071_v55 = vmul.f32 %v1467_v32, %v1465_v31 }
 0x6e9   :  { %v1070_v57 = vmul.f32 %v1469_v34, %v2075_v56  ;;  %v1471_v59 = vpop.eup %1470  ;;  %v1306_v56 = vld [vmem:[%s2212_s0 + $0xe8] sm:$0xff] }
 0x6eb   :  { %v1072_v58 = vadd.f32 %v1071_v55, %v1070_v57 }
 0x6ed   :  { %1472 = vtanh.f32 %v1072_v58 }
 0x6fa   :  { %v1473_v60 = vpop.eup %1472 }
 0x6fb   :  { %v1074_v61 = vmul.f32 %v1473_v60, %v1471_v59 }
 0x6fd   :  { %v1077_v62 = vpack.c.bf16 %v1074_v61, %v1074_v61 }
 0x6ff   :  { %1304 = vst [vmem:[%s2214_s4 + $0x18] sm:$0xf] %v1077_v62  ;;  %1121 = vmatmul.mubr.bf16.vlgmr.msra.gmra.mxu0 %v1077_v62  ;;  %1162 = vmatmul.mubr.bf16.vlgmr.msra.gmra.mxu1 %v1077_v62 }
 0x7bf   :  { %v1122_v6 = vpop.f32.mrf.mxu0  ;;  %v1163_v63 = vpop.f32.mrf.mxu1 }
 0x7c0   :  { %v1170_v30 = vadd.f32 %v1305_v0, %v1122_v6  ;;  %v1172_v49 = vadd.f32 %v1307_v46, %v1163_v63 }
 0x7c1   :  { %v1124_v33 = vpop.f32.mrf.mxu0  ;;  %v1165_v36 = vpop.f32.mrf.mxu1 }
 0x7c2   :  { %v1309_v1 = vmul.f32 -1.442695, %v1170_v30  ;;  %v1171_v37 = vadd.f32 %v1306_v56, %v1124_v33  ;;  %v1173_v45 = vadd.f32 %v1308_v44, %v1165_v36 }
 0x7c3   :  { %v1126_v38 = vpop.f32.mrf.mxu0  ;;  %v1167_v39 = vpop.f32.mrf.mxu1 }
 0x7c4   :  { %1474 = vpow2.f32 %v1309_v1  ;;  %v1310_v41 = vmul.f32 -1.442695, %v1171_v37  ;;  %v1311_v47 = vmul.f32 -1.442695, %v1173_v45 }
 0x7c5   :  { %v1127_v42 = vpop.f32.mrf.mxu0  ;;  %v1168_v43 = vpop.f32.mrf.mxu1 }
 0x7c6   :  { %1476 = vpow2.f32 %v1310_v41 }
 0x7c7   :  { %1478 = vpow2.f32 %v1311_v47 }
 0x7d1   :  { %v1475_v48 = vpop.eup %1474 }
 0x7d2   :  { %v1177_v50 = vadd.f32 1.0, %v1475_v48 }
 0x7d3   :  { %v1477_v51 = vpop.eup %1476 }
 0x7d4   :  { %1480 = vrcp.f32 %v1177_v50  ;;  %v1183_v52 = vadd.f32 1.0, %v1477_v51  ;;  %v1479_v35 = vpop.eup %1478 }
 0x7d5   :  { %1482 = vtanh.f32 %v1172_v49  ;;  %v1190_v3 = vadd.f32 1.0, %v1479_v35 }
 0x7d6   :  { %1484 = vrcp.f32 %v1183_v52 }
 0x7d7   :  { %1486 = vrcp.f32 %v1190_v3 }
 0x7e1   :  { %v1481_v53 = vpop.eup %1480 }
 0x7e2   :  { %v1483_v54 = vpop.eup %1482 }
 0x7e3   :  { %v1485_v2 = vpop.eup %1484  ;;  %v1194_v4 = vmul.f32 %v1483_v54, %v1481_v53 }
 0x7e4   :  { %v1193_v5 = vmul.f32 %v1485_v2, %v1072_v58  ;;  %v1487_v8 = vpop.eup %1486 }
 0x7e6   :  { %v1195_v7 = vadd.f32 %v1194_v4, %v1193_v5 }
 0x7e8   :  { %1488 = vtanh.f32 %v1195_v7  ;;  %1209 = vst [vmem:[%s2215_s6] sm:$0xff] %v1195_v7 }
 0x7f5   :  { %v1489_v9 = vpop.eup %1488 }
 0x7f6   :  { %v1197_v10 = vmul.f32 %v1489_v9, %v1487_v8 }
 0x7f8   :  { %v1200_v11 = vpack.c.bf16 %v1197_v10, %v1197_v10  ;;  %1207 = vst [vmem:[%s2216_s5] sm:$0xff] %v1197_v10 }
 0x7fa   :  { %1312 = vst [vmem:[%s2214_s4 + $0x1c] sm:$0xf] %v1200_v11 }

</bundles_post_ra>
